<compile_context>
chip_gen: v6e
topology: v6e:2x2x1
jax: 0.10.0
libtpu: 0.0.40
codegen_flags: <defaults>
</compile_context>

<pallas_src>
import functools

import jax
import jax.numpy as jnp
from jax import lax
from jax.experimental import pallas as pl
from jax.experimental.pallas import tpu as pltpu


_LANE = 128


def _round_up(x, m):
    return ((x + m - 1) // m) * m


def _pick_row_tile(h, w):
    """Largest divisor of h such that the flattened row-tile (th*w) is ~<=512."""
    target = max(1, 512 // max(w, 1))
    th = 1
    for cand in range(1, h + 1):
        if h % cand == 0 and cand <= target:
            th = cand
    return th


# ----------------------------- fused Pallas kernel --------------------------


def _bottleneck_kernel(x_ref, w1_ref, w2_ref, w3_ref,
                       s1_ref, b1_ref, s2_ref, b2_ref, s3_ref, b3_ref,
                       o_ref, y1p_ref, acc_ref, *, h, w, dil, th):
    """One batch image per grid step; everything between stages stays in VMEM."""
    cin_p = x_ref.shape[-1]
    wd_p = w1_ref.shape[-1]
    cout_p = o_ref.shape[-1]

    # ---- stage 1: 1x1 conv (+ bn1 + relu1) over the whole image.  Result is
    # written into the interior of a zero-haloed VMEM buffer so stage 2 needs
    # no wrapper-side pad.  bf16 MXU inputs, f32 accumulation + epilogue.
    x_bf = x_ref[0].astype(jnp.bfloat16).reshape(h * w, cin_p)
    y1 = jnp.dot(x_bf, w1_ref[...], preferred_element_type=jnp.float32)
    y1 = jnp.maximum(y1 * s1_ref[...] + b1_ref[...], 0.0)

    y1p_ref[...] = jnp.zeros_like(y1p_ref)            # (re)zero the halo
    y1p_ref[dil:dil + h, dil:dil + w, :] = y1.reshape(h, w, wd_p)

    # ---- stage 2 (3x3, stride 1, dilation=dil, fused bn2 + relu2) fused with
    # stage 3 (1x1, bn3) + residual + relu3, one row-tile at a time.
    for r0 in range(0, h, th):
        # 9-tap accumulation into a small f32 VMEM accumulator.
        acc_ref[...] = jnp.zeros_like(acc_ref)
        for kh in range(3):
            band = y1p_ref[r0 + kh * dil: r0 + kh * dil + th, :, :]
            band_bf = band.astype(jnp.bfloat16)
            for kw in range(3):
                patch = band_bf[:, kw * dil: kw * dil + w, :]
                acc_ref[...] += jnp.dot(patch.reshape(th * w, wd_p),
                                        w2_ref[kh, kw],
                                        preferred_element_type=jnp.float32)
        y2 = jnp.maximum(acc_ref[...] * s2_ref[...] + b2_ref[...], 0.0)

        # stage 3: 1x1 conv + bn3, residual add (full-precision identity), relu.
        y3 = jnp.dot(y2.astype(jnp.bfloat16), w3_ref[...],
                     preferred_element_type=jnp.float32)
        y3 = y3 * s3_ref[...] + b3_ref[...]
        res = x_ref[0, r0:r0 + th, :, :].reshape(th * w, cin_p)
        out = jnp.maximum(y3 + res, 0.0)
        o_ref[0, r0:r0 + th, :, :] = out.reshape(th, w, cout_p).astype(o_ref.dtype)


# ----------------------------- wrappers --------------------------------------


def bottleneck_forward_nhwc(x_nhwc, params, stride=1, dilation=1):
    """Fused bottleneck forward on NHWC input. Returns NHWC output."""
    if stride != 1:
        # TODO(synk): stride != 1 requires the PyTorch `downsample` module.
        raise NotImplementedError("only the downsample=None (stride==1) path")

    n, h, w, cin = x_nhwc.shape
    cin_p, wd_p, cout_p = params["cin_p"], params["wd_p"], params["cout_p"]
    cout = params["cout"]
    assert cin == params["cin"]
    assert cin_p == cout_p, "residual add requires inplanes == planes*expansion"

    d = int(dilation)
    th = _pick_row_tile(h, w)

    xp = x_nhwc
    if cin_p != cin:
        # zero-pad channels once so every matmul is lane-dense (K mult. of 128)
        xp = jnp.pad(x_nhwc, ((0, 0), (0, 0), (0, 0), (0, cin_p - cin)))

    kernel = functools.partial(_bottleneck_kernel, h=h, w=w, dil=d, th=th)

    flops = 2 * n * h * w * (cin_p * wd_p + 9 * wd_p * wd_p + wd_p * cout_p)
    bytes_accessed = (
        xp.size * xp.dtype.itemsize
        + n * h * w * cout_p * xp.dtype.itemsize
        + sum(params[k].size * params[k].dtype.itemsize
              for k in ("w1", "w2", "w3", "s1", "b1", "s2", "b2", "s3", "b3")))

    def vec_spec(c):
        return pl.BlockSpec((1, c), lambda i: (0, 0))

    grid_spec = pltpu.PrefetchScalarGridSpec(
        num_scalar_prefetch=0,
        grid=(n,),
        in_specs=[
            pl.BlockSpec((1, h, w, cin_p), lambda i: (i, 0, 0, 0)),   # x
            pl.BlockSpec((cin_p, wd_p), lambda i: (0, 0)),            # w1
            pl.BlockSpec((3, 3, wd_p, wd_p), lambda i: (0, 0, 0, 0)),  # w2
            pl.BlockSpec((wd_p, cout_p), lambda i: (0, 0)),           # w3
            vec_spec(wd_p), vec_spec(wd_p),                           # s1, b1
            vec_spec(wd_p), vec_spec(wd_p),                           # s2, b2
            vec_spec(cout_p), vec_spec(cout_p),                       # s3, b3
        ],
        out_specs=pl.BlockSpec((1, h, w, cout_p), lambda i: (i, 0, 0, 0)),
        scratch_shapes=[
            pltpu.VMEM((h + 2 * d, w + 2 * d, wd_p), jnp.float32),    # y1 (haloed)
            pltpu.VMEM((th * w, wd_p), jnp.float32),                  # conv3x3 acc
        ],
    )

    out = pl.pallas_call(
        kernel,
        out_shape=jax.ShapeDtypeStruct((n, h, w, cout_p), x_nhwc.dtype),
        grid_spec=grid_spec,
        compiler_params=pltpu.CompilerParams(
            dimension_semantics=("parallel",),
            vmem_limit_bytes=48 * 1024 * 1024),
        cost_estimate=pl.CostEstimate(
            flops=flops, transcendentals=0, bytes_accessed=bytes_accessed),
    )(xp, params["w1"], params["w2"], params["w3"],
      params["s1"], params["b1"], params["s2"], params["b2"],
      params["s3"], params["b3"])

    if cout_p != cout:
        out = out[..., :cout]
    return out


def bottleneck_forward(x_nchw, params, stride=1, dilation=1):
    """PyTorch-convention entry point (NCHW in / NCHW out)."""
    # TODO(synk): in an end-to-end NHWC model these boundary transposes vanish;
    # they are kept only to honor the PyTorch NCHW calling convention.
    x = jnp.transpose(x_nchw, (0, 2, 3, 1))
    y = bottleneck_forward_nhwc(x, params, stride=stride, dilation=dilation)
    return jnp.transpose(y, (0, 3, 1, 2))


# ----------------------------- params -----------------------------------------


def _fold_bn(gamma, beta, mean, var, eps=1e-5):
    scale = gamma / jnp.sqrt(var + eps)
    shift = beta - mean * scale
    return scale.reshape(1, -1), shift.reshape(1, -1)


def init_bottleneck_params(key, inplanes, planes, groups=1, base_width=64):
    expansion = 4
    width = int(planes * (base_width / 64.0)) * groups
    out_planes = planes * expansion
    k1, k2, k3 = jax.random.split(key, 3)

    def kaiming(k, shape):
        fan_in = shape[1] * shape[2] * shape[3]
        return jax.random.normal(k, shape, jnp.float32) * jnp.sqrt(2.0 / fan_in)

    # PyTorch-native OIHW weights (kept for the pure-JAX reference).
    w1_oihw = kaiming(k1, (width, inplanes, 1, 1))
    w2_oihw = kaiming(k2, (width, width, 3, 3))
    w3_oihw = kaiming(k3, (out_planes, width, 1, 1))

    def bn(c):
        # nn.init.ones_(weight), zeros_(bias); running stats at init.
        return (jnp.ones((c,), jnp.float32), jnp.zeros((c,), jnp.float32),
                jnp.zeros((c,), jnp.float32), jnp.ones((c,), jnp.float32))

    s1, b1 = _fold_bn(*bn(width))
    s2, b2 = _fold_bn(*bn(width))
    s3, b3 = _fold_bn(*bn(out_planes))

    # Lane-dense (multiple-of-128) padded, bf16 kernel layouts.
    cin_p = _round_up(inplanes, _LANE)
    wd_p = _round_up(width, _LANE)
    cout_p = _round_up(out_planes, _LANE)

    def pad2(a, r, c):
        return jnp.pad(a, ((0, r - a.shape[0]), (0, c - a.shape[1])))

    w1 = pad2(w1_oihw[:, :, 0, 0].T, cin_p, wd_p).astype(jnp.bfloat16)
    w3 = pad2(w3_oihw[:, :, 0, 0].T, wd_p, cout_p).astype(jnp.bfloat16)
    w2_hwio = jnp.transpose(w2_oihw, (2, 3, 1, 0))            # (3,3,Cin,Cout)
    w2 = jnp.pad(w2_hwio, ((0, 0), (0, 0), (0, wd_p - width),
                           (0, wd_p - width))).astype(jnp.bfloat16)

    def padvec(v, c):
        return jnp.pad(v, ((0, 0), (0, c - v.shape[1])))

    return dict(
        cin=inplanes, width=width, cout=out_planes,
        cin_p=cin_p, wd_p=wd_p, cout_p=cout_p,
        w1_oihw=w1_oihw, w2_oihw=w2_oihw, w3_oihw=w3_oihw,
        w1=w1, w2=w2, w3=w3,
        s1=padvec(s1, wd_p), b1=padvec(b1, wd_p),
        s2=padvec(s2, wd_p), b2=padvec(b2, wd_p),
        s3=padvec(s3, cout_p), b3=padvec(b3, cout_p),
    )


# ----------------------------- pure-JAX reference -----------------------------


def bottleneck_ref(x_nchw, params, stride=1, dilation=1, mxu_bf16=False):
    """Reference.  mxu_bf16=True mimics the kernel's bf16-input / f32-accumulate
    MXU numerics so the comparison isolates structural correctness."""
    def cast(a):
        return a.astype(jnp.bfloat16).astype(jnp.float32) if mxu_bf16 else a

    def conv(x, w_oihw, stride=1, padding=0, dilation=1):
        return lax.conv_general_dilated(
            cast(x), cast(w_oihw), window_strides=(stride, stride),
            padding=[(padding, padding)] * 2,
            rhs_dilation=(dilation, dilation),
            dimension_numbers=("NCHW", "OIHW", "NCHW"))

    def bn(x, scale, shift, c):
        return (x * scale[0, :c].reshape(1, -1, 1, 1)
                + shift[0, :c].reshape(1, -1, 1, 1))

    width, cout = params["width"], params["cout"]
    y = jnp.maximum(bn(conv(x_nchw, params["w1_oihw"]),
                       params["s1"], params["b1"], width), 0.0)
    y = jnp.maximum(bn(conv(y, params["w2_oihw"], stride=stride,
                            padding=dilation, dilation=dilation),
                       params["s2"], params["b2"], width), 0.0)
    y = bn(conv(y, params["w3_oihw"]), params["s3"], params["b3"], cout)
    return jnp.maximum(y + x_nchw, 0.0)


# ----------------------------- main --------------------------------------------

if __name__ == "__main__":
    key = jax.random.PRNGKey(0)
    kx, kp = jax.random.split(key)

    planes = 4
    inplanes = planes * 4          # == planes * expansion -> downsample=None path
    N, H, W = 2, 16, 16
    x = jax.random.normal(kx, (N, inplanes, H, W), jnp.float32)

    params = init_bottleneck_params(kp, inplanes, planes)

    out = jax.block_until_ready(bottleneck_forward(x, params, stride=1, dilation=1))
    assert out.shape == (N, planes * 4, H, W)

    # Tight check vs a reference that mimics the kernel's bf16 MXU numerics.
    ref_bf16 = jax.block_until_ready(
        bottleneck_ref(x, params, stride=1, dilation=1, mxu_bf16=True))
    assert jnp.allclose(out, ref_bf16, rtol=1e-2, atol=1e-2), (
        float(jnp.max(jnp.abs(out - ref_bf16))))

    # Loose sanity check vs the full-f32 reference (bf16 MXU precision bound).
    ref_f32 = jax.block_until_ready(
        bottleneck_ref(x, params, stride=1, dilation=1, mxu_bf16=False))
    assert jnp.allclose(out, ref_f32, rtol=1e-1, atol=1e-1), (
        float(jnp.max(jnp.abs(out - ref_f32))))

    print("KERNEL_OK")
</pallas_src>

<mosaic_0001>
module attributes {stable_mosaic.version = 11 : i64} {
  func.func @_bottleneck_kernel(%arg0: i32, %arg1: memref<1x16x16x128xf32, #tpu.memory_space<vmem>>, %arg2: memref<128x128xbf16, #tpu.memory_space<vmem>>, %arg3: memref<3x3x128x128xbf16, #tpu.memory_space<vmem>>, %arg4: memref<128x128xbf16, #tpu.memory_space<vmem>>, %arg5: memref<1x128xf32, #tpu.memory_space<vmem>>, %arg6: memref<1x128xf32, #tpu.memory_space<vmem>>, %arg7: memref<1x128xf32, #tpu.memory_space<vmem>>, %arg8: memref<1x128xf32, #tpu.memory_space<vmem>>, %arg9: memref<1x128xf32, #tpu.memory_space<vmem>>, %arg10: memref<1x128xf32, #tpu.memory_space<vmem>>, %arg11: memref<1x16x16x128xf32, #tpu.memory_space<vmem>>, %arg12: memref<18x18x128xf32, #tpu.memory_space<vmem>>, %arg13: memref<256x128xf32, #tpu.memory_space<vmem>>) attributes {dimension_semantics = [#tpu.dimension_semantics<parallel>], iteration_bounds = array<i64: 2>, scalar_prefetch = 0 : i64, scratch_operands = 2 : i64, tpu.core_type = #tpu.core_type<tc>, window_params = [{transform_indices = @transform_0, window_bounds = array<i64: 1, 16, 16, 128>}, {pipeline_mode = #tpu.pipeline_mode<synchronous>, transform_indices = @transform_1, window_bounds = array<i64: 128, 128>}, {pipeline_mode = #tpu.pipeline_mode<synchronous>, transform_indices = @transform_2, window_bounds = array<i64: 3, 3, 128, 128>}, {pipeline_mode = #tpu.pipeline_mode<synchronous>, transform_indices = @transform_3, window_bounds = array<i64: 128, 128>}, {pipeline_mode = #tpu.pipeline_mode<synchronous>, transform_indices = @transform_4, window_bounds = array<i64: 1, 128>}, {pipeline_mode = #tpu.pipeline_mode<synchronous>, transform_indices = @transform_5, window_bounds = array<i64: 1, 128>}, {pipeline_mode = #tpu.pipeline_mode<synchronous>, transform_indices = @transform_6, window_bounds = array<i64: 1, 128>}, {pipeline_mode = #tpu.pipeline_mode<synchronous>, transform_indices = @transform_7, window_bounds = array<i64: 1, 128>}, {pipeline_mode = #tpu.pipeline_mode<synchronous>, transform_indices = @transform_8, window_bounds = array<i64: 1, 128>}, {pipeline_mode = #tpu.pipeline_mode<synchronous>, transform_indices = @transform_9, window_bounds = array<i64: 1, 128>}, {transform_indices = @transform_10, window_bounds = array<i64: 1, 16, 16, 128>}]} {
    %c0 = arith.constant 0 : index
    %c0_0 = arith.constant 0 : index
    %c0_1 = arith.constant 0 : index
    %c0_2 = arith.constant 0 : index
    %0 = vector.load %arg1[%c0, %c0_0, %c0_1, %c0_2] : memref<1x16x16x128xf32, #tpu.memory_space<vmem>>, vector<1x16x16x128xf32>
    %1 = vector.shape_cast %0 : vector<1x16x16x128xf32> to vector<16x16x128xf32>
    %2 = arith.truncf %1 : vector<16x16x128xf32> to vector<16x16x128xbf16>
    %3 = vector.shape_cast %2 : vector<16x16x128xbf16> to vector<256x128xbf16>
    %c0_3 = arith.constant 0 : index
    %c0_4 = arith.constant 0 : index
    %4 = vector.load %arg2[%c0_3, %c0_4] : memref<128x128xbf16, #tpu.memory_space<vmem>>, vector<128x128xbf16>
    %cst = arith.constant dense<0.000000e+00> : vector<256x128xf32>
    %5 = tpu.matmul %3, %4, %cst {dimension_numbers = #tpu.dot_dimension_numbers<[1], [0], [0], [1], [0, 0, 1, 1], [], []>} : vector<256x128xbf16>, vector<128x128xbf16>, vector<256x128xf32> -> vector<256x128xf32>
    %c0_5 = arith.constant 0 : index
    %c0_6 = arith.constant 0 : index
    %6 = vector.load %arg5[%c0_5, %c0_6] : memref<1x128xf32, #tpu.memory_space<vmem>>, vector<1x128xf32>
    %7 = vector.broadcast %6 : vector<1x128xf32> to vector<256x128xf32>
    %8 = arith.mulf %5, %7 : vector<256x128xf32>
    %c0_7 = arith.constant 0 : index
    %c0_8 = arith.constant 0 : index
    %9 = vector.load %arg6[%c0_7, %c0_8] : memref<1x128xf32, #tpu.memory_space<vmem>>, vector<1x128xf32>
    %10 = vector.broadcast %9 : vector<1x128xf32> to vector<256x128xf32>
    %11 = arith.addf %8, %10 : vector<256x128xf32>
    %cst_9 = arith.constant 0.000000e+00 : f32
    %12 = vector.broadcast %cst_9 : f32 to vector<256x128xf32>
    %13 = arith.maximumf %11, %12 : vector<256x128xf32>
    %cst_10 = arith.constant 0.000000e+00 : f32
    %14 = vector.broadcast %cst_10 : f32 to vector<18x18x128xf32>
    %c0_11 = arith.constant 0 : index
    %c0_12 = arith.constant 0 : index
    %c0_13 = arith.constant 0 : index
    %15 = vector.load %arg12[%c0_11, %c0_12, %c0_13] : memref<18x18x128xf32, #tpu.memory_space<vmem>>, vector<18x18x128xf32>
    tpu.vector_store %arg12[%c0_11, %c0_12, %c0_13], %14 {strides = array<i32>} : memref<18x18x128xf32, #tpu.memory_space<vmem>>, vector<18x18x128xf32>,
    %16 = vector.shape_cast %13 : vector<256x128xf32> to vector<16x16x128xf32>
    %c1 = arith.constant 1 : index
    %c1_14 = arith.constant 1 : index
    %c0_15 = arith.constant 0 : index
    %17 = vector.load %arg12[%c1, %c1_14, %c0_15] : memref<18x18x128xf32, #tpu.memory_space<vmem>>, vector<16x16x128xf32>
    tpu.vector_store %arg12[%c1, %c1_14, %c0_15], %16 {strides = array<i32>} : memref<18x18x128xf32, #tpu.memory_space<vmem>>, vector<16x16x128xf32>,
    %cst_16 = arith.constant 0.000000e+00 : f32
    %18 = vector.broadcast %cst_16 : f32 to vector<256x128xf32>
    %c0_17 = arith.constant 0 : index
    %c0_18 = arith.constant 0 : index
    %19 = vector.load %arg13[%c0_17, %c0_18] : memref<256x128xf32, #tpu.memory_space<vmem>>, vector<256x128xf32>
    tpu.vector_store %arg13[%c0_17, %c0_18], %18 {strides = array<i32>} : memref<256x128xf32, #tpu.memory_space<vmem>>, vector<256x128xf32>,
    %c0_19 = arith.constant 0 : index
    %c0_20 = arith.constant 0 : index
    %c0_21 = arith.constant 0 : index
    %20 = vector.load %arg12[%c0_19, %c0_20, %c0_21] : memref<18x18x128xf32, #tpu.memory_space<vmem>>, vector<16x18x128xf32>
    %21 = arith.truncf %20 : vector<16x18x128xf32> to vector<16x18x128xbf16>
    %22 = vector.extract_strided_slice %21 {offsets = [0, 0, 0], sizes = [16, 16, 128], strides = [1, 1, 1]} : vector<16x18x128xbf16> to vector<16x16x128xbf16>
    %c0_22 = arith.constant 0 : index
    %c0_23 = arith.constant 0 : index
    %23 = vector.load %arg13[%c0_22, %c0_23] : memref<256x128xf32, #tpu.memory_space<vmem>>, vector<256x128xf32>
    %24 = vector.shape_cast %22 : vector<16x16x128xbf16> to vector<256x128xbf16>
    %c0_24 = arith.constant 0 : index
    %c0_25 = arith.constant 0 : index
    %c0_26 = arith.constant 0 : index
    %c0_27 = arith.constant 0 : index
    %25 = vector.load %arg3[%c0_24, %c0_25, %c0_26, %c0_27] : memref<3x3x128x128xbf16, #tpu.memory_space<vmem>>, vector<1x1x128x128xbf16>
    %26 = vector.shape_cast %25 : vector<1x1x128x128xbf16> to vector<128x128xbf16>
    %cst_28 = arith.constant dense<0.000000e+00> : vector<256x128xf32>
    %27 = tpu.matmul %24, %26, %cst_28 {dimension_numbers = #tpu.dot_dimension_numbers<[1], [0], [0], [1], [0, 0, 1, 1], [], []>} : vector<256x128xbf16>, vector<128x128xbf16>, vector<256x128xf32> -> vector<256x128xf32>
    %28 = arith.addf %23, %27 : vector<256x128xf32>
    %c0_29 = arith.constant 0 : index
    %c0_30 = arith.constant 0 : index
    %29 = vector.load %arg13[%c0_29, %c0_30] : memref<256x128xf32, #tpu.memory_space<vmem>>, vector<256x128xf32>
    tpu.vector_store %arg13[%c0_29, %c0_30], %28 {strides = array<i32>} : memref<256x128xf32, #tpu.memory_space<vmem>>, vector<256x128xf32>,
    %30 = vector.extract_strided_slice %21 {offsets = [0, 1, 0], sizes = [16, 16, 128], strides = [1, 1, 1]} : vector<16x18x128xbf16> to vector<16x16x128xbf16>
    %c0_31 = arith.constant 0 : index
    %c0_32 = arith.constant 0 : index
    %31 = vector.load %arg13[%c0_31, %c0_32] : memref<256x128xf32, #tpu.memory_space<vmem>>, vector<256x128xf32>
    %32 = vector.shape_cast %30 : vector<16x16x128xbf16> to vector<256x128xbf16>
    %c0_33 = arith.constant 0 : index
    %c1_34 = arith.constant 1 : index
    %c0_35 = arith.constant 0 : index
    %c0_36 = arith.constant 0 : index
    %33 = vector.load %arg3[%c0_33, %c1_34, %c0_35, %c0_36] : memref<3x3x128x128xbf16, #tpu.memory_space<vmem>>, vector<1x1x128x128xbf16>
    %34 = vector.shape_cast %33 : vector<1x1x128x128xbf16> to vector<128x128xbf16>
    %cst_37 = arith.constant dense<0.000000e+00> : vector<256x128xf32>
    %35 = tpu.matmul %32, %34, %cst_37 {dimension_numbers = #tpu.dot_dimension_numbers<[1], [0], [0], [1], [0, 0, 1, 1], [], []>} : vector<256x128xbf16>, vector<128x128xbf16>, vector<256x128xf32> -> vector<256x128xf32>
    %36 = arith.addf %31, %35 : vector<256x128xf32>
    %c0_38 = arith.constant 0 : index
    %c0_39 = arith.constant 0 : index
    %37 = vector.load %arg13[%c0_38, %c0_39] : memref<256x128xf32, #tpu.memory_space<vmem>>, vector<256x128xf32>
    tpu.vector_store %arg13[%c0_38, %c0_39], %36 {strides = array<i32>} : memref<256x128xf32, #tpu.memory_space<vmem>>, vector<256x128xf32>,
    %38 = vector.extract_strided_slice %21 {offsets = [0, 2, 0], sizes = [16, 16, 128], strides = [1, 1, 1]} : vector<16x18x128xbf16> to vector<16x16x128xbf16>
    %c0_40 = arith.constant 0 : index
    %c0_41 = arith.constant 0 : index
    %39 = vector.load %arg13[%c0_40, %c0_41] : memref<256x128xf32, #tpu.memory_space<vmem>>, vector<256x128xf32>
    %40 = vector.shape_cast %38 : vector<16x16x128xbf16> to vector<256x128xbf16>
    %c0_42 = arith.constant 0 : index
    %c2 = arith.constant 2 : index
    %c0_43 = arith.constant 0 : index
    %c0_44 = arith.constant 0 : index
    %41 = vector.load %arg3[%c0_42, %c2, %c0_43, %c0_44] : memref<3x3x128x128xbf16, #tpu.memory_space<vmem>>, vector<1x1x128x128xbf16>
    %42 = vector.shape_cast %41 : vector<1x1x128x128xbf16> to vector<128x128xbf16>
    %cst_45 = arith.constant dense<0.000000e+00> : vector<256x128xf32>
    %43 = tpu.matmul %40, %42, %cst_45 {dimension_numbers = #tpu.dot_dimension_numbers<[1], [0], [0], [1], [0, 0, 1, 1], [], []>} : vector<256x128xbf16>, vector<128x128xbf16>, vector<256x128xf32> -> vector<256x128xf32>
    %44 = arith.addf %39, %43 : vector<256x128xf32>
    %c0_46 = arith.constant 0 : index
    %c0_47 = arith.constant 0 : index
    %45 = vector.load %arg13[%c0_46, %c0_47] : memref<256x128xf32, #tpu.memory_space<vmem>>, vector<256x128xf32>
    tpu.vector_store %arg13[%c0_46, %c0_47], %44 {strides = array<i32>} : memref<256x128xf32, #tpu.memory_space<vmem>>, vector<256x128xf32>,
    %c1_48 = arith.constant 1 : index
    %c0_49 = arith.constant 0 : index
    %c0_50 = arith.constant 0 : index
    %46 = vector.load %arg12[%c1_48, %c0_49, %c0_50] : memref<18x18x128xf32, #tpu.memory_space<vmem>>, vector<16x18x128xf32>
    %47 = arith.truncf %46 : vector<16x18x128xf32> to vector<16x18x128xbf16>
    %48 = vector.extract_strided_slice %47 {offsets = [0, 0, 0], sizes = [16, 16, 128], strides = [1, 1, 1]} : vector<16x18x128xbf16> to vector<16x16x128xbf16>
    %c0_51 = arith.constant 0 : index
    %c0_52 = arith.constant 0 : index
    %49 = vector.load %arg13[%c0_51, %c0_52] : memref<256x128xf32, #tpu.memory_space<vmem>>, vector<256x128xf32>
    %50 = vector.shape_cast %48 : vector<16x16x128xbf16> to vector<256x128xbf16>
    %c1_53 = arith.constant 1 : index
    %c0_54 = arith.constant 0 : index
    %c0_55 = arith.constant 0 : index
    %c0_56 = arith.constant 0 : index
    %51 = vector.load %arg3[%c1_53, %c0_54, %c0_55, %c0_56] : memref<3x3x128x128xbf16, #tpu.memory_space<vmem>>, vector<1x1x128x128xbf16>
    %52 = vector.shape_cast %51 : vector<1x1x128x128xbf16> to vector<128x128xbf16>
    %cst_57 = arith.constant dense<0.000000e+00> : vector<256x128xf32>
    %53 = tpu.matmul %50, %52, %cst_57 {dimension_numbers = #tpu.dot_dimension_numbers<[1], [0], [0], [1], [0, 0, 1, 1], [], []>} : vector<256x128xbf16>, vector<128x128xbf16>, vector<256x128xf32> -> vector<256x128xf32>
    %54 = arith.addf %49, %53 : vector<256x128xf32>
    %c0_58 = arith.constant 0 : index
    %c0_59 = arith.constant 0 : index
    %55 = vector.load %arg13[%c0_58, %c0_59] : memref<256x128xf32, #tpu.memory_space<vmem>>, vector<256x128xf32>
    tpu.vector_store %arg13[%c0_58, %c0_59], %54 {strides = array<i32>} : memref<256x128xf32, #tpu.memory_space<vmem>>, vector<256x128xf32>,
    %56 = vector.extract_strided_slice %47 {offsets = [0, 1, 0], sizes = [16, 16, 128], strides = [1, 1, 1]} : vector<16x18x128xbf16> to vector<16x16x128xbf16>
    %c0_60 = arith.constant 0 : index
    %c0_61 = arith.constant 0 : index
    %57 = vector.load %arg13[%c0_60, %c0_61] : memref<256x128xf32, #tpu.memory_space<vmem>>, vector<256x128xf32>
    %58 = vector.shape_cast %56 : vector<16x16x128xbf16> to vector<256x128xbf16>
    %c1_62 = arith.constant 1 : index
    %c1_63 = arith.constant 1 : index
    %c0_64 = arith.constant 0 : index
    %c0_65 = arith.constant 0 : index
    %59 = vector.load %arg3[%c1_62, %c1_63, %c0_64, %c0_65] : memref<3x3x128x128xbf16, #tpu.memory_space<vmem>>, vector<1x1x128x128xbf16>
    %60 = vector.shape_cast %59 : vector<1x1x128x128xbf16> to vector<128x128xbf16>
    %cst_66 = arith.constant dense<0.000000e+00> : vector<256x128xf32>
    %61 = tpu.matmul %58, %60, %cst_66 {dimension_numbers = #tpu.dot_dimension_numbers<[1], [0], [0], [1], [0, 0, 1, 1], [], []>} : vector<256x128xbf16>, vector<128x128xbf16>, vector<256x128xf32> -> vector<256x128xf32>
    %62 = arith.addf %57, %61 : vector<256x128xf32>
    %c0_67 = arith.constant 0 : index
    %c0_68 = arith.constant 0 : index
    %63 = vector.load %arg13[%c0_67, %c0_68] : memref<256x128xf32, #tpu.memory_space<vmem>>, vector<256x128xf32>
    tpu.vector_store %arg13[%c0_67, %c0_68], %62 {strides = array<i32>} : memref<256x128xf32, #tpu.memory_space<vmem>>, vector<256x128xf32>,
    %64 = vector.extract_strided_slice %47 {offsets = [0, 2, 0], sizes = [16, 16, 128], strides = [1, 1, 1]} : vector<16x18x128xbf16> to vector<16x16x128xbf16>
    %c0_69 = arith.constant 0 : index
    %c0_70 = arith.constant 0 : index
    %65 = vector.load %arg13[%c0_69, %c0_70] : memref<256x128xf32, #tpu.memory_space<vmem>>, vector<256x128xf32>
    %66 = vector.shape_cast %64 : vector<16x16x128xbf16> to vector<256x128xbf16>
    %c1_71 = arith.constant 1 : index
    %c2_72 = arith.constant 2 : index
    %c0_73 = arith.constant 0 : index
    %c0_74 = arith.constant 0 : index
    %67 = vector.load %arg3[%c1_71, %c2_72, %c0_73, %c0_74] : memref<3x3x128x128xbf16, #tpu.memory_space<vmem>>, vector<1x1x128x128xbf16>
    %68 = vector.shape_cast %67 : vector<1x1x128x128xbf16> to vector<128x128xbf16>
    %cst_75 = arith.constant dense<0.000000e+00> : vector<256x128xf32>
    %69 = tpu.matmul %66, %68, %cst_75 {dimension_numbers = #tpu.dot_dimension_numbers<[1], [0], [0], [1], [0, 0, 1, 1], [], []>} : vector<256x128xbf16>, vector<128x128xbf16>, vector<256x128xf32> -> vector<256x128xf32>
    %70 = arith.addf %65, %69 : vector<256x128xf32>
    %c0_76 = arith.constant 0 : index
    %c0_77 = arith.constant 0 : index
    %71 = vector.load %arg13[%c0_76, %c0_77] : memref<256x128xf32, #tpu.memory_space<vmem>>, vector<256x128xf32>
    tpu.vector_store %arg13[%c0_76, %c0_77], %70 {strides = array<i32>} : memref<256x128xf32, #tpu.memory_space<vmem>>, vector<256x128xf32>,
    %c2_78 = arith.constant 2 : index
    %c0_79 = arith.constant 0 : index
    %c0_80 = arith.constant 0 : index
    %72 = vector.load %arg12[%c2_78, %c0_79, %c0_80] : memref<18x18x128xf32, #tpu.memory_space<vmem>>, vector<16x18x128xf32>
    %73 = arith.truncf %72 : vector<16x18x128xf32> to vector<16x18x128xbf16>
    %74 = vector.extract_strided_slice %73 {offsets = [0, 0, 0], sizes = [16, 16, 128], strides = [1, 1, 1]} : vector<16x18x128xbf16> to vector<16x16x128xbf16>
    %c0_81 = arith.constant 0 : index
    %c0_82 = arith.constant 0 : index
    %75 = vector.load %arg13[%c0_81, %c0_82] : memref<256x128xf32, #tpu.memory_space<vmem>>, vector<256x128xf32>
    %76 = vector.shape_cast %74 : vector<16x16x128xbf16> to vector<256x128xbf16>
    %c2_83 = arith.constant 2 : index
    %c0_84 = arith.constant 0 : index
    %c0_85 = arith.constant 0 : index
    %c0_86 = arith.constant 0 : index
    %77 = vector.load %arg3[%c2_83, %c0_84, %c0_85, %c0_86] : memref<3x3x128x128xbf16, #tpu.memory_space<vmem>>, vector<1x1x128x128xbf16>
    %78 = vector.shape_cast %77 : vector<1x1x128x128xbf16> to vector<128x128xbf16>
    %cst_87 = arith.constant dense<0.000000e+00> : vector<256x128xf32>
    %79 = tpu.matmul %76, %78, %cst_87 {dimension_numbers = #tpu.dot_dimension_numbers<[1], [0], [0], [1], [0, 0, 1, 1], [], []>} : vector<256x128xbf16>, vector<128x128xbf16>, vector<256x128xf32> -> vector<256x128xf32>
    %80 = arith.addf %75, %79 : vector<256x128xf32>
    %c0_88 = arith.constant 0 : index
    %c0_89 = arith.constant 0 : index
    %81 = vector.load %arg13[%c0_88, %c0_89] : memref<256x128xf32, #tpu.memory_space<vmem>>, vector<256x128xf32>
    tpu.vector_store %arg13[%c0_88, %c0_89], %80 {strides = array<i32>} : memref<256x128xf32, #tpu.memory_space<vmem>>, vector<256x128xf32>,
    %82 = vector.extract_strided_slice %73 {offsets = [0, 1, 0], sizes = [16, 16, 128], strides = [1, 1, 1]} : vector<16x18x128xbf16> to vector<16x16x128xbf16>
    %c0_90 = arith.constant 0 : index
    %c0_91 = arith.constant 0 : index
    %83 = vector.load %arg13[%c0_90, %c0_91] : memref<256x128xf32, #tpu.memory_space<vmem>>, vector<256x128xf32>
    %84 = vector.shape_cast %82 : vector<16x16x128xbf16> to vector<256x128xbf16>
    %c2_92 = arith.constant 2 : index
    %c1_93 = arith.constant 1 : index
    %c0_94 = arith.constant 0 : index
    %c0_95 = arith.constant 0 : index
    %85 = vector.load %arg3[%c2_92, %c1_93, %c0_94, %c0_95] : memref<3x3x128x128xbf16, #tpu.memory_space<vmem>>, vector<1x1x128x128xbf16>
    %86 = vector.shape_cast %85 : vector<1x1x128x128xbf16> to vector<128x128xbf16>
    %cst_96 = arith.constant dense<0.000000e+00> : vector<256x128xf32>
    %87 = tpu.matmul %84, %86, %cst_96 {dimension_numbers = #tpu.dot_dimension_numbers<[1], [0], [0], [1], [0, 0, 1, 1], [], []>} : vector<256x128xbf16>, vector<128x128xbf16>, vector<256x128xf32> -> vector<256x128xf32>
    %88 = arith.addf %83, %87 : vector<256x128xf32>
    %c0_97 = arith.constant 0 : index
    %c0_98 = arith.constant 0 : index
    %89 = vector.load %arg13[%c0_97, %c0_98] : memref<256x128xf32, #tpu.memory_space<vmem>>, vector<256x128xf32>
    tpu.vector_store %arg13[%c0_97, %c0_98], %88 {strides = array<i32>} : memref<256x128xf32, #tpu.memory_space<vmem>>, vector<256x128xf32>,
    %90 = vector.extract_strided_slice %73 {offsets = [0, 2, 0], sizes = [16, 16, 128], strides = [1, 1, 1]} : vector<16x18x128xbf16> to vector<16x16x128xbf16>
    %c0_99 = arith.constant 0 : index
    %c0_100 = arith.constant 0 : index
    %91 = vector.load %arg13[%c0_99, %c0_100] : memref<256x128xf32, #tpu.memory_space<vmem>>, vector<256x128xf32>
    %92 = vector.shape_cast %90 : vector<16x16x128xbf16> to vector<256x128xbf16>
    %c2_101 = arith.constant 2 : index
    %c2_102 = arith.constant 2 : index
    %c0_103 = arith.constant 0 : index
    %c0_104 = arith.constant 0 : index
    %93 = vector.load %arg3[%c2_101, %c2_102, %c0_103, %c0_104] : memref<3x3x128x128xbf16, #tpu.memory_space<vmem>>, vector<1x1x128x128xbf16>
    %94 = vector.shape_cast %93 : vector<1x1x128x128xbf16> to vector<128x128xbf16>
    %cst_105 = arith.constant dense<0.000000e+00> : vector<256x128xf32>
    %95 = tpu.matmul %92, %94, %cst_105 {dimension_numbers = #tpu.dot_dimension_numbers<[1], [0], [0], [1], [0, 0, 1, 1], [], []>} : vector<256x128xbf16>, vector<128x128xbf16>, vector<256x128xf32> -> vector<256x128xf32>
    %96 = arith.addf %91, %95 : vector<256x128xf32>
    %c0_106 = arith.constant 0 : index
    %c0_107 = arith.constant 0 : index
    %97 = vector.load %arg13[%c0_106, %c0_107] : memref<256x128xf32, #tpu.memory_space<vmem>>, vector<256x128xf32>
    tpu.vector_store %arg13[%c0_106, %c0_107], %96 {strides = array<i32>} : memref<256x128xf32, #tpu.memory_space<vmem>>, vector<256x128xf32>,
    %c0_108 = arith.constant 0 : index
    %c0_109 = arith.constant 0 : index
    %98 = vector.load %arg13[%c0_108, %c0_109] : memref<256x128xf32, #tpu.memory_space<vmem>>, vector<256x128xf32>
    %c0_110 = arith.constant 0 : index
    %c0_111 = arith.constant 0 : index
    %99 = vector.load %arg7[%c0_110, %c0_111] : memref<1x128xf32, #tpu.memory_space<vmem>>, vector<1x128xf32>
    %100 = vector.broadcast %99 : vector<1x128xf32> to vector<256x128xf32>
    %101 = arith.mulf %98, %100 : vector<256x128xf32>
    %c0_112 = arith.constant 0 : index
    %c0_113 = arith.constant 0 : index
    %102 = vector.load %arg8[%c0_112, %c0_113] : memref<1x128xf32, #tpu.memory_space<vmem>>, vector<1x128xf32>
    %103 = vector.broadcast %102 : vector<1x128xf32> to vector<256x128xf32>
    %104 = arith.addf %101, %103 : vector<256x128xf32>
    %cst_114 = arith.constant 0.000000e+00 : f32
    %105 = vector.broadcast %cst_114 : f32 to vector<256x128xf32>
    %106 = arith.maximumf %104, %105 : vector<256x128xf32>
    %107 = arith.truncf %106 : vector<256x128xf32> to vector<256x128xbf16>
    %c0_115 = arith.constant 0 : index
    %c0_116 = arith.constant 0 : index
    %108 = vector.load %arg4[%c0_115, %c0_116] : memref<128x128xbf16, #tpu.memory_space<vmem>>, vector<128x128xbf16>
    %cst_117 = arith.constant dense<0.000000e+00> : vector<256x128xf32>
    %109 = tpu.matmul %107, %108, %cst_117 {dimension_numbers = #tpu.dot_dimension_numbers<[1], [0], [0], [1], [0, 0, 1, 1], [], []>} : vector<256x128xbf16>, vector<128x128xbf16>, vector<256x128xf32> -> vector<256x128xf32>
    %c0_118 = arith.constant 0 : index
    %c0_119 = arith.constant 0 : index
    %110 = vector.load %arg9[%c0_118, %c0_119] : memref<1x128xf32, #tpu.memory_space<vmem>>, vector<1x128xf32>
    %111 = vector.broadcast %110 : vector<1x128xf32> to vector<256x128xf32>
    %112 = arith.mulf %109, %111 : vector<256x128xf32>
    %c0_120 = arith.constant 0 : index
    %c0_121 = arith.constant 0 : index
    %113 = vector.load %arg10[%c0_120, %c0_121] : memref<1x128xf32, #tpu.memory_space<vmem>>, vector<1x128xf32>
    %114 = vector.broadcast %113 : vector<1x128xf32> to vector<256x128xf32>
    %115 = arith.addf %112, %114 : vector<256x128xf32>
    %c0_122 = arith.constant 0 : index
    %c0_123 = arith.constant 0 : index
    %c0_124 = arith.constant 0 : index
    %c0_125 = arith.constant 0 : index
    %116 = vector.load %arg1[%c0_122, %c0_123, %c0_124, %c0_125] : memref<1x16x16x128xf32, #tpu.memory_space<vmem>>, vector<1x16x16x128xf32>
    %117 = vector.shape_cast %116 : vector<1x16x16x128xf32> to vector<16x16x128xf32>
    %118 = vector.shape_cast %117 : vector<16x16x128xf32> to vector<256x128xf32>
    %119 = arith.addf %115, %118 : vector<256x128xf32>
    %cst_126 = arith.constant 0.000000e+00 : f32
    %120 = vector.broadcast %cst_126 : f32 to vector<256x128xf32>
    %121 = arith.maximumf %119, %120 : vector<256x128xf32>
    %122 = vector.shape_cast %121 : vector<256x128xf32> to vector<16x16x128xf32>
    %c0_127 = arith.constant 0 : index
    %c0_128 = arith.constant 0 : index
    %c0_129 = arith.constant 0 : index
    %c0_130 = arith.constant 0 : index
    %123 = vector.load %arg11[%c0_127, %c0_128, %c0_129, %c0_130] : memref<1x16x16x128xf32, #tpu.memory_space<vmem>>, vector<1x16x16x128xf32>
    %124 = vector.shape_cast %123 : vector<1x16x16x128xf32> to vector<16x16x128xf32>
    %125 = vector.shape_cast %122 : vector<16x16x128xf32> to vector<1x16x16x128xf32>
    tpu.vector_store %arg11[%c0_127, %c0_128, %c0_129, %c0_130], %125 {strides = array<i32>} : memref<1x16x16x128xf32, #tpu.memory_space<vmem>>, vector<1x16x16x128xf32>,
    return
  }
  func.func @transform_0(%arg0: i32) -> (i32, i32, i32, i32) {
    %c0_i32 = arith.constant 0 : i32
    %c0_i32_0 = arith.constant 0 : i32
    %c0_i32_1 = arith.constant 0 : i32
    %c0_i32_2 = arith.constant 0 : i32
    return %arg0, %c0_i32, %c0_i32_0, %c0_i32_1 : i32, i32, i32, i32
  }
  func.func @transform_1(%arg0: i32) -> (i32, i32) {
    %c0_i32 = arith.constant 0 : i32
    %c0_i32_0 = arith.constant 0 : i32
    %c0_i32_1 = arith.constant 0 : i32
    return %c0_i32, %c0_i32_0 : i32, i32
  }
  func.func @transform_2(%arg0: i32) -> (i32, i32, i32, i32) {
    %c0_i32 = arith.constant 0 : i32
    %c0_i32_0 = arith.constant 0 : i32
    %c0_i32_1 = arith.constant 0 : i32
    %c0_i32_2 = arith.constant 0 : i32
    %c0_i32_3 = arith.constant 0 : i32
    return %c0_i32, %c0_i32_0, %c0_i32_1, %c0_i32_2 : i32, i32, i32, i32
  }
  func.func @transform_3(%arg0: i32) -> (i32, i32) {
    %c0_i32 = arith.constant 0 : i32
    %c0_i32_0 = arith.constant 0 : i32
    %c0_i32_1 = arith.constant 0 : i32
    return %c0_i32, %c0_i32_0 : i32, i32
  }
  func.func @transform_4(%arg0: i32) -> (i32, i32) {
    %c0_i32 = arith.constant 0 : i32
    %c0_i32_0 = arith.constant 0 : i32
    %c0_i32_1 = arith.constant 0 : i32
    return %c0_i32, %c0_i32_0 : i32, i32
  }
  func.func @transform_5(%arg0: i32) -> (i32, i32) {
    %c0_i32 = arith.constant 0 : i32
    %c0_i32_0 = arith.constant 0 : i32
    %c0_i32_1 = arith.constant 0 : i32
    return %c0_i32, %c0_i32_0 : i32, i32
  }
  func.func @transform_6(%arg0: i32) -> (i32, i32) {
    %c0_i32 = arith.constant 0 : i32
    %c0_i32_0 = arith.constant 0 : i32
    %c0_i32_1 = arith.constant 0 : i32
    return %c0_i32, %c0_i32_0 : i32, i32
  }
  func.func @transform_7(%arg0: i32) -> (i32, i32) {
    %c0_i32 = arith.constant 0 : i32
    %c0_i32_0 = arith.constant 0 : i32
    %c0_i32_1 = arith.constant 0 : i32
    return %c0_i32, %c0_i32_0 : i32, i32
  }
  func.func @transform_8(%arg0: i32) -> (i32, i32) {
    %c0_i32 = arith.constant 0 : i32
    %c0_i32_0 = arith.constant 0 : i32
    %c0_i32_1 = arith.constant 0 : i32
    return %c0_i32, %c0_i32_0 : i32, i32
  }
  func.func @transform_9(%arg0: i32) -> (i32, i32) {
    %c0_i32 = arith.constant 0 : i32
    %c0_i32_0 = arith.constant 0 : i32
    %c0_i32_1 = arith.constant 0 : i32
    return %c0_i32, %c0_i32_0 : i32, i32
  }
  func.func @transform_10(%arg0: i32) -> (i32, i32, i32, i32) {
    %c0_i32 = arith.constant 0 : i32
    %c0_i32_0 = arith.constant 0 : i32
    %c0_i32_1 = arith.constant 0 : i32
    %c0_i32_2 = arith.constant 0 : i32
    return %arg0, %c0_i32, %c0_i32_0, %c0_i32_1 : i32, i32, i32, i32
  }
}

</mosaic_0001>

<bundles_post_ra>
// kernel: tpu_custom_call.1
= control target key start
LH: loop header
LB: loop body
LE: loop exit
PB: predicated region body
PF: predicated region fallthrough
CT: control target
= control target key end

     0   :  { %s8683_s0 = inlined_call_operand.hbm [shape: f32[2,16,16,128], index: 0, kind: input, shape index: {}]   ;;  %s8684_s1 = inlined_call_operand.hbm [shape: bf16[128,128], index: 1, kind: input, shape index: {}]   ;;  %s8685_s2 = inlined_call_operand.hbm [shape: bf16[3,3,128,128], index: 2, kind: input, shape index: {}]   ;;  %s8686_s3 = inlined_call_operand.hbm [shape: bf16[128,128], index: 3, kind: input, shape index: {}]   ;;  %s8687_s4 = inlined_call_operand.vmem [shape: f32[1,128], index: 4, kind: input, shape index: {}]   ;;  %s8688_s5 = inlined_call_operand.vmem [shape: f32[1,128], index: 5, kind: input, shape index: {}]   ;;  %s8689_s6 = inlined_call_operand.vmem [shape: f32[1,128], index: 6, kind: input, shape index: {}]   ;;  %s8690_s7 = inlined_call_operand.vmem [shape: f32[1,128], index: 7, kind: input, shape index: {}]   ;;  %s8691_s8 = inlined_call_operand.vmem [shape: f32[1,128], index: 8, kind: input, shape index: {}]   ;;  %s8692_s9 = inlined_call_operand.vmem [shape: f32[1,128], index: 9, kind: input, shape index: {}]   ;;  %s8693_s10 = inlined_call_operand.hbm [shape: f32[2,16,16,128], index: 10, kind: output, shape index: {}]  }
   0x1   :  { %8710 = sst [smem:[#allocation35_spill]] %s8684_s1 }
   0x2   :  { %8711 = sst [smem:[#allocation36_spill]] %s8685_s2 }
   0x3   :  { %8712 = sst [smem:[#allocation37_spill]] %s8686_s3 }
   0x4   :  { %15 = vsyncpa [#allocation5], 0 }
   0x5   :  { %17 = vsyncpa [#allocation5 + $0x1], 0 }
   0x6   :  { %18 = vsyncpa [#allocation8], 0 }
   0x7   :  { %19 = vsyncpa [#allocation11], 0 }
   0x8   :  { %20 = vsyncpa [#allocation6], 0 }
   0x9   :  { %22 = vsyncpa [#allocation6 + $0x1], 0  ;;  %s7028_s13 = smov 0   ;;  %s7030_s14 = smov 0  }
   0xa   :  { %s7032_s15 = smov 0   ;;  %s7034_s16 = smov 0  }
   0xb LB: > { %s7049_s17 = sadd.s32 4294967295, %s6957_s16   ;;  %s5682_s18 = sadd.s32 4294967294, %s6957_s16   ;;  %s6957_s16 = sphi %s7034_s16, %s8796_s16   ;;  %s6953_s15 = sphi %s7032_s15, %s8795_s15   ;;  %s6949_s14 = sphi %s7030_s14, %s8794_s14   ;;  %s6945_s13 = sphi %s7028_s13, %s8793_s13  }
   0xc   : > { %p48_p0 = scmp.ne.s32.totalorder %s6949_s14, %s6945_s13  ;;  %p8694_p1 = scmp.eq.s32.totalorder %s7049_s17, 0 }
   0xd   : > { %p267_p3 = scmp.eq.s32.totalorder %s5682_s18, 1  ;;  %p5683_p5 = scmp.ge.s32.totalorder %s6957_s16, 1 }
   0xe   : > { %p7058_p4 = por %p8694_p1, %p48_p0  ;;  %p274_p7 = scmp.lt.s32.totalorder %s6957_s16, 3 }
   0xf   : > { %p7063_p6 = por %p267_p3, %p48_p0  ;;  %s6959_s22 = smov [#allocation7]  }
  0x10   : > { %s8713_s19 = scalar_select %p7058_p4, 1, 0 }
  0x11   : > { %s8714_s20 = scalar_select %p7063_p6, 1, 0 }
  0x12   : > { %p7068_p8 = pnand %p5683_p5, %p274_p7  ;;  %s286_s23 = sshll.u32 %s6959_s22, 4  ;;  %s287_s23 = int_to_ptr.vmem [resolvable:$true] %s286_s23 }
  0x13   : > { %s6960_s25 = smov [#allocation9]   ;;  %s6961_s27 = smov [#allocation10]  }
  0x14   : > { %s8715_s21 = scalar_select %p7068_p8, 1, 0 }
  0x15   : > { %p6622_p9 = pneg %p7068_p8  ;;  %s299_s26 = sshll.u32 %s6960_s25, 4  ;;  %s300_s26 = int_to_ptr.vmem [resolvable:$true] %s299_s26 }
  0x16   : > { %s312_s28 = sshll.u32 %s6961_s27, 4  ;;  %s6790_s29 = scalar_lea.vmem %s287_s23, 1024  ;;  %s313_s28 = int_to_ptr.vmem [resolvable:$true] %s312_s28 }
  0x17   : > { %p7077_p11 = pnand %p6622_p9, %p8694_p1  ;;  %p6791_p13 = scmp.ne.s32.totalorder %s287_s23, %s6790_s29 }
  0x18   : > { %p6798_p5 = scmp.lt.s32.totalorder %s287_s23, %s287_s23  ;;  %p6799_p7 = scmp.lt.s32.totalorder %s6790_s29, %s6790_s29 }
  0x19   : > { %p6781_p12 = pneg %p7077_p11 }
  0x1a   : > { %p6800_p9 = por %p6799_p7, %p6798_p5 }
  0x1b   : > { %p6793_p0 = pnand %p6791_p13, %p6781_p12 }
  0x1d   : > { %p6794_p3 = pneg %p6793_p0 }
  0x1f   : > { %p6801_p10 = pnand %p6800_p9, %p6794_p3 }
  0x21   : > { %6804 = shalt.err (!%p6801_p10)
}
  0x22   : > { %s6962_s30 = smov 64   ;;  %s6963_s11 = smov 4  }
  0x23   : > { %s8717_s1 = sld [smem:[#allocation35_spill]]  ;;  %s6816_s22 = scalar_lea.vmem %s300_s26, 9216 }
  0x24   : > { %p6817_p1 = scmp.ne.s32.totalorder %s300_s26, %s6816_s22  ;;  %p6824_p2 = scmp.lt.s32.totalorder %s300_s26, %s300_s26 }
  0x25   : > { %p6825_p6 = scmp.lt.s32.totalorder %s6816_s22, %s6816_s22 }
  0x26   : > { %p6819_p13 = pnand %p6817_p1, %p6781_p12 }
  0x27   : > { %p6826_p5 = por %p6825_p6, %p6824_p2 }
  0x28   : > { %p6820_p0 = pneg %p6819_p13 }
  0x29   : > { %6625 = dma.hbm_to_vmem [thread:$0]  (!%p7077_p11), %s8717_s1, 1024, %s287_s23, [#allocation8], %s6962_s30, %s6962_s30, %s6963_s11  }
  0x2a   : > { %p6827_p3 = pnand %p6826_p5, %p6820_p0 }
  0x2c   : > { %6830 = shalt.err (!%p6827_p3)
}
  0x2d   : > { %s8718_s2 = sld [smem:[#allocation36_spill]]  ;;  %s6842_s23 = scalar_lea.vmem %s313_s28, 1024 }
  0x2e   : > { %p6843_p10 = scmp.ne.s32.totalorder %s313_s28, %s6842_s23  ;;  %p6850_p9 = scmp.lt.s32.totalorder %s313_s28, %s313_s28 }
  0x2f   : > { %p6851_p13 = scmp.lt.s32.totalorder %s6842_s23, %s6842_s23 }
  0x30   : > { %p6845_p7 = pnand %p6843_p10, %p6781_p12 }
  0x31   : > { %p6852_p4 = por %p6851_p13, %p6850_p9 }
  0x32   : > { %p6846_p1 = pneg %p6845_p7 }
  0x33   : > { %6628 = dma.hbm_to_vmem [thread:$0]  (!%p7077_p11), %s8718_s2, 9216, %s300_s26, [#allocation8], %s6962_s30, %s6962_s30, %s6963_s11  }
  0x34   : > { %p6853_p2 = pnand %p6852_p4, %p6846_p1 }
  0x36   : > { %6856 = shalt.err (!%p6853_p2)
}
  0x37   : > { %s8719_s3 = sld [smem:[#allocation37_spill]]  ;;  %s7108_s26 = sadd.s32 1, %s6957_s16  }
  0x38   : > { %s32_s18 = ssub.s32 %s6957_s16, %s7108_s26  ;;  %s35_s24 = sadd.s32 1, %s6953_s15 }
  0x39   : > { %p33_p4 = scmp.eq.s32.totalorder %s32_s18, 0  ;;  %p42_p6 = scmp.ne.s32.totalorder %s6953_s15, %s6949_s14 }
  0x3a   : > { %p43_p12 = scmp.eq.s32.totalorder %s6957_s16, 0  ;;  %p6643_p0 = scmp.lt.s32.totalorder %s6957_s16, 2 }
  0x3b   : > { %s7118_s22 = scalar_select %p33_p4, %s6953_s15, %s35_s24  }
  0x3c   : > { %p44_p5 = por %p43_p12, %p42_p6  ;;  %p8721_p3 = scmp.eq.s32.totalorder %s7049_s17, 1 }
  0x3d   : > { %6631 = dma.hbm_to_vmem [thread:$0]  (!%p7077_p11), %s8719_s3, 1024, %s313_s28, [#allocation11], %s6962_s30, %s6962_s30, %s6963_s11  }
  0x3e   : > { %8720 = sst [smem:[#allocation17_spill]] %s7118_s22  ;;  %p7122_p10 = por %p8721_p3, %p42_p6 }
  0x3f   : > { %s344_s27 = sand.u32 1, %s6953_s15   ;;  %s5796_s23 = sshll.u32 %s6957_s16, 12 }
  0x40   : > { %s8722_s25 = scalar_select %p7122_p10, 1, 0 }
  0x41   : > { %s5688_s28 = sshll.u32 %s344_s27, 8  ;;  %s7131_s29 = scalar_lea.hbm %s8683_s0, %s5796_s23 }
  0x42   : > { %s348_s12 = scalar_lea.vmem [#allocation4], %s5688_s28  ;;  %p7133_p11 = pnand %p6643_p0, %p44_p5 }
  0x43   : > { %s355_s18 = sshll.u32 %s348_s12, 4  ;;  %s7139_s1 = scalar_lea.sflag [#allocation5], %s344_s27  ;;  %s7137_s18 = int_to_ptr.vmem [resolvable:$true] %s355_s18 }
  0x44   : > { %s6857_s2 = scalar_lea.hbm %s7131_s29, 4096  ;;  %p6859_p1 = pneg %p7133_p11 }
  0x45   : > { %p6858_p7 = scmp.ne.s32.totalorder %s7131_s29, %s6857_s2  ;;  %s6862_s28 = scalar_lea.hbm %s8683_s0, 8192 }
  0x46   : > { %p6863_p2 = scmp.lt.s32.totalorder %s7131_s29, %s8683_s0  ;;  %p6864_p4 = scmp.lt.s32.totalorder %s6862_s28, %s6857_s2 }
  0x47   : > { %p6860_p9 = pnand %p6859_p1, %p6858_p7 }
  0x48   : > { %p6865_p6 = por %p6864_p4, %p6863_p2 }
  0x49   : > { %p6861_p13 = pneg %p6860_p9 }
  0x4b   : > { %p6866_p12 = pnand %p6865_p6, %p6861_p13 }
  0x4d   : > { %6869 = shalt.err (!%p6866_p12)
}
  0x4e   : > { %s6870_s27 = scalar_lea.vmem %s7137_s18, 4096  ;;  %s6964_s3 = smov [#allocation4]  }
  0x4f   : > { %p6871_p0 = scmp.ne.s32.totalorder %s7137_s18, %s6870_s27  ;;  %s6875_s22 = sshll.u32 %s6964_s3, 4  ;;  %s6876_s22 = int_to_ptr.vmem [resolvable:$false] %s6875_s22 }
  0x50   : > { %s6877_s23 = scalar_lea.vmem %s6876_s22, 8192  ;;  %p6878_p7 = scmp.lt.s32.totalorder %s7137_s18, %s6876_s22 }
  0x51   : > { %p6873_p5 = pnand %p6871_p0, %p6859_p1  ;;  %p6879_p9 = scmp.lt.s32.totalorder %s6877_s23, %s6870_s27 }
  0x53   : > { %p6874_p3 = pneg %p6873_p5  ;;  %p6880_p10 = por %p6879_p9, %p6878_p7 }
  0x55   : > { %p6881_p8 = pnand %p6880_p10, %p6874_p3 }
  0x57   : > { %6884 = shalt.err (!%p6881_p8)
}
  0x58   : > { %s6965_s2 = smov 128   ;;  %s6966_s30 = smov 8  }
  0x59   : > { %6635 = dma.hbm_to_vmem [thread:$0]  (!%p7133_p11), %s7131_s29, 4096, %s7137_s18, %s7139_s1, %s6965_s2, %s6965_s2, %s6966_s30  }
  0x5a   : > { %p8724_p1 = scmp.ne.s32.totalorder %s8715_s21, 0 }
  0x5c   : > { %367 = sbr.rel (%p8724_p1) target bundleno = 1098 (0x44a), region = 60 }
  0x61   : > { %s7163_s3 = sand.u32 1, %s6949_s14   ;;  %p8725_p8 = scmp.ne.s32.totalorder %s8713_s19, 0 }
  0x62   : > { %s5692_s22 = sshll.u32 %s7163_s3, 8  ;;  %s370_s28 = scalar_lea.sflag [#allocation5], %s7163_s3 }
  0x63   : > { %s7169_s11 = scalar_lea.vmem [#allocation4], %s5692_s22 }
  0x64   : > { %6928 = dma.done.wait (%p8725_p8), %s370_s28, 4096  }
  0x65   : > { %6930 = vsyncadd (%p8725_p8), %s370_s28, 4294963200  ;;  %p8726_p10 = scmp.eq.s32.totalorder %s7049_s17, 0 }
  0x67   : > { %6932 = dma.done.wait (%p8726_p10), [#allocation8], 10240   ;;  %p8727_p11 = pmov %p8726_p10 }
  0x68   : > { %p8728_p13 = pmov %p8726_p10 }
  0x69   : > { %6934 = vsyncadd (%p8727_p11), [#allocation8], 4294957056 }
  0x6a   : > { %6936 = dma.done.wait (%p8728_p13), [#allocation11], 1024   ;;  %p8729_p2 = pmov %p8726_p10 }
  0x6b   : > { %v6690_v0 = vld [vmem:[#allocation7 + $0x38] sm:$0xff]   ;;  %v6691_v1 = vld [vmem:[#allocation7 + $0x30] sm:$0xff]   ;;  %v6692_v2 = vld [vmem:[#allocation7 + $0x28] sm:$0xff]   ;;  %vm1358_vm0 = vsmask.f32 7424  ;;  %vm1921_vm1 = vcmask 1046528  }
  0x6c   : > { %6938 = vsyncadd (%p8729_p2), [#allocation11], 4294966272  ;;  %6062 = vmatprep.subr.bf16.mxu0 %v6690_v0  ;;  %6590 = vmatprep.subr.bf16.mxu1 %v6690_v0  ;;  %v6693_v3 = vld [vmem:[#allocation7 + $0x20] sm:$0xff]   ;;  %v424_v5 = vld [vmem:[%s7169_s11 + $0x8] sm:$0xff]  ;;  %s8514_s1 = scalar_lea.vmem [#allocation12], %s5692_s22  ;;  %s5797_s22 = sshll.u32 %s7049_s17, 12 }
  0x6d   : > { %6063 = vmatpush3.bf16.msra.mxu0 %v6690_v0  ;;  %6598 = vmatpush3.bf16.msra.mxu1 %v6690_v0  ;;  %v423_v4 = vld [vmem:[%s7169_s11] sm:$0xff]  ;;  %v6694_v7 = vld [vmem:[#allocation7 + $0x18] sm:$0xff]   ;;  %v440_v9 = vld [vmem:[%s7169_s11 + $0x88] sm:$0xff]  ;;  %v6967_v0 = vmov 0.0   ;;  %s5580_s19 = sshll.u32 %s8514_s1, 4  ;;  %s8636_s18 = scalar_lea.hbm %s8693_s10, %s5797_s22  ;;  %s8638_s19 = int_to_ptr.vmem [resolvable:$true] %s5580_s19 }
  0x6e   : > { %6064 = vmatprep.subr.bf16.mxu0 %v6691_v1  ;;  %6591 = vmatprep.subr.bf16.mxu1 %v6691_v1  ;;  %v455_v6 = vpack.c.bf16 %v424_v5, %v423_v4  ;;  %v439_v8 = vld [vmem:[%s7169_s11 + $0x80] sm:$0xff]  ;;  %v6695_v11 = vld [vmem:[#allocation7 + $0x10] sm:$0xff]   ;;  %v6696_v12 = vld [vmem:[#allocation7 + $0x8] sm:$0xff]   ;;  %812 = vst [vmem:[#allocation2 + $0x30] sm:$0xff] %v6967_v0  ;;  %s6885_s24 = scalar_lea.vmem %s8638_s19, 4096  ;;  %p8789_p6 = scmp.ne.s32.totalorder %s8722_s25, 0 }
  0x6f   : > { %v463_v10 = vpack.c.bf16 %v440_v9, %v439_v8  ;;  %v6697_v13 = vld [vmem:[#allocation7] sm:$0xff]   ;;  %v425_v14 = vld [vmem:[%s7169_s11 + $0x10] sm:$0xff]  ;;  %v426_v15 = vld [vmem:[%s7169_s11 + $0x18] sm:$0xff]  ;;  %813 = vst [vmem:[#allocation2 + $0x38] sm:$0xff] %v6967_v0  ;;  %v6968_v9 = vmov 0.0|0.0   ;;  %p6886_p4 = scmp.ne.s32.totalorder %s8638_s19, %s6885_s24  ;;  %s6970_s17 = smov [#allocation12]  }
  0x70   : > { %6078 = vmatprep.mubr.bf16.mxu0 %v455_v6  ;;  %v427_v16 = vld [vmem:[%s7169_s11 + $0x20] sm:$0xff]  ;;  %v428_v17 = vld [vmem:[%s7169_s11 + $0x28] sm:$0xff]  ;;  %v441_v18 = vld [vmem:[%s7169_s11 + $0x90] sm:$0xff]  ;;  %v456_v24 = vpack.c.bf16 %v426_v15, %v425_v14  ;;  %806 = vst [vmem:[#allocation2] sm:$0xff] %v6967_v0  ;;  %s6889_s12 = sshll.u32 %s6970_s17, 4  ;;  %s6890_s12 = int_to_ptr.vmem [resolvable:$false] %s6889_s12 }
  0x71   : > { %6065 = vmatpush3.bf16.msra.mxu0 %v6691_v1  ;;  %6599 = vmatpush3.bf16.msra.mxu1 %v6691_v1  ;;  %v442_v19 = vld [vmem:[%s7169_s11 + $0x98] sm:$0xff]  ;;  %v443_v21 = vld [vmem:[%s7169_s11 + $0xa0] sm:$0xff]  ;;  %v444_v22 = vld [vmem:[%s7169_s11 + $0xa8] sm:$0xff]  ;;  %v457_v25 = vpack.c.bf16 %v428_v17, %v427_v16  ;;  %808 = vst [vmem:[#allocation2 + $0x10] sm:$0x3] %v6967_v0  ;;  %p6887_p12 = pnand %p6886_p4, %p8789_p6  ;;  %s6891_s27 = scalar_lea.vmem %s6890_s12, 8192 }
  0x72   : > { %6066 = vmatprep.subr.bf16.mxu0 %v6692_v2  ;;  %6592 = vmatprep.subr.bf16.mxu1 %v6692_v2  ;;  %v6701_v20 = vld [vmem:[#allocation9 + $0x78] sm:$0xff]   ;;  %v464_v26 = vpack.c.bf16 %v442_v19, %v441_v18  ;;  %v6699_v27 = vld [vmem:[#allocation9 + $0x30] sm:$0xff]   ;;  %v465_v28 = vpack.c.bf16 %v444_v22, %v443_v21  ;;  %v431_v31 = vld [vmem:[%s7169_s11 + $0x40] sm:$0xff]  ;;  %809 = vst [vmem:[#allocation2 + $0x18] sm:$0xff] %v6967_v0  ;;  %p6892_p5 = scmp.lt.s32.totalorder %s8638_s19, %s6890_s12  ;;  %p6893_p3 = scmp.lt.s32.totalorder %s6891_s27, %s6885_s24 }
  0x73   : > { %6094 = vmatprep.mubr.bf16.mxu1 %v463_v10  ;;  %v6698_v23 = vld [vmem:[#allocation9 + $0x38] sm:$0xff]   ;;  %v429_v29 = vld [vmem:[%s7169_s11 + $0x30] sm:$0xff]  ;;  %v432_v32 = vld [vmem:[%s7169_s11 + $0x48] sm:$0xff]  ;;  %810 = vst [vmem:[#allocation2 + $0x20] sm:$0xff] %v6967_v0  ;;  %p6888_p0 = pneg %p6887_p12 }
  0x74   : > { %v430_v30 = vld [vmem:[%s7169_s11 + $0x38] sm:$0xff]  ;;  %v445_v33 = vld [vmem:[%s7169_s11 + $0xb0] sm:$0xff]  ;;  %v447_v35 = vld [vmem:[%s7169_s11 + $0xc0] sm:$0xff]  ;;  %v459_v39 = vpack.c.bf16 %v432_v32, %v431_v31  ;;  %811 = vst [vmem:[#allocation2 + $0x28] sm:$0x3] %v6967_v0  ;;  %p6894_p7 = por %p6893_p3, %p6892_p5 }
  0x75   : > { %6067 = vmatpush3.bf16.msra.mxu0 %v6692_v2  ;;  %6600 = vmatpush3.bf16.msra.mxu1 %v6692_v2  ;;  %v446_v34 = vld [vmem:[%s7169_s11 + $0xb8] sm:$0xff]  ;;  %v448_v36 = vld [vmem:[%s7169_s11 + $0xc8] sm:$0xff]  ;;  %v458_v38 = vpack.c.bf16 %v430_v30, %v429_v29  ;;  %v433_v42 = vld [vmem:[%s7169_s11 + $0x50] sm:$0xff]  ;;  %814 = vst [vmem:[#allocation2 + $0x40] sm:$0x3] %v6967_v0 }
  0x76   : > { %6068 = vmatprep.subr.bf16.mxu0 %v6693_v3  ;;  %6593 = vmatprep.subr.bf16.mxu1 %v6693_v3  ;;  %v6700_v37 = vld [vmem:[#allocation9 + $0x28] sm:$0xff]   ;;  %v466_v40 = vpack.c.bf16 %v446_v34, %v445_v33  ;;  %v467_v41 = vpack.c.bf16 %v448_v36, %v447_v35  ;;  %v434_v43 = vld [vmem:[%s7169_s11 + $0x58] sm:$0xff]  ;;  %v435_v44 = vld [vmem:[%s7169_s11 + $0x60] sm:$0xff]  ;;  %815 = vst [vmem:[#allocation2 + $0x48] sm:$0xff] %v6967_v0  ;;  %p6895_p9 = pnand %p6894_p7, %p6888_p0 }
  0x77   : > { %v436_v45 = vld [vmem:[%s7169_s11 + $0x68] sm:$0xff]  ;;  %v449_v46 = vld [vmem:[%s7169_s11 + $0xd0] sm:$0xff]  ;;  %v450_v47 = vld [vmem:[%s7169_s11 + $0xd8] sm:$0xff]  ;;  %v460_v50 = vpack.c.bf16 %v434_v43, %v433_v42  ;;  %816 = vst [vmem:[#allocation2 + $0x50] sm:$0xff] %v6967_v0 }
  0x78   : > { %v451_v48 = vld [vmem:[%s7169_s11 + $0xe0] sm:$0xff]  ;;  %v452_v49 = vld [vmem:[%s7169_s11 + $0xe8] sm:$0xff]  ;;  %v461_v51 = vpack.c.bf16 %v436_v45, %v435_v44  ;;  %v468_v52 = vpack.c.bf16 %v450_v47, %v449_v46  ;;  %v437_v54 = vld [vmem:[%s7169_s11 + $0x70] sm:$0xff]  ;;  %817 = vst [vmem:[#allocation2 + $0x58] sm:$0x3] %v6967_v0 }
  0x79   : > { %6069 = vmatpush3.bf16.msra.mxu0 %v6693_v3  ;;  %6601 = vmatpush3.bf16.msra.mxu1 %v6693_v3  ;;  %v469_v53 = vpack.c.bf16 %v452_v49, %v451_v48  ;;  %v438_v55 = vld [vmem:[%s7169_s11 + $0x78] sm:$0xff]  ;;  %v453_v56 = vld [vmem:[%s7169_s11 + $0xf0] sm:$0xff]  ;;  %v6702_v61 = vld [vmem:[#allocation9 + $0x20] sm:$0xff]   ;;  %818 = vst [vmem:[#allocation2 + $0x60] sm:$0xff] %v6967_v0 }
  0x7a   : > { %6070 = vmatprep.subr.bf16.mxu0 %v6694_v7  ;;  %6594 = vmatprep.subr.bf16.mxu1 %v6694_v7  ;;  %v454_v57 = vld [vmem:[%s7169_s11 + $0xf8] sm:$0xff]  ;;  %v462_v58 = vpack.c.bf16 %v438_v55, %v437_v54  ;;  %v6703_v60 = vld [vmem:[#allocation9 + $0x70] sm:$0xff]   ;;  %v6705_v62 = vld [vmem:[#allocation9 + $0x68] sm:$0xff]   ;;  %819 = vst [vmem:[#allocation2 + $0x68] sm:$0xff] %v6967_v0 }
  0x7b   : > { %v470_v59 = vpack.c.bf16 %v454_v57, %v453_v56  ;;  %v6704_v63 = vld [vmem:[#allocation9 + $0x18] sm:$0xff]   ;;  %820 = vst [vmem:[#allocation2 + $0x70] sm:$0x3] %v6967_v0  ;;  %821 = vst [vmem:[#allocation2 + $0x78] sm:$0xff] %v6967_v0  ;;  %v6707_v1 = vld [vmem:[#allocation9 + $0x60] sm:$0xff]  }
  0x7c   : > { %822 = vst [vmem:[#allocation2 + $0x80] sm:$0xff] %v6967_v0  ;;  %823 = vst [vmem:[#allocation2 + $0x88] sm:$0x3] %v6967_v0  ;;  %v6706_v2 = vld [vmem:[#allocation9 + $0x10] sm:$0xff]   ;;  %v6709_v3 = vld [vmem:[#allocation9 + $0x58] sm:$0xff]  }
  0x7d   : > { %6071 = vmatpush3.bf16.msra.mxu0 %v6694_v7  ;;  %6602 = vmatpush3.bf16.msra.mxu1 %v6694_v7  ;;  %824 = vst [vmem:[#allocation2 + $0x90] sm:$0xff] %v6967_v0  ;;  %825 = vst [vmem:[#allocation2 + $0x98] sm:$0xff] %v6967_v0  ;;  %v6708_v4 = vld [vmem:[#allocation9 + $0x8] sm:$0xff]   ;;  %v6711_v5 = vld [vmem:[#allocation9 + $0x50] sm:$0xff]  }
  0x7e   : > { %6072 = vmatprep.subr.bf16.mxu0 %v6695_v11  ;;  %6595 = vmatprep.subr.bf16.mxu1 %v6695_v11  ;;  %826 = vst [vmem:[#allocation2 + $0xa0] sm:$0x3] %v6967_v0  ;;  %827 = vst [vmem:[#allocation2 + $0xa8] sm:$0xff] %v6967_v0  ;;  %v6710_v6 = vld [vmem:[#allocation9] sm:$0xff]   ;;  %v6712_v7 = vld [vmem:[#allocation9 + $0x48] sm:$0xff]  }
  0x7f   : > { %828 = vst [vmem:[#allocation2 + $0xb0] sm:$0xff] %v6967_v0  ;;  %829 = vst [vmem:[#allocation2 + $0xb8] sm:$0x3] %v6967_v0  ;;  %v927_v8 = vld [vmem:[#allocation2 + $0x10] sm:$0x3]  ;;  %v7220_v17 = vld [vmem:[#allocation9 + $0xb8] sm:$0xff]  }
  0x80   : > { %830 = vst [vmem:[#allocation2 + $0xc0] sm:$0xff] %v6967_v0  ;;  %831 = vst [vmem:[#allocation2 + $0xc8] sm:$0xff] %v6967_v0  ;;  %v7216_v10 = vpack.c.bf16 %v927_v8, %v927_v8  ;;  %v7223_v18 = vld [vmem:[#allocation9 + $0xf8] sm:$0xff]   ;;  %v7229_v19 = vld [vmem:[%s8687_s4] ss:$0 sm:$0xff] }
  0x81   : > { %6073 = vmatpush3.bf16.msra.mxu0 %v6695_v11  ;;  %6603 = vmatpush3.bf16.msra.mxu1 %v6695_v11  ;;  %832 = vst [vmem:[#allocation2 + $0xd0] sm:$0x3] %v6967_v0  ;;  %833 = vst [vmem:[#allocation2 + $0xd8] sm:$0xff] %v6967_v0  ;;  %v6714_v11 = vld [vmem:[#allocation9 + $0x40] sm:$0xff]   ;;  %v7234_v21 = vld [vmem:[%s8688_s5] ss:$0 sm:$0xff] }
  0x82   : > { %6074 = vmatprep.subr.bf16.mxu0 %v6696_v12  ;;  %6596 = vmatprep.subr.bf16.mxu1 %v6696_v12  ;;  %834 = vst [vmem:[#allocation2 + $0xe0] sm:$0xff] %v6967_v0  ;;  %835 = vst [vmem:[#allocation2 + $0xe8] sm:$0x3] %v6967_v0  ;;  %v1367_v14 = vshll.u32 %v7216_v10, 16 }
  0x83   : > { %836 = vst [vmem:[#allocation2 + $0xf0] sm:$0xff] %v6967_v0  ;;  %837 = vst [vmem:[#allocation2 + $0xf8] sm:$0xff] %v6967_v0 }
  0x84   : > { %838 = vst [vmem:[#allocation2 + $0x100] sm:$0x3] %v6967_v0  ;;  %839 = vst [vmem:[#allocation2 + $0x108] sm:$0xff] %v6967_v0  ;;  %v1369_v15 = vrot.slane %v1367_v14, 1 }
  0x85   : > { %6075 = vmatpush3.bf16.msra.mxu0 %v6696_v12  ;;  %6604 = vmatpush3.bf16.msra.mxu1 %v6696_v12  ;;  %840 = vst [vmem:[#allocation2 + $0x110] sm:$0xff] %v6967_v0  ;;  %841 = vst [vmem:[#allocation2 + $0x118] sm:$0x3] %v6967_v0  ;;  %v6969_v12 = vmov 0  }
  0x86   : > { %6076 = vmatprep.subr.bf16.mxu0 %v6697_v13  ;;  %6597 = vmatprep.subr.bf16.mxu1 %v6697_v13  ;;  %842 = vst [vmem:[#allocation2 + $0x120] sm:$0xff] %v6967_v0  ;;  %843 = vst [vmem:[#allocation2 + $0x128] sm:$0xff] %v6967_v0 }
  0x87   : > { %844 = vst [vmem:[#allocation2 + $0x130] sm:$0x3] %v6967_v0  ;;  %845 = vst [vmem:[#allocation2 + $0x138] sm:$0xff] %v6967_v0 }
  0x88   : > { %846 = vst [vmem:[#allocation2 + $0x140] sm:$0xff] %v6967_v0  ;;  %847 = vst [vmem:[#allocation2 + $0x148] sm:$0x3] %v6967_v0 }
  0x89   : > { %6077 = vmatpush3.bf16.msra.mxu0 %v6697_v13  ;;  %6605 = vmatpush3.bf16.msra.mxu1 %v6697_v13  ;;  %848 = vst [vmem:[#allocation2 + $0x150] sm:$0xff] %v6967_v0  ;;  %849 = vst [vmem:[#allocation2 + $0x158] sm:$0xff] %v6967_v0  ;;  %v1364_v13 = vrot.slane %v6969_v12, 1 }
  0x8a   : > { %6158 = vmatprep.subr.bf16.mxu0 %v6701_v20  ;;  %6110 = vmatprep.subr.bf16.mxu1 %v6698_v23  ;;  %850 = vst [vmem:[#allocation2 + $0x160] sm:$0x3] %v6967_v0  ;;  %851 = vst [vmem:[#allocation2 + $0x168] sm:$0xff] %v6967_v0 }
  0x8b   : > { %852 = vst [vmem:[#allocation2 + $0x170] sm:$0xff] %v6967_v0  ;;  %853 = vst [vmem:[#allocation2 + $0x178] sm:$0x3] %v6967_v0  ;;  %v1370_v16 = vsel %vm1358_vm0, %v1364_v13, %v1369_v15 }
  0x8c   : > { %6079 = vmatmul.mubr.bf16.vlgmr.msra.gmra.mxu0 %v456_v24  ;;  %6095 = vmatmul.mubr.bf16.vlgmr.msra.gmra.mxu1 %v464_v26  ;;  %854 = vst [vmem:[#allocation2 + $0x180] sm:$0xff] %v6967_v0  ;;  %855 = vst [vmem:[#allocation2 + $0x188] sm:$0xff] %v6967_v0 }
  0x8d   : > { %6082 = vmatprep.mubr.bf16.mxu0 %v457_v25  ;;  %6098 = vmatprep.mubr.bf16.mxu1 %v465_v28  ;;  %856 = vst [vmem:[#allocation2 + $0x190] sm:$0x3] %v6967_v0  ;;  %859 = vst [vmem:[#allocation2 + $0x1a8] sm:$0x3] %v6967_v0 }
  0x8e   : > { %6111 = vmatpush3.bf16.msra.mxu1 %v6698_v23  ;;  %6159 = vmatpush3.bf16.msra.mxu0 %v6701_v20 }
  0x8f   : > { %6112 = vmatprep.subr.bf16.mxu1 %v6699_v27  ;;  %6160 = vmatprep.subr.bf16.mxu0 %v6703_v60 }
  0x92   : > { %6113 = vmatpush3.bf16.msra.mxu1 %v6699_v27  ;;  %6161 = vmatpush3.bf16.msra.mxu0 %v6703_v60 }
  0x93   : > { %6114 = vmatprep.subr.bf16.mxu1 %v6700_v37  ;;  %6162 = vmatprep.subr.bf16.mxu0 %v6705_v62 }
  0x94   : > { %6083 = vmatmul.mubr.bf16.gmra.mxu0 %v458_v38  ;;  %6099 = vmatmul.mubr.bf16.gmra.mxu1 %v466_v40 }
  0x95   : > { %6086 = vmatprep.mubr.bf16.mxu0 %v459_v39  ;;  %6102 = vmatprep.mubr.bf16.mxu1 %v467_v41 }
  0x96   : > { %6115 = vmatpush3.bf16.msra.mxu1 %v6700_v37  ;;  %6163 = vmatpush3.bf16.msra.mxu0 %v6705_v62 }
  0x97   : > { %6116 = vmatprep.subr.bf16.mxu1 %v6702_v61  ;;  %6164 = vmatprep.subr.bf16.mxu0 %v6707_v1 }
  0x9a   : > { %6117 = vmatpush3.bf16.msra.mxu1 %v6702_v61  ;;  %6165 = vmatpush3.bf16.msra.mxu0 %v6707_v1 }
  0x9b   : > { %6118 = vmatprep.subr.bf16.mxu1 %v6704_v63  ;;  %6166 = vmatprep.subr.bf16.mxu0 %v6709_v3 }
  0x9c   : > { %6087 = vmatmul.mubr.bf16.gmra.mxu0 %v460_v50  ;;  %6103 = vmatmul.mubr.bf16.gmra.mxu1 %v468_v52 }
  0x9d   : > { %6090 = vmatprep.mubr.bf16.mxu0 %v461_v51  ;;  %6106 = vmatprep.mubr.bf16.mxu1 %v469_v53 }
  0x9e   : > { %6119 = vmatpush3.bf16.msra.mxu1 %v6704_v63  ;;  %6167 = vmatpush3.bf16.msra.mxu0 %v6709_v3 }
  0x9f   : > { %6120 = vmatprep.subr.bf16.mxu1 %v6706_v2  ;;  %6168 = vmatprep.subr.bf16.mxu0 %v6711_v5 }
  0xa2   : > { %6121 = vmatpush3.bf16.msra.mxu1 %v6706_v2  ;;  %6169 = vmatpush3.bf16.msra.mxu0 %v6711_v5 }
  0xa3   : > { %6122 = vmatprep.subr.bf16.mxu1 %v6708_v4  ;;  %6170 = vmatprep.subr.bf16.mxu0 %v6712_v7 }
  0xa4   : > { %6091 = vmatmul.mubr.bf16.gmra.mxu0 %v462_v58  ;;  %6107 = vmatmul.mubr.bf16.gmra.mxu1 %v470_v59 }
  0xa5   : > { %6126 = vmatprep.mubr.bf16.mxu1 %v6968_v9  ;;  %6174 = vmatprep.mubr.bf16.mxu0 %v1370_v16 }
  0xa6   : > { %6123 = vmatpush3.bf16.msra.mxu1 %v6708_v4  ;;  %6171 = vmatpush3.bf16.msra.mxu0 %v6712_v7 }
  0xa7   : > { %6124 = vmatprep.subr.bf16.mxu1 %v6710_v6  ;;  %6172 = vmatprep.subr.bf16.mxu0 %v6714_v11 }
  0xaa   : > { %6125 = vmatpush3.bf16.msra.mxu1 %v6710_v6  ;;  %6173 = vmatpush3.bf16.msra.mxu0 %v6714_v11 }
  0xab   : > { %6206 = vmatprep.subr.bf16.mxu1 %v7220_v17  ;;  %6254 = vmatprep.subr.bf16.mxu0 %v7223_v18 }
 0x14c   : > { %v6080_v20 = vpop.f32.mrf.mxu0  ;;  %v6096_v23 = vpop.f32.mrf.mxu1 }
 0x14d   : > { %v705_v22 = vmul.f32 %v6080_v20, %v7229_v19  ;;  %v721_v25 = vmul.f32 %v6096_v23, %v7229_v19 }
 0x14e   : > { %v569_v24 = vpop.f32.mrf.mxu0  ;;  %v633_v28 = vpop.f32.mrf.mxu1 }
 0x14f   : > { %v744_v26 = vadd.f32 %v7234_v21, %v705_v22  ;;  %v703_v27 = vmul.f32 %v7229_v19, %v569_v24  ;;  %v760_v30 = vadd.f32 %v7234_v21, %v721_v25  ;;  %v719_v31 = vmul.f32 %v7229_v19, %v633_v28 }
 0x150   : > { %v6081_v29 = vpop.f32.mrf.mxu0  ;;  %v6097_v35 = vpop.f32.mrf.mxu1 }
 0x151   : > { %v776_v32 = vmax.f32 %v744_v26, 0.0  ;;  %v742_v33 = vadd.f32 %v7234_v21, %v703_v27  ;;  %v706_v34 = vmul.f32 %v6081_v29, %v7229_v19  ;;  %v792_v37 = vmax.f32 %v760_v30, 0.0 }
 0x152   : > { %v572_v36 = vpop.f32.mrf.mxu0  ;;  %v758_v38 = vadd.f32 %v7234_v21, %v719_v31  ;;  %v722_v39 = vmul.f32 %v6097_v35, %v7229_v19  ;;  %v636_v43 = vpop.f32.mrf.mxu1 }
 0x153   : > { %863 = vst [vmem:[#allocation2 + $0x31] sm:$0xff] %v776_v32  ;;  %v774_v40 = vmax.f32 %v742_v33, 0.0  ;;  %v745_v41 = vadd.f32 %v7234_v21, %v706_v34  ;;  %v704_v42 = vmul.f32 %v7229_v19, %v572_v36  ;;  %879 = vst [vmem:[#allocation2 + $0xf1] sm:$0xff] %v792_v37  ;;  %v720_v47 = vmul.f32 %v7229_v19, %v636_v43 }
 0x154   : > { %v6084_v44 = vpop.f32.mrf.mxu0  ;;  %v790_v45 = vmax.f32 %v758_v38, 0.0  ;;  %v761_v46 = vadd.f32 %v7234_v21, %v722_v39  ;;  %v6100_v51 = vpop.f32.mrf.mxu1 }
 0x155   : > { %861 = vst [vmem:[#allocation2 + $0x19] sm:$0xff] %v774_v40  ;;  %v777_v48 = vmax.f32 %v745_v41, 0.0  ;;  %v743_v49 = vadd.f32 %v7234_v21, %v704_v42  ;;  %v709_v50 = vmul.f32 %v6084_v44, %v7229_v19  ;;  %v759_v54 = vadd.f32 %v7234_v21, %v720_v47 }
 0x156   : > { %v585_v52 = vpop.f32.mrf.mxu0  ;;  %877 = vst [vmem:[#allocation2 + $0xd9] sm:$0xff] %v790_v45  ;;  %v793_v53 = vmax.f32 %v761_v46, 0.0  ;;  %v725_v55 = vmul.f32 %v6100_v51, %v7229_v19  ;;  %v649_v59 = vpop.f32.mrf.mxu1 }
 0x157   : > { %864 = vst [vmem:[#allocation2 + $0x39] sm:$0xff] %v777_v48  ;;  %v775_v56 = vmax.f32 %v743_v49, 0.0  ;;  %v748_v57 = vadd.f32 %v7234_v21, %v709_v50  ;;  %v707_v58 = vmul.f32 %v7229_v19, %v585_v52  ;;  %v791_v61 = vmax.f32 %v759_v54, 0.0  ;;  %v6715_v49 = vld [vmem:[#allocation9 + $0xb0] sm:$0xff]  }
 0x158   : > { %v6085_v60 = vpop.f32.mrf.mxu0  ;;  %880 = vst [vmem:[#allocation2 + $0xf9] sm:$0xff] %v793_v53  ;;  %v764_v62 = vadd.f32 %v7234_v21, %v725_v55  ;;  %v723_v63 = vmul.f32 %v7229_v19, %v649_v59  ;;  %v6101_v3 = vpop.f32.mrf.mxu1 }
 0x159   : > { %862 = vst [vmem:[#allocation2 + $0x21] sm:$0xff] %v775_v56  ;;  %v780_v0 = vmax.f32 %v748_v57, 0.0  ;;  %v746_v1 = vadd.f32 %v7234_v21, %v707_v58  ;;  %v710_v2 = vmul.f32 %v6085_v60, %v7229_v19  ;;  %878 = vst [vmem:[#allocation2 + $0xe1] sm:$0xff] %v791_v61  ;;  %v726_v7 = vmul.f32 %v6101_v3, %v7229_v19 }
 0x15a   : > { %v588_v4 = vpop.f32.mrf.mxu0  ;;  %v796_v5 = vmax.f32 %v764_v62, 0.0  ;;  %v762_v6 = vadd.f32 %v7234_v21, %v723_v63  ;;  %v652_v13 = vpop.f32.mrf.mxu1  ;;  %v931_v27 = vld [vmem:[#allocation2 + $0x30] sm:$0xff] }
 0x15b   : > { %867 = vst [vmem:[#allocation2 + $0x61] sm:$0xff] %v780_v0  ;;  %v778_v8 = vmax.f32 %v746_v1, 0.0  ;;  %v749_v11 = vadd.f32 %v7234_v21, %v710_v2  ;;  %v708_v12 = vmul.f32 %v7229_v19, %v588_v4  ;;  %v765_v16 = vadd.f32 %v7234_v21, %v726_v7 }
 0x15c   : > { %v6088_v14 = vpop.f32.mrf.mxu0  ;;  %883 = vst [vmem:[#allocation2 + $0x121] sm:$0xff] %v796_v5  ;;  %v794_v15 = vmax.f32 %v762_v6, 0.0  ;;  %v724_v20 = vmul.f32 %v7229_v19, %v652_v13  ;;  %v6104_v25 = vpop.f32.mrf.mxu1  ;;  %v928_v39 = vld [vmem:[#allocation2 + $0x18] sm:$0xff] }
 0x15d   : > { %865 = vst [vmem:[#allocation2 + $0x49] sm:$0xff] %v778_v8  ;;  %v781_v22 = vmax.f32 %v749_v11, 0.0  ;;  %v747_v23 = vadd.f32 %v7234_v21, %v708_v12  ;;  %v713_v24 = vmul.f32 %v6088_v14, %v7229_v19  ;;  %v797_v30 = vmax.f32 %v765_v16, 0.0  ;;  %v6716_v5 = vld [vmem:[#allocation9 + $0xa8] sm:$0xff]  }
 0x15e   : > { %v601_v26 = vpop.f32.mrf.mxu0  ;;  %v932_v28 = vld [vmem:[#allocation2 + $0x38] sm:$0xff]  ;;  %v933_v29 = vld [vmem:[#allocation2 + $0x40] sm:$0x3]  ;;  %881 = vst [vmem:[#allocation2 + $0x109] sm:$0xff] %v794_v15  ;;  %v763_v31 = vadd.f32 %v7234_v21, %v724_v20  ;;  %v729_v32 = vmul.f32 %v6104_v25, %v7229_v19  ;;  %v665_v37 = vpop.f32.mrf.mxu1 }
 0x15f   : > { %868 = vst [vmem:[#allocation2 + $0x69] sm:$0xff] %v781_v22  ;;  %v779_v33 = vmax.f32 %v747_v23, 0.0  ;;  %v752_v34 = vadd.f32 %v7234_v21, %v713_v24  ;;  %v711_v35 = vmul.f32 %v7229_v19, %v601_v26  ;;  %v7272_v36 = vpack.c.bf16 %v932_v28, %v931_v27  ;;  %884 = vst [vmem:[#allocation2 + $0x129] sm:$0xff] %v797_v30 }
 0x160   : > { %v6089_v38 = vpop.f32.mrf.mxu0  ;;  %v929_v40 = vld [vmem:[#allocation2 + $0x20] sm:$0xff]  ;;  %v930_v41 = vld [vmem:[#allocation2 + $0x28] sm:$0x3]  ;;  %v7274_v42 = vpack.c.bf16 %v933_v29, %v933_v29  ;;  %v795_v43 = vmax.f32 %v763_v31, 0.0  ;;  %v768_v44 = vadd.f32 %v7234_v21, %v729_v32  ;;  %v7281_v50 = vpop.f32.mrf.mxu1  ;;  %v727_v55 = vmul.f32 %v7229_v19, %v665_v37 }
 0x161   : > { %866 = vst [vmem:[#allocation2 + $0x51] sm:$0xff] %v779_v33  ;;  %v784_v45 = vmax.f32 %v752_v34, 0.0  ;;  %v750_v46 = vadd.f32 %v7234_v21, %v711_v35  ;;  %v714_v47 = vmul.f32 %v6089_v38, %v7229_v19  ;;  %v7279_v48 = vpack.c.bf16 %v929_v40, %v928_v39 }
 0x162   : > { %v604_v51 = vpop.f32.mrf.mxu0  ;;  %v7283_v52 = vpack.c.bf16 %v930_v41, %v930_v41  ;;  %v1386_v53 = vshll.u32 %v7272_v36, 16  ;;  %v1391_v54 = vshll.u32 %v7274_v42, 16  ;;  %882 = vst [vmem:[#allocation2 + $0x111] sm:$0xff] %v795_v43  ;;  %v1384_v59 = vshrl.u32 %v7272_v36, 16  ;;  %v7292_v60 = vpop.f32.mrf.mxu1  ;;  %v937_v12 = vld [vmem:[#allocation2 + $0x60] sm:$0xff] }
 0x163   : > { %871 = vst [vmem:[#allocation2 + $0x91] sm:$0xff] %v784_v45  ;;  %v782_v56 = vmax.f32 %v750_v46, 0.0  ;;  %v753_v57 = vadd.f32 %v7234_v21, %v714_v47  ;;  %v712_v58 = vmul.f32 %v7229_v19, %v604_v51  ;;  %6127 = vmatmul.mubr.bf16.vlgmr.msra.gmra.mxu1 %v7279_v48  ;;  %v1372_v62 = vshrl.u32 %v7279_v48, 16  ;;  %v6721_v46 = vld [vmem:[#allocation9 + $0xf0] sm:$0xff]  }
 0x164   : > { %6207 = vmatpush3.bf16.msra.mxu1 %v7220_v17  ;;  %v6092_v61 = vpop.f32.mrf.mxu0  ;;  %6130 = vmatprep.mubr.bf16.mxu1 %v7272_v36  ;;  %v1374_v63 = vshll.u32 %v7279_v48, 16  ;;  %v1379_v0 = vshll.u32 %v7283_v52, 16  ;;  %v1388_v1 = vrot.slane %v1386_v53, 1  ;;  %v800_v6 = vmax.f32 %v768_v44, 0.0  ;;  %v7304_v16 = vpop.f32.mrf.mxu1  ;;  %v934_v28 = vld [vmem:[#allocation2 + $0x48] sm:$0xff]  ;;  %v6717_v44 = vld [vmem:[#allocation9 + $0xa0] sm:$0xff]  }
 0x165   : > { %869 = vst [vmem:[#allocation2 + $0x79] sm:$0xff] %v782_v56  ;;  %v785_v2 = vmax.f32 %v753_v57, 0.0  ;;  %v751_v3 = vadd.f32 %v7234_v21, %v712_v58  ;;  %v717_v4 = vmul.f32 %v6092_v61, %v7229_v19  ;;  %6208 = vmatprep.subr.bf16.mxu1 %v6715_v49  ;;  %v1393_v11 = vrot.slane %v1391_v54, 1 }
 0x166   : > { %v617_v17 = vpop.f32.mrf.mxu0  ;;  %v1376_v7 = vrot.slane %v1374_v63, 1  ;;  %v7301_v8 = vor.u32 %v1388_v1, %v1384_v59  ;;  %v938_v13 = vld [vmem:[#allocation2 + $0x68] sm:$0xff]  ;;  %v939_v14 = vld [vmem:[#allocation2 + $0x70] sm:$0x3]  ;;  %v766_v15 = vadd.f32 %v7234_v21, %v727_v55  ;;  %887 = vst [vmem:[#allocation2 + $0x151] sm:$0xff] %v800_v6  ;;  %v1381_v27 = vrot.slane %v1379_v0, 1  ;;  %v7325_v45 = vpop.f32.mrf.mxu1 }
 0x167   : > { %872 = vst [vmem:[#allocation2 + $0x99] sm:$0xff] %v785_v2  ;;  %v783_v20 = vmax.f32 %v751_v3, 0.0  ;;  %v756_v22 = vadd.f32 %v7234_v21, %v717_v4  ;;  %v715_v23 = vmul.f32 %v7229_v19, %v617_v17  ;;  %v7308_v24 = vpack.c.bf16 %v938_v13, %v937_v12  ;;  %v6718_v0 = vld [vmem:[#allocation9 + $0x98] sm:$0xff]   ;;  %v6723_v1 = vld [vmem:[#allocation9 + $0xe8] sm:$0xff]  }
 0x168   : > { %v6093_v25 = vpop.f32.mrf.mxu0  ;;  %v7310_v26 = vor.u32 %v1376_v7, %v1372_v62  ;;  %v935_v29 = vld [vmem:[#allocation2 + $0x50] sm:$0xff]  ;;  %6209 = vmatpush3.bf16.msra.mxu1 %v6715_v49  ;;  %v936_v30 = vld [vmem:[#allocation2 + $0x58] sm:$0x3]  ;;  %v7312_v31 = vpack.c.bf16 %v939_v14, %v939_v14  ;;  %v798_v32 = vmax.f32 %v766_v15, 0.0  ;;  %v1394_v40 = vsel %vm1358_vm0, %v7301_v8, %v1393_v11  ;;  %v6109_v7 = vpop.f32.mrf.mxu1 }
 0x169   : > { %870 = vst [vmem:[#allocation2 + $0x81] sm:$0xff] %v783_v20  ;;  %v788_v33 = vmax.f32 %v756_v22, 0.0  ;;  %v754_v34 = vadd.f32 %v7234_v21, %v715_v23  ;;  %v718_v35 = vmul.f32 %v6093_v25, %v7229_v19  ;;  %v7316_v37 = vpack.c.bf16 %v935_v29, %v934_v28  ;;  %6210 = vmatprep.subr.bf16.mxu1 %v6716_v5 }
 0x16a   : > { %v620_v38 = vpop.f32.mrf.mxu0  ;;  %v1382_v39 = vsel %vm1358_vm0, %v7310_v26, %v1381_v27  ;;  %v7322_v41 = vpack.c.bf16 %v936_v30, %v936_v30  ;;  %v1410_v43 = vshll.u32 %v7308_v24, 16  ;;  %885 = vst [vmem:[#allocation2 + $0x139] sm:$0xff] %v798_v32  ;;  %v1408_v53 = vshrl.u32 %v7308_v24, 16  ;;  %v943_v61 = vld [vmem:[#allocation2 + $0x90] sm:$0xff] }
 0x16b   : > { %875 = vst [vmem:[#allocation2 + $0xc1] sm:$0xff] %v788_v33  ;;  %v786_v47 = vmax.f32 %v754_v34, 0.0  ;;  %v757_v49 = vadd.f32 %v7234_v21, %v718_v35  ;;  %v716_v51 = vmul.f32 %v7229_v19, %v620_v38  ;;  %6175 = vmatmul.mubr.bf16.vlgmr.msra.gmra.mxu0 %v1382_v39  ;;  %6131 = vmatmul.mubr.bf16.gmra.mxu1 %v7316_v37  ;;  %v1398_v54 = vshll.u32 %v7316_v37, 16  ;;  %v684_v34 = vpop.f32.mrf.mxu1  ;;  %v6719_v35 = vld [vmem:[#allocation9 + $0x90] sm:$0xff]  }
 0x16c   : > { %6178 = vmatprep.mubr.bf16.mxu0 %v1394_v40  ;;  %6134 = vmatprep.mubr.bf16.mxu1 %v7308_v24  ;;  %v1403_v55 = vshll.u32 %v7322_v41, 16  ;;  %v1412_v56 = vrot.slane %v1410_v43, 1  ;;  %v1415_v57 = vshll.u32 %v7312_v31, 16  ;;  %v730_v62 = vmul.f32 %v7281_v50, %v7229_v19  ;;  %v940_v13 = vld [vmem:[#allocation2 + $0x78] sm:$0xff]  ;;  %v6724_v43 = vld [vmem:[#allocation9 + $0xe0] sm:$0xff]  }
 0x16d   : > { %873 = vst [vmem:[#allocation2 + $0xa9] sm:$0xff] %v786_v47  ;;  %v789_v58 = vmax.f32 %v757_v49, 0.0  ;;  %v755_v59 = vadd.f32 %v7234_v21, %v716_v51  ;;  %6211 = vmatpush3.bf16.msra.mxu1 %v6716_v5  ;;  %v728_v63 = vmul.f32 %v7229_v19, %v7292_v60  ;;  %6255 = vmatpush3.bf16.msra.mxu0 %v7223_v18  ;;  %v1396_v2 = vshrl.u32 %v7316_v37, 16  ;;  %v7373_v51 = vld [vmem:[#allocation9 + $0x88] sm:$0xff]  }
 0x16e   : > { %v1400_v3 = vrot.slane %v1398_v54, 1  ;;  %v1405_v4 = vrot.slane %v1403_v55, 1  ;;  %v7342_v6 = vor.u32 %v1412_v56, %v1408_v53  ;;  %v944_v17 = vld [vmem:[#allocation2 + $0x98] sm:$0xff]  ;;  %6212 = vmatprep.subr.bf16.mxu1 %v6717_v44  ;;  %v945_v5 = vld [vmem:[#allocation2 + $0xa0] sm:$0x3]  ;;  %6256 = vmatprep.subr.bf16.mxu0 %v6721_v46  ;;  %v769_v60 = vadd.f32 %v7234_v21, %v730_v62 }
 0x16f   : > { %876 = vst [vmem:[#allocation2 + $0xc9] sm:$0xff] %v789_v58  ;;  %v787_v50 = vmax.f32 %v755_v59, 0.0  ;;  %v7344_v11 = vpack.c.bf16 %v944_v17, %v943_v61  ;;  %v767_v18 = vadd.f32 %v7234_v21, %v728_v63  ;;  %v1417_v15 = vrot.slane %v1415_v57, 1  ;;  %v952_v57 = vld [vmem:[#allocation2 + $0xd8] sm:$0xff]  ;;  %v953_v58 = vld [vmem:[#allocation2 + $0xe0] sm:$0xff]  ;;  %v6726_v59 = vld [vmem:[#allocation9 + $0xd8] sm:$0xff]  }
 0x170   : > { %v7348_v12 = vor.u32 %v1400_v3, %v1396_v2  ;;  %v941_v14 = vld [vmem:[#allocation2 + $0x80] sm:$0xff]  ;;  %v942_v20 = vld [vmem:[#allocation2 + $0x88] sm:$0x3]  ;;  %v7350_v22 = vpack.c.bf16 %v945_v5, %v945_v5  ;;  %v733_v23 = vmul.f32 %v7304_v16, %v7229_v19  ;;  %v801_v27 = vmax.f32 %v769_v60, 0.0 }
 0x171   : > { %874 = vst [vmem:[#allocation2 + $0xb1] sm:$0xff] %v787_v50  ;;  %v7354_v25 = vpack.c.bf16 %v941_v14, %v940_v13  ;;  %v799_v28 = vmax.f32 %v767_v18, 0.0  ;;  %v7356_v29 = vpack.c.bf16 %v942_v20, %v942_v20  ;;  %6213 = vmatpush3.bf16.msra.mxu1 %v6717_v44  ;;  %6257 = vmatpush3.bf16.msra.mxu0 %v6721_v46  ;;  %v1434_v32 = vshll.u32 %v7344_v11, 16 }
 0x172   : > { %v1406_v30 = vsel %vm1358_vm0, %v7348_v12, %v1405_v4  ;;  %v1439_v33 = vshll.u32 %v7350_v22, 16  ;;  %6214 = vmatprep.subr.bf16.mxu1 %v6718_v0  ;;  %6258 = vmatprep.subr.bf16.mxu0 %v6723_v1  ;;  %v1418_v16 = vsel %vm1358_vm0, %v7342_v6, %v1417_v15  ;;  %888 = vst [vmem:[#allocation2 + $0x159] sm:$0xff] %v801_v27  ;;  %v1432_v44 = vshrl.u32 %v7344_v11, 16  ;;  %v949_v63 = vld [vmem:[#allocation2 + $0xc0] sm:$0xff] }
 0x173   : > { %6179 = vmatmul.mubr.bf16.gmra.mxu0 %v1406_v30  ;;  %6135 = vmatmul.mubr.bf16.gmra.mxu1 %v7354_v25  ;;  %886 = vst [vmem:[#allocation2 + $0x141] sm:$0xff] %v799_v28  ;;  %v1422_v38 = vshll.u32 %v7354_v25, 16  ;;  %v1427_v39 = vshll.u32 %v7356_v29, 16  ;;  %v772_v40 = vadd.f32 %v7234_v21, %v733_v23  ;;  %v1436_v46 = vrot.slane %v1434_v32, 1  ;;  %v954_v32 = vld [vmem:[#allocation2 + $0xe8] sm:$0x3] }
 0x174   : > { %6182 = vmatprep.mubr.bf16.mxu0 %v1418_v16  ;;  %6138 = vmatprep.mubr.bf16.mxu1 %v7344_v11  ;;  %v731_v47 = vmul.f32 %v7229_v19, %v7325_v45  ;;  %v734_v49 = vmul.f32 %v6109_v7, %v7229_v19  ;;  %v1420_v53 = vshrl.u32 %v7354_v25, 16  ;;  %v732_v56 = vmul.f32 %v7229_v19, %v684_v34  ;;  %v956_v7 = vld [vmem:[#allocation2 + $0xf8] sm:$0xff]  ;;  %v946_v50 = vld [vmem:[#allocation2 + $0xa8] sm:$0xff]  ;;  %v6727_v34 = vld [vmem:[#allocation9 + $0xd0] sm:$0xff]  }
 0x175   : > { %v1424_v54 = vrot.slane %v1422_v38, 1  ;;  %v804_v55 = vmax.f32 %v772_v40, 0.0  ;;  %6215 = vmatpush3.bf16.msra.mxu1 %v6718_v0  ;;  %6259 = vmatpush3.bf16.msra.mxu0 %v6723_v1  ;;  %v1429_v61 = vrot.slane %v1427_v39, 1  ;;  %v1441_v62 = vrot.slane %v1439_v33, 1  ;;  %v955_v1 = vld [vmem:[#allocation2 + $0xf0] sm:$0xff] }
 0x176   : > { %v950_v2 = vld [vmem:[#allocation2 + $0xc8] sm:$0xff]  ;;  %v770_v45 = vadd.f32 %v7234_v21, %v731_v47  ;;  %v773_v3 = vadd.f32 %v7234_v21, %v734_v49  ;;  %v951_v4 = vld [vmem:[#allocation2 + $0xd0] sm:$0x3]  ;;  %6216 = vmatprep.subr.bf16.mxu1 %v6719_v35  ;;  %v7381_v5 = vor.u32 %v1436_v46, %v1432_v44  ;;  %v771_v0 = vadd.f32 %v7234_v21, %v732_v56  ;;  %v957_v46 = vld [vmem:[#allocation2 + $0x100] sm:$0x3] }
 0x177   : > { %v7379_v17 = vor.u32 %v1424_v54, %v1420_v53  ;;  %891 = vst [vmem:[#allocation2 + $0x181] sm:$0xff] %v804_v55  ;;  %v7383_v19 = vpack.c.bf16 %v950_v2, %v949_v63  ;;  %6260 = vmatprep.subr.bf16.mxu0 %v6724_v43  ;;  %v7386_v15 = vpack.c.bf16 %v953_v58, %v952_v57  ;;  %v6725_v33 = vld [vmem:[#allocation9 + $0x80] sm:$0xff]   ;;  %v6728_v56 = vld [vmem:[#allocation9 + $0xc8] sm:$0xff]   ;;  %v7413_v57 = vld [vmem:[#allocation9 + $0x138] sm:$0xff]  }
 0x178   : > { %v947_v60 = vld [vmem:[#allocation2 + $0xb0] sm:$0xff]  ;;  %v802_v18 = vmax.f32 %v770_v45, 0.0  ;;  %v805_v13 = vmax.f32 %v773_v3, 0.0  ;;  %v948_v14 = vld [vmem:[#allocation2 + $0xb8] sm:$0x3]  ;;  %v7388_v20 = vpack.c.bf16 %v951_v4, %v951_v4  ;;  %v803_v28 = vmax.f32 %v771_v0, 0.0 }
 0x179   : > { %v1430_v23 = vsel %vm1358_vm0, %v7379_v17, %v1429_v61  ;;  %v7392_v27 = vpack.c.bf16 %v947_v60, %v946_v50  ;;  %v7394_v30 = vpack.c.bf16 %v948_v14, %v948_v14  ;;  %6217 = vmatpush3.bf16.msra.mxu1 %v6719_v35  ;;  %6261 = vmatpush3.bf16.msra.mxu0 %v6724_v43  ;;  %v1458_v21 = vshll.u32 %v7383_v19, 16  ;;  %v959_v63 = vld [vmem:[#allocation2 + $0x110] sm:$0xff] }
 0x17a   : > { %889 = vst [vmem:[#allocation2 + $0x169] sm:$0xff] %v802_v18  ;;  %892 = vst [vmem:[#allocation2 + $0x189] sm:$0xff] %v805_v13  ;;  %6218 = vmatprep.subr.bf16.mxu1 %v7373_v51  ;;  %6262 = vmatprep.subr.bf16.mxu0 %v6726_v59  ;;  %v1442_v16 = vsel %vm1358_vm0, %v7381_v5, %v1441_v62  ;;  %v7403_v39 = vpack.c.bf16 %v956_v7, %v955_v1  ;;  %v1456_v40 = vshrl.u32 %v7383_v19, 16  ;;  %v958_v62 = vld [vmem:[#allocation2 + $0x108] sm:$0xff]  ;;  %v6730_v18 = vld [vmem:[#allocation9 + $0xc0] sm:$0xff]  }
 0x17b   : > { %6183 = vmatmul.mubr.bf16.gmra.mxu0 %v1430_v23  ;;  %6139 = vmatmul.mubr.bf16.gmra.mxu1 %v7392_v27  ;;  %890 = vst [vmem:[#allocation2 + $0x171] sm:$0xff] %v803_v28  ;;  %v1446_v35 = vshll.u32 %v7392_v27, 16  ;;  %v1451_v38 = vshll.u32 %v7394_v30, 16  ;;  %v1460_v43 = vrot.slane %v1458_v21, 1  ;;  %v1463_v44 = vshll.u32 %v7388_v20, 16 }
 0x17c   : > { %6186 = vmatprep.mubr.bf16.mxu0 %v1442_v16  ;;  %6142 = vmatprep.mubr.bf16.mxu1 %v7383_v19  ;;  %v1444_v47 = vshrl.u32 %v7392_v27, 16  ;;  %v7409_v53 = vpack.c.bf16 %v954_v32, %v954_v32  ;;  %v1470_v54 = vshll.u32 %v7386_v15, 16  ;;  %v7419_v2 = vpack.c.bf16 %v957_v46, %v957_v46  ;;  %v960_v21 = vld [vmem:[#allocation2 + $0x118] sm:$0x3]  ;;  %v963_v32 = vld [vmem:[#allocation2 + $0x130] sm:$0x3] }
 0x17d   : > { %v1448_v49 = vrot.slane %v1446_v35, 1  ;;  %6219 = vmatpush3.bf16.msra.mxu1 %v7373_v51  ;;  %6263 = vmatpush3.bf16.msra.mxu0 %v6726_v59  ;;  %v1453_v55 = vrot.slane %v1451_v38, 1  ;;  %v7417_v61 = vor.u32 %v1460_v43, %v1456_v40  ;;  %v1482_v45 = vshll.u32 %v7403_v39, 16  ;;  %v961_v51 = vld [vmem:[#allocation2 + $0x120] sm:$0xff]  ;;  %v962_v59 = vld [vmem:[#allocation2 + $0x128] sm:$0xff] }
 0x17e   : > { %6220 = vmatprep.subr.bf16.mxu1 %v6725_v33  ;;  %6264 = vmatprep.subr.bf16.mxu0 %v6727_v34  ;;  %v1468_v3 = vshrl.u32 %v7386_v15, 16  ;;  %v1465_v0 = vrot.slane %v1463_v44, 1  ;;  %v1472_v1 = vrot.slane %v1470_v54, 1  ;;  %v1475_v7 = vshll.u32 %v7409_v53, 16  ;;  %v7442_v38 = vld [vmem:[#allocation9 + $0x178] sm:$0xff]   ;;  %v964_v44 = vld [vmem:[#allocation2 + $0x138] sm:$0xff] }
 0x17f   : > { %v7415_v58 = vor.u32 %v1448_v49, %v1444_v47  ;;  %v7426_v50 = vpack.c.bf16 %v959_v63, %v958_v62  ;;  %v1480_v60 = vshrl.u32 %v7403_v39, 16  ;;  %v1484_v14 = vrot.slane %v1482_v45, 1  ;;  %v965_v46 = vld [vmem:[#allocation2 + $0x140] sm:$0xff]  ;;  %v967_v54 = vld [vmem:[#allocation2 + $0x150] sm:$0xff] }
 0x180   : > { %v1466_v13 = vsel %vm1358_vm0, %v7417_v61, %v1465_v0  ;;  %v1487_v23 = vshll.u32 %v7419_v2, 16  ;;  %v7434_v28 = vpack.c.bf16 %v962_v59, %v961_v51  ;;  %v7439_v16 = vpack.c.bf16 %v960_v21, %v960_v21 }
 0x181   : > { %v1454_v4 = vsel %vm1358_vm0, %v7415_v58, %v1453_v55  ;;  %6221 = vmatpush3.bf16.msra.mxu1 %v6725_v33  ;;  %6265 = vmatpush3.bf16.msra.mxu0 %v6727_v34  ;;  %v7437_v33 = vor.u32 %v1472_v1, %v1468_v3  ;;  %v1477_v34 = vrot.slane %v1475_v7, 1  ;;  %v1494_v35 = vshll.u32 %v7426_v50, 16  ;;  %v968_v55 = vld [vmem:[#allocation2 + $0x158] sm:$0xff]  ;;  %v966_v7 = vld [vmem:[#allocation2 + $0x148] sm:$0x3] }
 0x182   : > { %6266 = vmatprep.subr.bf16.mxu0 %v6728_v56  ;;  %6302 = vmatprep.subr.bf16.mxu1 %v7413_v57  ;;  %v7444_v40 = vor.u32 %v1484_v14, %v1480_v60  ;;  %v1489_v43 = vrot.slane %v1487_v23, 1  ;;  %v7446_v47 = vpack.c.bf16 %v963_v32, %v963_v32  ;;  %v1506_v49 = vshll.u32 %v7434_v28, 16  ;;  %v969_v60 = vld [vmem:[#allocation2 + $0x160] sm:$0x3] }
 0x183   : > { %6187 = vmatmul.mubr.bf16.gmra.mxu0 %v1454_v4  ;;  %6143 = vmatmul.mubr.bf16.gmra.mxu1 %v7386_v15  ;;  %v1492_v62 = vshrl.u32 %v7426_v50, 16  ;;  %v1496_v63 = vrot.slane %v1494_v35, 1  ;;  %v1499_v45 = vshll.u32 %v7439_v16, 16  ;;  %v7453_v3 = vpack.c.bf16 %v965_v46, %v964_v44  ;;  %v971_v35 = vld [vmem:[#allocation2 + $0x170] sm:$0xff] }
 0x184   : > { %6190 = vmatprep.mubr.bf16.mxu0 %v1466_v13  ;;  %6146 = vmatprep.mubr.bf16.mxu1 %v7403_v39  ;;  %v1504_v51 = vshrl.u32 %v7434_v28, 16  ;;  %v1490_v59 = vsel %vm1358_vm0, %v7444_v40, %v1489_v43  ;;  %v1508_v4 = vrot.slane %v1506_v49, 1  ;;  %v1511_v0 = vshll.u32 %v7446_v47, 16 }
 0x185   : > { %6267 = vmatpush3.bf16.msra.mxu0 %v6728_v56  ;;  %v1478_v56 = vsel %vm1358_vm0, %v7437_v33, %v1477_v34  ;;  %v7461_v1 = vpack.c.bf16 %v968_v55, %v967_v54  ;;  %v1501_v13 = vrot.slane %v1499_v45, 1  ;;  %v7466_v14 = vpack.c.bf16 %v966_v7, %v966_v7  ;;  %v970_v34 = vld [vmem:[#allocation2 + $0x168] sm:$0xff] }
 0x186   : > { %6268 = vmatprep.subr.bf16.mxu0 %v6730_v18  ;;  %v1518_v23 = vshll.u32 %v7453_v3, 16  ;;  %v7469_v21 = vor.u32 %v1508_v4, %v1504_v51  ;;  %v1513_v32 = vrot.slane %v1511_v0, 1  ;;  %v7471_v43 = vpack.c.bf16 %v969_v60, %v969_v60 }
 0x187   : > { %v1530_v44 = vshll.u32 %v7461_v1, 16  ;;  %v1516_v46 = vshrl.u32 %v7453_v3, 16  ;;  %v1523_v55 = vshll.u32 %v7466_v14, 16  ;;  %v1922_v4 = vrot.slane %v6968_v9, 1 }
 0x188   : > { %v1520_v54 = vrot.slane %v1518_v23, 1  ;;  %v1535_v51 = vshll.u32 %v7471_v43, 16  ;;  %v1923_v0 = vrot.slane %v7216_v10, 1 }
 0x189   : > { %6269 = vmatpush3.bf16.msra.mxu0 %v6730_v18  ;;  %v7464_v18 = vor.u32 %v1496_v63, %v1492_v62  ;;  %v1514_v62 = vsel %vm1358_vm0, %v7469_v21, %v1513_v32  ;;  %v1528_v63 = vshrl.u32 %v7461_v1, 16  ;;  %v1532_v45 = vrot.slane %v1530_v44, 1 }
 0x18a   : > { %6350 = vmatprep.subr.bf16.mxu0 %v7442_v38  ;;  %v7488_v7 = vor.u32 %v1520_v54, %v1516_v46  ;;  %v1525_v60 = vrot.slane %v1523_v55, 1 }
 0x18b   : > { %6191 = vmatmul.mubr.bf16.gmra.mxu0 %v1478_v56  ;;  %6147 = vmatmul.mubr.bf16.gmra.mxu1 %v7426_v50  ;;  %v1502_v49 = vsel %vm1358_vm0, %v7464_v18, %v1501_v13  ;;  %v7478_v56 = vpack.c.bf16 %v971_v35, %v970_v34  ;;  %v7493_v32 = vor.u32 %v1532_v45, %v1528_v63  ;;  %v1537_v34 = vrot.slane %v1535_v51, 1 }
 0x18c   : > { %6194 = vmatprep.mubr.bf16.mxu0 %v1490_v59  ;;  %6150 = vmatprep.mubr.bf16.mxu1 %v7434_v28  ;;  %v972_v59 = vld [vmem:[#allocation2 + $0x178] sm:$0x3]  ;;  %v1924_v35 = vsel %vm1921_vm1, %v1922_v4, %v1923_v0  ;;  %v1526_v44 = vsel %vm1358_vm0, %v7488_v7, %v1525_v60  ;;  %v1926_v63 = vrot.slane %v7283_v52, 1  ;;  %v1928_v45 = vrot.slane %v7272_v36, 1 }
 0x18d   : > { %v7490_v13 = vpack.c.bf16 %v972_v59, %v972_v59  ;;  %v1542_v23 = vshll.u32 %v7478_v56, 16  ;;  %v1540_v9 = vshrl.u32 %v7478_v56, 16  ;;  %v1538_v46 = vsel %vm1358_vm0, %v7493_v32, %v1537_v34  ;;  %v6731_v59 = vld [vmem:[#allocation9 + $0x130] sm:$0xff]  }
 0x18e   : > { %v1929_v51 = vrot.slane %v7274_v42, 1  ;;  %v6732_v42 = vld [vmem:[#allocation9 + $0x128] sm:$0xff]   ;;  %v1931_v60 = vrot.slane %v7316_v37, 1  ;;  %v1934_v34 = vrot.slane %v7308_v24, 1 }
 0x18f   : > { %v1547_v10 = vshll.u32 %v7490_v13, 16 }
 0x190   : > { %v1930_v52 = vsel %vm1921_vm1, %v1928_v45, %v1929_v51 }
 0x191   : > { %v1549_v55 = vrot.slane %v1547_v10, 1  ;;  %v6734_v10 = vld [vmem:[#allocation9 + $0x118] sm:$0xff]  }
 0x193   : > { %6195 = vmatmul.mubr.bf16.gmra.mxu0 %v1502_v49  ;;  %6151 = vmatmul.mubr.bf16.gmra.mxu1 %v7453_v3  ;;  %v1544_v49 = vrot.slane %v1542_v23, 1  ;;  %v1932_v23 = vrot.slane %v7322_v41, 1  ;;  %v1938_v41 = vrot.slane %v7356_v29, 1 }
 0x194   : > { %6198 = vmatprep.mubr.bf16.mxu0 %v1514_v62  ;;  %6154 = vmatprep.mubr.bf16.mxu1 %v7461_v1  ;;  %v1925_v62 = vrot.slane %v7279_v48, 1 }
 0x195   : > { %v7503_v54 = vor.u32 %v1544_v49, %v1540_v9  ;;  %v6737_v9 = vld [vmem:[#allocation9 + $0x170] sm:$0xff]  }
 0x196   : > { %v1927_v0 = vsel %vm1921_vm1, %v1925_v62, %v1926_v63  ;;  %v1941_v63 = vrot.slane %v7350_v22, 1  ;;  %v1943_v22 = vrot.slane %v7392_v27, 1 }
 0x197   : > { %v1550_v4 = vsel %vm1358_vm0, %v7503_v54, %v1549_v55  ;;  %v1940_v55 = vrot.slane %v7344_v11, 1 }
 0x199   : > { %v1942_v29 = vsel %vm1921_vm1, %v1940_v55, %v1941_v63 }
 0x19b   : > { %6199 = vmatmul.mubr.bf16.gmra.mxu0 %v1526_v44  ;;  %6155 = vmatmul.mubr.bf16.gmra.mxu1 %v7478_v56  ;;  %v6733_v44 = vld [vmem:[#allocation9 + $0x120] sm:$0xff]  }
 0x19c   : > { %6202 = vmatprep.mubr.bf16.mxu0 %v1538_v46  ;;  %6222 = vmatprep.mubr.bf16.mxu1 %v1924_v35  ;;  %v1935_v35 = vrot.slane %v7312_v31, 1  ;;  %v1937_v31 = vrot.slane %v7354_v25, 1  ;;  %v6739_v46 = vld [vmem:[#allocation9 + $0x168] sm:$0xff]  }
 0x19e   : > { %v1936_v49 = vsel %vm1921_vm1, %v1934_v34, %v1935_v35  ;;  %v1939_v51 = vsel %vm1921_vm1, %v1937_v31, %v1938_v41  ;;  %v7558_v41 = vld [vmem:[#allocation9 + $0x1b8] sm:$0xff]  }
 0x1a3   : > { %6203 = vmatmul.mubr.bf16.gmra.mxu0 %v1550_v4  ;;  %6223 = vmatmul.mubr.bf16.vlgmr.msra.gmra.mxu1 %v1927_v0  ;;  %v1944_v4 = vrot.slane %v7394_v30, 1  ;;  %v6738_v0 = vld [vmem:[#allocation9 + $0x108] sm:$0xff]  }
 0x1a4   : > { %6270 = vmatprep.mubr.bf16.mxu0 %v7279_v48  ;;  %6303 = vmatpush3.bf16.msra.mxu1 %v7413_v57  ;;  %v1933_v57 = vsel %vm1921_vm1, %v1931_v60, %v1932_v23  ;;  %v1947_v23 = vrot.slane %v7388_v20, 1  ;;  %v1949_v20 = vrot.slane %v7386_v15, 1 }
 0x1a5   : > { %6226 = vmatprep.mubr.bf16.mxu1 %v1930_v52  ;;  %6304 = vmatprep.subr.bf16.mxu1 %v6731_v59  ;;  %v6742_v52 = vld [vmem:[#allocation9 + $0x158] sm:$0xff]   ;;  %v1945_v35 = vsel %vm1921_vm1, %v1943_v22, %v1944_v4  ;;  %v1959_v4 = vrot.slane %v7446_v47, 1  ;;  %v1962_v47 = vrot.slane %v7466_v14, 1 }
 0x1a8   : > { %6305 = vmatpush3.bf16.msra.mxu1 %v6731_v59  ;;  %v6740_v59 = vld [vmem:[#allocation9 + $0x160] sm:$0xff]  }
 0x1a9   : > { %6306 = vmatprep.subr.bf16.mxu1 %v6732_v42 }
 0x1ab   : > { %6271 = vmatmul.mubr.bf16.vlgmr.msra.gmra.mxu0 %v7272_v36  ;;  %6227 = vmatmul.mubr.bf16.gmra.mxu1 %v1933_v57  ;;  %v6741_v57 = vld [vmem:[#allocation9 + $0x100] sm:$0xff]  }
 0x1ac   : > { %6274 = vmatprep.mubr.bf16.mxu0 %v7316_v37  ;;  %6230 = vmatprep.mubr.bf16.mxu1 %v1936_v49  ;;  %v6744_v49 = vld [vmem:[#allocation9 + $0x148] sm:$0xff]  }
 0x1ad   : > { %6307 = vmatpush3.bf16.msra.mxu1 %v6732_v42  ;;  %6351 = vmatpush3.bf16.msra.mxu0 %v7442_v38  ;;  %v6735_v38 = vld [vmem:[#allocation9 + $0x110] sm:$0xff]   ;;  %v1946_v42 = vrot.slane %v7383_v19, 1  ;;  %v6755_v37 = vld [vmem:[#allocation9 + $0x1e8] sm:$0xff]  }
 0x1ae   : > { %6308 = vmatprep.subr.bf16.mxu1 %v6733_v44  ;;  %6352 = vmatprep.subr.bf16.mxu0 %v6737_v9 }
 0x1af   : > { %v1948_v30 = vsel %vm1921_vm1, %v1946_v42, %v1947_v23  ;;  %v2278_v23 = vld [vmem:[#allocation2 + $0x28] sm:$0x3] }
 0x1b1   : > { %6309 = vmatpush3.bf16.msra.mxu1 %v6733_v44  ;;  %6353 = vmatpush3.bf16.msra.mxu0 %v6737_v9  ;;  %v6743_v44 = vld [vmem:[#allocation9 + $0x150] sm:$0xff]   ;;  %v1950_v9 = vrot.slane %v7409_v53, 1 }
 0x1b2   : > { %6310 = vmatprep.subr.bf16.mxu1 %v6734_v10  ;;  %6354 = vmatprep.subr.bf16.mxu0 %v6739_v46 }
 0x1b3   : > { %6275 = vmatmul.mubr.bf16.gmra.mxu0 %v7308_v24  ;;  %6231 = vmatmul.mubr.bf16.gmra.mxu1 %v1939_v51  ;;  %v1951_v63 = vsel %vm1921_vm1, %v1949_v20, %v1950_v9  ;;  %v6746_v51 = vld [vmem:[#allocation9 + $0x140] sm:$0xff]  }
 0x1b4   : > { %6278 = vmatprep.mubr.bf16.mxu0 %v7354_v25  ;;  %6234 = vmatprep.mubr.bf16.mxu1 %v1942_v29  ;;  %v1958_v29 = vrot.slane %v7434_v28, 1  ;;  %v6754_v25 = vld [vmem:[#allocation9 + $0x188] sm:$0xff]  }
 0x1b5   : > { %6311 = vmatpush3.bf16.msra.mxu1 %v6734_v10  ;;  %6355 = vmatpush3.bf16.msra.mxu0 %v6739_v46  ;;  %v1952_v10 = vrot.slane %v7403_v39, 1  ;;  %v1953_v46 = vrot.slane %v7419_v2, 1  ;;  %v1955_v2 = vrot.slane %v7426_v50, 1 }
 0x1b6   : > { %6312 = vmatprep.subr.bf16.mxu1 %v6735_v38  ;;  %6356 = vmatprep.subr.bf16.mxu0 %v6740_v59 }
 0x1b7   : > { %v1954_v53 = vsel %vm1921_vm1, %v1952_v10, %v1953_v46  ;;  %v8698_v46 = vrot.slane %v7478_v56, 1 }
 0x1b9   : > { %6313 = vmatpush3.bf16.msra.mxu1 %v6735_v38  ;;  %6357 = vmatpush3.bf16.msra.mxu0 %v6740_v59  ;;  %v1956_v38 = vrot.slane %v7439_v16, 1  ;;  %v7573_v59 = vld [vmem:[#allocation9 + $0x1f8] sm:$0xff]   ;;  %v1960_v16 = vsel %vm1921_vm1, %v1958_v29, %v1959_v4 }
 0x1ba   : > { %6314 = vmatprep.subr.bf16.mxu1 %v6738_v0  ;;  %6358 = vmatprep.subr.bf16.mxu0 %v6742_v52 }
 0x1bb   : > { %6279 = vmatmul.mubr.bf16.gmra.mxu0 %v7344_v11  ;;  %6235 = vmatmul.mubr.bf16.gmra.mxu1 %v1945_v35  ;;  %v1964_v35 = vrot.slane %v7461_v1, 1 }
 0x1bc   : > { %6282 = vmatprep.mubr.bf16.mxu0 %v7392_v27  ;;  %6238 = vmatprep.mubr.bf16.mxu1 %v1948_v30  ;;  %v6760_v27 = vld [vmem:[#allocation9 + $0x1c8] sm:$0xff]  }
 0x1bd   : > { %6315 = vmatpush3.bf16.msra.mxu1 %v6738_v0  ;;  %6359 = vmatpush3.bf16.msra.mxu0 %v6742_v52  ;;  %v1957_v0 = vsel %vm1921_vm1, %v1955_v2, %v1956_v38  ;;  %v1961_v52 = vrot.slane %v7453_v3, 1 }
 0x1be   : > { %6316 = vmatprep.subr.bf16.mxu1 %v6741_v57  ;;  %6360 = vmatprep.subr.bf16.mxu0 %v6743_v44 }
 0x1bf   : > { %v1963_v30 = vsel %vm1921_vm1, %v1961_v52, %v1962_v47  ;;  %v2287_v47 = vld [vmem:[#allocation2 + $0x70] sm:$0x3] }
 0x1c1   : > { %6317 = vmatpush3.bf16.msra.mxu1 %v6741_v57  ;;  %6361 = vmatpush3.bf16.msra.mxu0 %v6743_v44  ;;  %v1965_v57 = vrot.slane %v7471_v43, 1  ;;  %v2325_v44 = vpack.c.bf16 %v2278_v23, %v2278_v23  ;;  %v1968_v43 = vrot.slane %v7490_v13, 1  ;;  %v2290_v13 = vld [vmem:[#allocation2 + $0x88] sm:$0x3]  ;;  %v2321_v23 = vld [vmem:[#allocation2 + $0x180] sm:$0xff] }
 0x1c2   : > { %6362 = vmatprep.subr.bf16.mxu0 %v6744_v49  ;;  %6398 = vmatprep.subr.bf16.mxu1 %v7558_v41 }
 0x1c3   : > { %6283 = vmatmul.mubr.bf16.gmra.mxu0 %v7383_v19  ;;  %6239 = vmatmul.mubr.bf16.gmra.mxu1 %v1951_v63  ;;  %v1966_v9 = vsel %vm1921_vm1, %v1964_v35, %v1965_v57  ;;  %v2718_v14 = vshll.u32 %v2325_v44, 16  ;;  %v2284_v63 = vld [vmem:[#allocation2 + $0x58] sm:$0x3]  ;;  %v1969_v38 = vsel %vm1921_vm1, %v8698_v46, %v1968_v43  ;;  %v2322_v57 = vld [vmem:[#allocation2 + $0x188] sm:$0xff]  ;;  %v2333_v46 = vpack.c.bf16 %v2290_v13, %v2290_v13 }
 0x1c4   : > { %6286 = vmatprep.mubr.bf16.mxu0 %v7386_v15  ;;  %6242 = vmatprep.mubr.bf16.mxu1 %v1954_v53  ;;  %v2329_v4 = vpack.c.bf16 %v2284_v63, %v2284_v63  ;;  %v7607_v43 = vpack.c.bf16 %v2322_v57, %v2321_v23  ;;  %v6747_v63 = vld [vmem:[#allocation9 + $0x1b0] sm:$0xff]   ;;  %v2296_v23 = vld [vmem:[#allocation2 + $0xb8] sm:$0x3] }
 0x1c5   : > { %6363 = vmatpush3.bf16.msra.mxu0 %v6744_v49  ;;  %v2281_v49 = vld [vmem:[#allocation2 + $0x40] sm:$0x3]  ;;  %v2720_v53 = vrot.slane %v2718_v14, 1 }
 0x1c6   : > { %6364 = vmatprep.subr.bf16.mxu0 %v6746_v51  ;;  %v3279_v57 = vrot.slane %v2329_v4, 1 }
 0x1c9   : > { %6365 = vmatpush3.bf16.msra.mxu0 %v6746_v51  ;;  %v2327_v51 = vpack.c.bf16 %v2281_v49, %v2281_v49  ;;  %v2331_v49 = vpack.c.bf16 %v2287_v47, %v2287_v47  ;;  %v6748_v47 = vld [vmem:[#allocation9 + $0x1a8] sm:$0xff]  }
 0x1ca   : > { %6446 = vmatprep.subr.bf16.mxu0 %v7573_v59 }
 0x1cb   : > { %6287 = vmatmul.mubr.bf16.gmra.mxu0 %v7403_v39  ;;  %6243 = vmatmul.mubr.bf16.gmra.mxu1 %v1957_v0  ;;  %v2721_v0 = vsel %vm1358_vm0, %v7310_v26, %v2720_v53  ;;  %v3276_v13 = vrot.slane %v2327_v51, 1 }
 0x1cc   : > { %6290 = vmatprep.mubr.bf16.mxu0 %v7426_v50  ;;  %6246 = vmatprep.mubr.bf16.mxu1 %v1960_v16  ;;  %v2730_v16 = vshll.u32 %v2327_v51, 16  ;;  %v3280_v51 = vsel %vm1921_vm1, %v1931_v60, %v3279_v57  ;;  %v3285_v60 = vrot.slane %v2333_v46, 1 }
 0x1ce   : > { %v2732_v14 = vrot.slane %v2730_v16, 1  ;;  %v2766_v16 = vshll.u32 %v2333_v46, 16  ;;  %v3286_v46 = vsel %vm1921_vm1, %v1937_v31, %v3285_v60  ;;  %v6758_v31 = vld [vmem:[#allocation9 + $0x1d8] sm:$0xff]  }
 0x1d3   : > { %6291 = vmatmul.mubr.bf16.gmra.mxu0 %v7434_v28  ;;  %6247 = vmatmul.mubr.bf16.gmra.mxu1 %v1963_v30  ;;  %v2742_v30 = vshll.u32 %v2329_v4, 16 }
 0x1d4   : > { %6294 = vmatprep.mubr.bf16.mxu0 %v7453_v3  ;;  %6250 = vmatprep.mubr.bf16.mxu1 %v1966_v9  ;;  %v3273_v9 = vrot.slane %v2325_v44, 1 }
 0x1d5   : > { %v2744_v26 = vrot.slane %v2742_v30, 1 }
 0x1d6   : > { %v3274_v53 = vsel %vm1921_vm1, %v1925_v62, %v3273_v9  ;;  %v2768_v62 = vrot.slane %v2766_v16, 1  ;;  %v7620_v9 = vpack.c.bf16 %v2296_v23, %v2296_v23  ;;  %v2305_v23 = vld [vmem:[#allocation2 + $0x100] sm:$0x3] }
 0x1d7   : > { %v2745_v44 = vsel %vm1358_vm0, %v7348_v12, %v2744_v26  ;;  %v3277_v12 = vsel %vm1921_vm1, %v1928_v45, %v3276_v13  ;;  %v3282_v26 = vrot.slane %v2331_v49, 1 }
 0x1d8   : > { %v2769_v4 = vsel %vm1358_vm0, %v7379_v17, %v2768_v62  ;;  %v2790_v45 = vshll.u32 %v7620_v9, 16 }
 0x1da   : > { %v2792_v16 = vrot.slane %v2790_v45, 1 }
 0x1db   : > { %6295 = vmatmul.mubr.bf16.gmra.mxu0 %v7461_v1  ;;  %6251 = vmatmul.mubr.bf16.gmra.mxu1 %v1969_v38  ;;  %v2733_v38 = vsel %vm1358_vm0, %v7301_v8, %v2732_v14  ;;  %v2293_v8 = vld [vmem:[#allocation2 + $0xa0] sm:$0x3]  ;;  %v6749_v14 = vld [vmem:[#allocation9 + $0x1a0] sm:$0xff]  }
 0x1dc   : > { %6298 = vmatprep.mubr.bf16.mxu0 %v7478_v56  ;;  %6318 = vmatprep.mubr.bf16.mxu1 %v2721_v0  ;;  %v2754_v0 = vshll.u32 %v2331_v49, 16  ;;  %v7618_v48 = vpack.c.bf16 %v2293_v8, %v2293_v8  ;;  %v6751_v49 = vld [vmem:[#allocation9 + $0x190] sm:$0xff]   ;;  %v6756_v8 = vld [vmem:[#allocation9 + $0x1e0] sm:$0xff]   ;;  %v2793_v13 = vsel %vm1358_vm0, %v7415_v58, %v2792_v16  ;;  %v3291_v58 = vrot.slane %v7620_v9, 1 }
 0x1de   : > { %v2756_v30 = vrot.slane %v2754_v0, 1  ;;  %v2778_v36 = vshll.u32 %v7618_v48, 16  ;;  %v3288_v57 = vrot.slane %v7618_v48, 1  ;;  %v3292_v9 = vsel %vm1921_vm1, %v1943_v22, %v3291_v58 }
 0x1e0   : > { %v2780_v17 = vrot.slane %v2778_v36, 1  ;;  %v2311_v36 = vld [vmem:[#allocation2 + $0x130] sm:$0x3] }
 0x1e3   : > { %6299 = vmatmul.mubr.bf16.gmra.mxu0 %v7607_v43  ;;  %6319 = vmatmul.mubr.bf16.vlgmr.msra.gmra.mxu1 %v2733_v38  ;;  %v6753_v38 = vld [vmem:[#allocation9 + $0x1f0] sm:$0xff]  }
 0x1e4   : > { %6366 = vmatprep.mubr.bf16.mxu0 %v3274_v53  ;;  %6399 = vmatpush3.bf16.msra.mxu1 %v7558_v41  ;;  %v2757_v41 = vsel %vm1358_vm0, %v7342_v6, %v2756_v30  ;;  %v2299_v6 = vld [vmem:[#allocation2 + $0xd0] sm:$0x3]  ;;  %v6750_v53 = vld [vmem:[#allocation9 + $0x198] sm:$0xff]   ;;  %v7652_v30 = vpack.c.bf16 %v2305_v23, %v2305_v23 }
 0x1e5   : > { %6322 = vmatprep.mubr.bf16.mxu1 %v2745_v44  ;;  %6400 = vmatprep.subr.bf16.mxu1 %v6747_v63  ;;  %v7637_v0 = vpack.c.bf16 %v2299_v6, %v2299_v6  ;;  %v2347_v6 = vpack.c.bf16 %v2311_v36, %v2311_v36 }
 0x1e7   : > { %v3306_v39 = vrot.slane %v2347_v6, 1 }
 0x1e8   : > { %6401 = vmatpush3.bf16.msra.mxu1 %v6747_v63  ;;  %v2302_v63 = vld [vmem:[#allocation2 + $0xe8] sm:$0x3] }
 0x1e9   : > { %6402 = vmatprep.subr.bf16.mxu1 %v6748_v47  ;;  %v7635_v44 = vpack.c.bf16 %v2302_v63, %v2302_v63  ;;  %v3294_v63 = vrot.slane %v7637_v0, 1  ;;  %v3307_v50 = vsel %vm1921_vm1, %v1958_v29, %v3306_v39  ;;  %v3638_v39 = vld [vmem:[#allocation2 + $0x88] sm:$0x3] }
 0x1eb   : > { %6367 = vmatmul.mubr.bf16.vlgmr.msra.gmra.mxu0 %v3277_v12  ;;  %6323 = vmatmul.mubr.bf16.gmra.mxu1 %v2757_v41  ;;  %v2814_v24 = vshll.u32 %v7635_v44, 16  ;;  %v3297_v22 = vrot.slane %v7635_v44, 1 }
 0x1ec   : > { %6370 = vmatprep.mubr.bf16.mxu0 %v3280_v51  ;;  %6326 = vmatprep.mubr.bf16.mxu1 %v2769_v4  ;;  %v6757_v51 = vld [vmem:[#allocation9 + $0x180] sm:$0xff]   ;;  %v6759_v4 = vld [vmem:[#allocation9 + $0x1d0] sm:$0xff]  }
 0x1ed   : > { %6403 = vmatpush3.bf16.msra.mxu1 %v6748_v47  ;;  %6447 = vmatpush3.bf16.msra.mxu0 %v7573_v59  ;;  %v3283_v47 = vsel %vm1921_vm1, %v1934_v34, %v3282_v26  ;;  %v2781_v59 = vsel %vm1358_vm0, %v7381_v5, %v2780_v17  ;;  %v2802_v5 = vshll.u32 %v7637_v0, 16  ;;  %v2308_v34 = vld [vmem:[#allocation2 + $0x118] sm:$0x3]  ;;  %v2816_v62 = vrot.slane %v2814_v24, 1  ;;  %v7670_v26 = vld [vmem:[#allocation9 + $0x238] sm:$0xff]   ;;  %v6762_v0 = vld [vmem:[#allocation9 + $0x1c0] sm:$0xff]  }
 0x1ee   : > { %6404 = vmatprep.subr.bf16.mxu1 %v6749_v14  ;;  %6448 = vmatprep.subr.bf16.mxu0 %v6753_v38  ;;  %v7655_v12 = vpack.c.bf16 %v2308_v34, %v2308_v34  ;;  %v2850_v17 = vshll.u32 %v2347_v6, 16  ;;  %v3298_v44 = vsel %vm1921_vm1, %v1949_v20, %v3297_v22  ;;  %v2323_v34 = vld [vmem:[#allocation2 + $0x190] sm:$0x3]  ;;  %v3632_v22 = vld [vmem:[#allocation2 + $0x58] sm:$0x3] }
 0x1ef   : > { %v2804_v41 = vrot.slane %v2802_v5, 1  ;;  %v2817_v11 = vsel %vm1358_vm0, %v7437_v33, %v2816_v62 }
 0x1f1   : > { %6405 = vmatpush3.bf16.msra.mxu1 %v6749_v14  ;;  %6449 = vmatpush3.bf16.msra.mxu0 %v6753_v38  ;;  %v3289_v14 = vsel %vm1921_vm1, %v1940_v55, %v3288_v57  ;;  %v2805_v48 = vsel %vm1358_vm0, %v7417_v61, %v2804_v41  ;;  %v2826_v38 = vshll.u32 %v7652_v30, 16  ;;  %v2838_v55 = vshll.u32 %v7655_v12, 16  ;;  %v2314_v61 = vld [vmem:[#allocation2 + $0x148] sm:$0x3] }
 0x1f2   : > { %6406 = vmatprep.subr.bf16.mxu1 %v6750_v53  ;;  %6450 = vmatprep.subr.bf16.mxu0 %v6755_v37 }
 0x1f3   : > { %6371 = vmatmul.mubr.bf16.gmra.mxu0 %v3283_v47  ;;  %6327 = vmatmul.mubr.bf16.gmra.mxu1 %v2781_v59  ;;  %v2828_v45 = vrot.slane %v2826_v38, 1  ;;  %v2840_v33 = vrot.slane %v2838_v55, 1  ;;  %v2317_v47 = vld [vmem:[#allocation2 + $0x160] sm:$0x3]  ;;  %v2852_v59 = vrot.slane %v2850_v17, 1  ;;  %v3630_v55 = vld [vmem:[#allocation2 + $0x48] sm:$0xff] }
 0x1f4   : > { %6374 = vmatprep.mubr.bf16.mxu0 %v3286_v46  ;;  %6330 = vmatprep.mubr.bf16.mxu1 %v2793_v13  ;;  %v3629_v38 = vld [vmem:[#allocation2 + $0x40] sm:$0x3] }
 0x1f5   : > { %6407 = vmatpush3.bf16.msra.mxu1 %v6750_v53  ;;  %6451 = vmatpush3.bf16.msra.mxu0 %v6755_v37  ;;  %v2349_v53 = vpack.c.bf16 %v2314_v61, %v2314_v61  ;;  %v3295_v37 = vsel %vm1921_vm1, %v1946_v42, %v3294_v63  ;;  %v2829_v60 = vsel %vm1358_vm0, %v7444_v40, %v2828_v45  ;;  %v2320_v42 = vld [vmem:[#allocation2 + $0x178] sm:$0x3]  ;;  %v3300_v40 = vrot.slane %v7652_v30, 1  ;;  %v3633_v61 = vld [vmem:[#allocation2 + $0x60] sm:$0xff] }
 0x1f6   : > { %6408 = vmatprep.subr.bf16.mxu1 %v6751_v49  ;;  %6452 = vmatprep.subr.bf16.mxu0 %v6756_v8  ;;  %v2841_v16 = vsel %vm1358_vm0, %v7464_v18, %v2840_v33  ;;  %v2353_v15 = vpack.c.bf16 %v2320_v42, %v2320_v42  ;;  %v2853_v20 = vsel %vm1358_vm0, %v7469_v21, %v2852_v59  ;;  %v2893_v30 = vshll.u32 %v7607_v43, 16  ;;  %v3637_v17 = vld [vmem:[#allocation2 + $0x80] sm:$0xff]  ;;  %v3636_v42 = vld [vmem:[#allocation2 + $0x78] sm:$0xff] }
 0x1f7   : > { %v2862_v19 = vshll.u32 %v2349_v53, 16  ;;  %v3301_v18 = vsel %vm1921_vm1, %v1952_v10, %v3300_v40  ;;  %v2355_v10 = vpack.c.bf16 %v2323_v34, %v2323_v34  ;;  %v3309_v21 = vrot.slane %v2349_v53, 1 }
 0x1f8   : > { %v2886_v5 = vshll.u32 %v2353_v15, 16  ;;  %v2895_v58 = vrot.slane %v2893_v30, 1  ;;  %v7711_v3 = vpack.c.bf16 %v3629_v38, %v3629_v38  ;;  %v8730_v63 = vrot.slane %v7478_v56, 1  ;;  %v3645_v38 = vld [vmem:[#allocation2 + $0xc0] sm:$0xff] }
 0x1f9   : > { %6409 = vmatpush3.bf16.msra.mxu1 %v6751_v49  ;;  %6453 = vmatpush3.bf16.msra.mxu0 %v6756_v8  ;;  %v2351_v49 = vpack.c.bf16 %v2317_v47, %v2317_v47  ;;  %v3303_v8 = vrot.slane %v7655_v12, 1  ;;  %v2864_v46 = vrot.slane %v2862_v19, 1  ;;  %v2898_v62 = vshll.u32 %v2355_v10, 16  ;;  %v3627_v12 = vld [vmem:[#allocation2 + $0x30] sm:$0xff]  ;;  %v6763_v47 = vld [vmem:[#allocation9 + $0x230] sm:$0xff]  }
 0x1fa   : > { %6410 = vmatprep.subr.bf16.mxu1 %v6754_v25  ;;  %6454 = vmatprep.subr.bf16.mxu0 %v6758_v31  ;;  %v3310_v41 = vsel %vm1921_vm1, %v1961_v52, %v3309_v21  ;;  %v3317_v33 = vrot.slane %v7607_v43, 1  ;;  %v3318_v53 = vrot.slane %v2355_v10, 1  ;;  %v3643_v21 = vld [vmem:[#allocation2 + $0xb0] sm:$0xff] }
 0x1fb   : > { %6375 = vmatmul.mubr.bf16.gmra.mxu0 %v3289_v14  ;;  %6331 = vmatmul.mubr.bf16.gmra.mxu1 %v2805_v48  ;;  %v2874_v13 = vshll.u32 %v2351_v49, 16  ;;  %v3304_v24 = vsel %vm1921_vm1, %v1955_v2, %v3303_v8  ;;  %v2865_v23 = vsel %vm1358_vm0, %v7488_v7, %v2864_v46  ;;  %v2891_v7 = vshrl.u32 %v7607_v43, 16  ;;  %v3639_v8 = vld [vmem:[#allocation2 + $0x90] sm:$0xff] }
 0x1fc   : > { %6378 = vmatprep.mubr.bf16.mxu0 %v3292_v9  ;;  %6334 = vmatprep.mubr.bf16.mxu1 %v2817_v11  ;;  %v3312_v29 = vrot.slane %v2351_v49, 1  ;;  %v2900_v48 = vrot.slane %v2898_v62, 1  ;;  %v3634_v11 = vld [vmem:[#allocation2 + $0x68] sm:$0xff]  ;;  %v3319_v59 = vsel %vm1921_vm1, %v3317_v33, %v3318_v53  ;;  %v7735_v43 = vpack.c.bf16 %v3637_v17, %v3636_v42  ;;  %v3649_v42 = vld [vmem:[#allocation2 + $0xe0] sm:$0xff] }
 0x1fd   : > { %6411 = vmatpush3.bf16.msra.mxu1 %v6754_v25  ;;  %6455 = vmatpush3.bf16.msra.mxu0 %v6758_v31  ;;  %v2876_v57 = vrot.slane %v2874_v13, 1  ;;  %v2888_v25 = vrot.slane %v2886_v5, 1  ;;  %v3628_v31 = vld [vmem:[#allocation2 + $0x38] sm:$0xff]  ;;  %v3646_v62 = vld [vmem:[#allocation2 + $0xc8] sm:$0xff] }
 0x1fe   : > { %6412 = vmatprep.subr.bf16.mxu1 %v6757_v51  ;;  %6456 = vmatprep.subr.bf16.mxu0 %v6759_v4  ;;  %v7708_v28 = vpack.c.bf16 %v3628_v31, %v3627_v12  ;;  %v4100_v30 = vshll.u32 %v7735_v43, 16 }
 0x1ff   : > { %v2877_v2 = vsel %vm1358_vm0, %v7493_v32, %v2876_v57  ;;  %v2889_v14 = vsel %vm1358_vm0, %v7503_v54, %v2888_v25  ;;  %v2896_v32 = vor.u32 %v2895_v58, %v2891_v7  ;;  %v3313_v54 = vsel %vm1921_vm1, %v1964_v35, %v3312_v29  ;;  %v6764_v57 = vld [vmem:[#allocation9 + $0x228] sm:$0xff]   ;;  %v3641_v25 = vld [vmem:[#allocation2 + $0xa0] sm:$0x3]  ;;  %v3642_v58 = vld [vmem:[#allocation2 + $0xa8] sm:$0xff] }
 0x200   : > { %v4064_v9 = vshll.u32 %v7708_v28, 16  ;;  %v4062_v1 = vshrl.u32 %v7708_v28, 16  ;;  %v4069_v35 = vshll.u32 %v7711_v3, 16  ;;  %v7749_v7 = vpack.c.bf16 %v3638_v39, %v3638_v39 }
 0x201   : > { %6413 = vmatpush3.bf16.msra.mxu1 %v6757_v51  ;;  %6457 = vmatpush3.bf16.msra.mxu0 %v6759_v4  ;;  %v3315_v51 = vrot.slane %v2353_v15, 1  ;;  %v3631_v4 = vld [vmem:[#allocation2 + $0x50] sm:$0xff]  ;;  %v2901_v52 = vsel %vm1358_vm0, %v2896_v32, %v2900_v48  ;;  %v7753_v29 = vpack.c.bf16 %v3641_v25, %v3641_v25  ;;  %v4102_v48 = vrot.slane %v4100_v30, 1  ;;  %v6767_v30 = vld [vmem:[#allocation9 + $0x210] sm:$0xff]  }
 0x202   : > { %6458 = vmatprep.subr.bf16.mxu0 %v6760_v27  ;;  %6494 = vmatprep.subr.bf16.mxu1 %v7670_v26  ;;  %v7717_v36 = vpack.c.bf16 %v3631_v4, %v3630_v55  ;;  %v4066_v6 = vrot.slane %v4064_v9, 1  ;;  %v4071_v19 = vrot.slane %v4069_v35, 1 }
 0x203   : > { %6379 = vmatmul.mubr.bf16.gmra.mxu0 %v3295_v37  ;;  %6335 = vmatmul.mubr.bf16.gmra.mxu1 %v2829_v60  ;;  %v3316_v45 = vsel %vm1921_vm1, %v8730_v63, %v3315_v51  ;;  %v3635_v60 = vld [vmem:[#allocation2 + $0x70] sm:$0x3]  ;;  %v4105_v63 = vshll.u32 %v7749_v7, 16 }
 0x204   : > { %6382 = vmatprep.mubr.bf16.mxu0 %v3298_v44  ;;  %6338 = vmatprep.mubr.bf16.mxu1 %v2841_v16  ;;  %v4076_v37 = vshll.u32 %v7717_v36, 16  ;;  %v4067_v56 = vor.u32 %v4066_v6, %v4062_v1  ;;  %v7730_v44 = vpack.c.bf16 %v3632_v22, %v3632_v22  ;;  %v3640_v16 = vld [vmem:[#allocation2 + $0x98] sm:$0xff]  ;;  %v7732_v40 = vpack.c.bf16 %v3635_v60, %v3635_v60  ;;  %v6765_v51 = vld [vmem:[#allocation9 + $0x220] sm:$0xff]  }
 0x205   : > { %6459 = vmatpush3.bf16.msra.mxu0 %v6760_v27  ;;  %v7722_v27 = vpack.c.bf16 %v3634_v11, %v3633_v61  ;;  %v4074_v13 = vshrl.u32 %v7717_v36, 16  ;;  %v4098_v61 = vshrl.u32 %v7735_v43, 16  ;;  %v4117_v22 = vshll.u32 %v7753_v29, 16  ;;  %v3647_v60 = vld [vmem:[#allocation2 + $0xd0] sm:$0x3] }
 0x206   : > { %6460 = vmatprep.subr.bf16.mxu0 %v6762_v0  ;;  %v4078_v49 = vrot.slane %v4076_v37, 1  ;;  %v4072_v15 = vsel %vm1358_vm0, %v4067_v56, %v4071_v19  ;;  %v4093_v34 = vshll.u32 %v7732_v40, 16  ;;  %v6766_v56 = vld [vmem:[#allocation9 + $0x218] sm:$0xff]  }
 0x207   : > { %v4086_v5 = vshrl.u32 %v7722_v27, 16  ;;  %v4103_v37 = vor.u32 %v4102_v48, %v4098_v61  ;;  %v3655_v61 = vld [vmem:[#allocation2 + $0x110] sm:$0xff] }
 0x208   : > { %v4079_v10 = vor.u32 %v4078_v49, %v4074_v13 }
 0x209   : > { %6461 = vmatpush3.bf16.msra.mxu0 %v6762_v0  ;;  %v4088_v0 = vshll.u32 %v7722_v27, 16 }
 0x20b   : > { %6383 = vmatmul.mubr.bf16.gmra.mxu0 %v3301_v18  ;;  %6339 = vmatmul.mubr.bf16.gmra.mxu1 %v2853_v20  ;;  %v4090_v18 = vrot.slane %v4088_v0, 1  ;;  %v7739_v20 = vpack.c.bf16 %v3640_v16, %v3639_v8  ;;  %v4107_v8 = vrot.slane %v4105_v63, 1  ;;  %v6768_v63 = vld [vmem:[#allocation9 + $0x208] sm:$0xff]  }
 0x20c   : > { %6386 = vmatprep.mubr.bf16.mxu0 %v3304_v24  ;;  %6342 = vmatprep.mubr.bf16.mxu1 %v2865_v23  ;;  %v4081_v24 = vshll.u32 %v7730_v44, 16 }
 0x20d   : > { %v4091_v31 = vor.u32 %v4090_v18, %v4086_v5  ;;  %v4110_v35 = vshrl.u32 %v7739_v20, 16  ;;  %v7775_v5 = vpack.c.bf16 %v3647_v60, %v3647_v60  ;;  %v4108_v39 = vsel %vm1358_vm0, %v4103_v37, %v4107_v8 }
 0x213   : > { %6387 = vmatmul.mubr.bf16.gmra.mxu0 %v3307_v50  ;;  %6343 = vmatmul.mubr.bf16.gmra.mxu1 %v2877_v2  ;;  %v4112_v50 = vshll.u32 %v7739_v20, 16  ;;  %v4083_v2 = vrot.slane %v4081_v24, 1  ;;  %v4119_v24 = vrot.slane %v4117_v22, 1 }
 0x214   : > { %6390 = vmatprep.mubr.bf16.mxu0 %v3310_v41  ;;  %6346 = vmatprep.mubr.bf16.mxu1 %v2889_v14  ;;  %v4095_v41 = vrot.slane %v4093_v34, 1  ;;  %v7751_v14 = vpack.c.bf16 %v3643_v21, %v3642_v58  ;;  %v3650_v58 = vld [vmem:[#allocation2 + $0xe8] sm:$0x3] }
 0x215   : > { %v4084_v32 = vsel %vm1358_vm0, %v4079_v10, %v4083_v2  ;;  %v4114_v55 = vrot.slane %v4112_v50, 1 }
 0x216   : > { %v4096_v11 = vsel %vm1358_vm0, %v4091_v31, %v4095_v41  ;;  %v4124_v33 = vshll.u32 %v7751_v14, 16 }
 0x217   : > { %v4115_v16 = vor.u32 %v4114_v55, %v4110_v35 }
 0x21b   : > { %6391 = vmatmul.mubr.bf16.gmra.mxu0 %v3313_v54  ;;  %6347 = vmatmul.mubr.bf16.gmra.mxu1 %v2901_v52  ;;  %v7758_v54 = vpack.c.bf16 %v3646_v62, %v3645_v38 }
 0x21c   : > { %6394 = vmatprep.mubr.bf16.mxu0 %v3316_v45  ;;  %6414 = vmatprep.mubr.bf16.mxu1 %v7708_v28  ;;  %v3644_v45 = vld [vmem:[#allocation2 + $0xb8] sm:$0x3] }
 0x21d   : > { %v7770_v19 = vpack.c.bf16 %v3644_v45, %v3644_v45  ;;  %v4134_v38 = vshrl.u32 %v7758_v54, 16 }
 0x21f   : > { %v4129_v31 = vshll.u32 %v7770_v19, 16 }
 0x221   : > { %v4131_v35 = vrot.slane %v4129_v31, 1 }
 0x223   : > { %6395 = vmatmul.mubr.bf16.gmra.mxu0 %v3319_v59  ;;  %v6128_v46 = vpop.f32.mrf.mxu1  ;;  %6415 = vmatmul.mubr.bf16.vlgmr.msra.gmra.mxu1 %v7717_v36  ;;  %v4136_v59 = vshll.u32 %v7758_v54, 16 }
 0x224   : > { %6462 = vmatprep.mubr.bf16.mxu0 %v4072_v15  ;;  %6495 = vmatpush3.bf16.msra.mxu1 %v7670_v26  ;;  %v3652_v15 = vld [vmem:[#allocation2 + $0xf8] sm:$0xff] }
 0x225   : > { %6418 = vmatprep.mubr.bf16.mxu1 %v7722_v27  ;;  %v1135_v23 = vpop.f32.mrf.mxu1  ;;  %6496 = vmatprep.subr.bf16.mxu1 %v6763_v47  ;;  %v4138_v50 = vrot.slane %v4136_v59, 1 }
 0x227   : > { %v6129_v26 = vpop.f32.mrf.mxu1  ;;  %v4139_v22 = vor.u32 %v4138_v50, %v4134_v38  ;;  %v3659_v50 = vld [vmem:[#allocation2 + $0x130] sm:$0x3] }
 0x228   : > { %6497 = vmatpush3.bf16.msra.mxu1 %v6763_v47  ;;  %v3648_v47 = vld [vmem:[#allocation2 + $0xd8] sm:$0xff] }
 0x229   : > { %v1138_v12 = vpop.f32.mrf.mxu1  ;;  %6498 = vmatprep.subr.bf16.mxu1 %v6764_v57  ;;  %v7781_v10 = vpack.c.bf16 %v3649_v42, %v3648_v47 }
 0x22b   : > { %v6176_v4 = vpop.f32.mrf.mxu0  ;;  %6463 = vmatmul.mubr.bf16.vlgmr.msra.gmra.mxu0 %v4084_v32  ;;  %v6132_v9 = vpop.f32.mrf.mxu1  ;;  %6419 = vmatmul.mubr.bf16.gmra.mxu1 %v7735_v43  ;;  %v4148_v55 = vshll.u32 %v7781_v10, 16  ;;  %v4146_v59 = vshrl.u32 %v7781_v10, 16 }
 0x22c   : > { %v7760_v52 = vadd.f32 %v6176_v4, %v6128_v46  ;;  %6466 = vmatprep.mubr.bf16.mxu0 %v4096_v11  ;;  %6422 = vmatprep.mubr.bf16.mxu1 %v7739_v20  ;;  %v3651_v46 = vld [vmem:[#allocation2 + $0xf0] sm:$0xff]  ;;  %v7795_v11 = vpack.c.bf16 %v3650_v58, %v3650_v58 }
 0x22d   : > { %v1666_v6 = vpop.f32.mrf.mxu0  ;;  %v1151_v1 = vpop.f32.mrf.mxu1  ;;  %6499 = vmatpush3.bf16.msra.mxu1 %v6764_v57  ;;  %v4122_v57 = vshrl.u32 %v7751_v14, 16  ;;  %v7786_v2 = vpack.c.bf16 %v3652_v15, %v3651_v46  ;;  %v4150_v15 = vrot.slane %v4148_v55, 1 }
 0x22e   : > { %v7768_v53 = vadd.f32 %v1666_v6, %v1135_v23  ;;  %6500 = vmatprep.subr.bf16.mxu1 %v6765_v51  ;;  %v4126_v23 = vrot.slane %v4124_v33, 1 }
 0x22f   : > { %v6177_v17 = vpop.f32.mrf.mxu0  ;;  %v6133_v0 = vpop.f32.mrf.mxu1  ;;  %v4160_v37 = vshll.u32 %v7786_v2, 16  ;;  %v4151_v38 = vor.u32 %v4150_v15, %v4146_v59 }
 0x230   : > { %v7773_v49 = vadd.f32 %v6177_v17, %v6129_v26  ;;  %v4120_v26 = vsel %vm1358_vm0, %v4115_v16, %v4119_v24  ;;  %v4127_v48 = vor.u32 %v4126_v23, %v4122_v57  ;;  %v3656_v24 = vld [vmem:[#allocation2 + $0x118] sm:$0x3]  ;;  %v6769_v23 = vld [vmem:[#allocation9 + $0x200] sm:$0xff]  }
 0x231   : > { %v1669_v18 = vpop.f32.mrf.mxu0  ;;  %v1154_v13 = vpop.f32.mrf.mxu1  ;;  %6501 = vmatpush3.bf16.msra.mxu1 %v6765_v51  ;;  %v4141_v51 = vshll.u32 %v7775_v5, 16 }
 0x232   : > { %v7777_v34 = vadd.f32 %v1669_v18, %v1138_v12  ;;  %6502 = vmatprep.subr.bf16.mxu1 %v6766_v56  ;;  %v3653_v12 = vld [vmem:[#allocation2 + $0x100] sm:$0x3]  ;;  %v4132_v47 = vsel %vm1358_vm0, %v4127_v48, %v4131_v35  ;;  %v4153_v18 = vshll.u32 %v7795_v11, 16 }
 0x233   : > { %v6180_v21 = vpop.f32.mrf.mxu0  ;;  %6467 = vmatmul.mubr.bf16.gmra.mxu0 %v4108_v39  ;;  %v6136_v25 = vpop.f32.mrf.mxu1  ;;  %6423 = vmatmul.mubr.bf16.gmra.mxu1 %v7751_v14  ;;  %v7798_v33 = vpack.c.bf16 %v3653_v12, %v3653_v12  ;;  %v4143_v42 = vrot.slane %v4141_v51, 1 }
 0x234   : > { %v7788_v62 = vadd.f32 %v6180_v21, %v6132_v9  ;;  %6470 = vmatprep.mubr.bf16.mxu0 %v4120_v26  ;;  %6426 = vmatprep.mubr.bf16.mxu1 %v7758_v54  ;;  %v3654_v9 = vld [vmem:[#allocation2 + $0x108] sm:$0xff]  ;;  %v4162_v26 = vrot.slane %v4160_v37, 1  ;;  %v4155_v51 = vrot.slane %v4153_v18, 1  ;;  %v7824_v37 = vpack.c.bf16 %v3659_v50, %v3659_v50 }
 0x235   : > { %v1682_v41 = vpop.f32.mrf.mxu0  ;;  %v1167_v32 = vpop.f32.mrf.mxu1  ;;  %6503 = vmatpush3.bf16.msra.mxu1 %v6766_v56  ;;  %v3658_v56 = vld [vmem:[#allocation2 + $0x128] sm:$0xff]  ;;  %v7805_v8 = vpack.c.bf16 %v3655_v61, %v3654_v9  ;;  %v4144_v21 = vsel %vm1358_vm0, %v4139_v22, %v4143_v42  ;;  %v3660_v9 = vld [vmem:[#allocation2 + $0x138] sm:$0xff]  ;;  %v3661_v61 = vld [vmem:[#allocation2 + $0x140] sm:$0xff] }
 0x236   : > { %v7793_v4 = vadd.f32 %v1682_v41, %v1151_v1  ;;  %6504 = vmatprep.subr.bf16.mxu1 %v6767_v30  ;;  %v3657_v1 = vld [vmem:[#allocation2 + $0x120] sm:$0xff]  ;;  %v7819_v41 = vpack.c.bf16 %v3656_v24, %v3656_v24  ;;  %8733 = vst [vmem:[#allocation20_spill] sm:$0xff] %v7824_v37  ;;  %v7831_v15 = vpack.c.bf16 %v3661_v61, %v3660_v9 }
 0x237   : > { %v6181_v45 = vpop.f32.mrf.mxu0  ;;  %v6137_v6 = vpop.f32.mrf.mxu1  ;;  %v4172_v55 = vshll.u32 %v7805_v8, 16  ;;  %v4170_v42 = vshrl.u32 %v7805_v8, 16 }
 0x238   : > { %v7801_v60 = vadd.f32 %v6181_v45, %v6133_v0  ;;  %v4158_v0 = vshrl.u32 %v7786_v2, 16  ;;  %8732 = vst [vmem:[#allocation19_spill] sm:$0xff] %v7819_v41  ;;  %v4177_v59 = vshll.u32 %v7819_v41, 16  ;;  %8734 = vst [vmem:[#allocation21_spill] sm:$0xff] %v7831_v15 }
 0x239   : > { %v1685_v17 = vpop.f32.mrf.mxu0  ;;  %v1170_v16 = vpop.f32.mrf.mxu1  ;;  %6505 = vmatpush3.bf16.msra.mxu1 %v6767_v30  ;;  %v4165_v30 = vshll.u32 %v7798_v33, 16  ;;  %v4174_v24 = vrot.slane %v4172_v55, 1 }
 0x23a   : > { %v7807_v46 = vadd.f32 %v1685_v17, %v1154_v13  ;;  %6506 = vmatprep.subr.bf16.mxu1 %v6768_v63  ;;  %v7814_v13 = vpack.c.bf16 %v3658_v56, %v3657_v1  ;;  %v4163_v35 = vor.u32 %v4162_v26, %v4158_v0  ;;  %v4156_v0 = vsel %vm1358_vm0, %v4151_v38, %v4155_v51 }
 0x23b   : > { %v6184_v39 = vpop.f32.mrf.mxu0  ;;  %6471 = vmatmul.mubr.bf16.gmra.mxu0 %v4132_v47  ;;  %v6140_v57 = vpop.f32.mrf.mxu1  ;;  %6427 = vmatmul.mubr.bf16.gmra.mxu1 %v7781_v10  ;;  %v4167_v22 = vrot.slane %v4165_v30, 1 }
 0x23c   : > { %8731 = vst [vmem:[#allocation18_spill] sm:$0xff] %v7814_v13  ;;  %v7816_v31 = vadd.f32 %v6184_v39, %v6136_v25  ;;  %6474 = vmatprep.mubr.bf16.mxu0 %v4144_v21  ;;  %6430 = vmatprep.mubr.bf16.mxu1 %v7786_v2  ;;  %v4184_v1 = vshll.u32 %v7814_v13, 16  ;;  %v4182_v39 = vshrl.u32 %v7814_v13, 16 }
 0x23d   : > { %v1698_v58 = vpop.f32.mrf.mxu0  ;;  %v1183_v12 = vpop.f32.mrf.mxu1  ;;  %6507 = vmatpush3.bf16.msra.mxu1 %v6768_v63  ;;  %v3663_v63 = vld [vmem:[#allocation2 + $0x150] sm:$0xff]  ;;  %v4168_v30 = vsel %vm1358_vm0, %v4163_v35, %v4167_v22  ;;  %v4196_v35 = vshll.u32 %v7831_v15, 16  ;;  %v3666_v22 = vld [vmem:[#allocation2 + $0x168] sm:$0xff] }
 0x23e   : > { %v7821_v48 = vadd.f32 %v1698_v58, %v1167_v32  ;;  %6508 = vmatprep.subr.bf16.mxu1 %v6769_v23  ;;  %v3664_v32 = vld [vmem:[#allocation2 + $0x158] sm:$0xff]  ;;  %v4186_v50 = vrot.slane %v4184_v1, 1  ;;  %v4189_v58 = vshll.u32 %v7824_v37, 16  ;;  %v3667_v1 = vld [vmem:[#allocation2 + $0x170] sm:$0xff] }
 0x23f   : > { %v6185_v25 = vpop.f32.mrf.mxu0  ;;  %v6141_v45 = vpop.f32.mrf.mxu1  ;;  %v7840_v9 = vpack.c.bf16 %v3664_v32, %v3663_v63 }
 0x240   : > { %v7827_v56 = vadd.f32 %v6185_v25, %v6137_v6  ;;  %v3662_v6 = vld [vmem:[#allocation2 + $0x148] sm:$0x3]  ;;  %v4175_v25 = vor.u32 %v4174_v24, %v4170_v42  ;;  %v4194_v42 = vshrl.u32 %v7831_v15, 16  ;;  %v7859_v24 = vpack.c.bf16 %v3667_v1, %v3666_v22  ;;  %v3668_v22 = vld [vmem:[#allocation2 + $0x178] sm:$0x3] }
 0x241   : > { %v1701_v17 = vpop.f32.mrf.mxu0  ;;  %v1186_v47 = vpop.f32.mrf.mxu1  ;;  %6509 = vmatpush3.bf16.msra.mxu1 %v6769_v23  ;;  %8735 = vst [vmem:[#allocation22_spill] sm:$0xff] %v7840_v9  ;;  %v3665_v23 = vld [vmem:[#allocation2 + $0x160] sm:$0x3]  ;;  %v7845_v55 = vpack.c.bf16 %v3662_v6, %v3662_v6 }
 0x242   : > { %v7833_v18 = vadd.f32 %v1701_v17, %v1170_v16  ;;  %v4179_v17 = vrot.slane %v4177_v59, 1  ;;  %v3669_v6 = vld [vmem:[#allocation2 + $0x180] sm:$0xff]  ;;  %8740 = vst [vmem:[#allocation27_spill] sm:$0xff] %v7859_v24 }
 0x243   : > { %v6188_v21 = vpop.f32.mrf.mxu0  ;;  %6475 = vmatmul.mubr.bf16.gmra.mxu0 %v4156_v0  ;;  %v6144_v26 = vpop.f32.mrf.mxu1  ;;  %6431 = vmatmul.mubr.bf16.gmra.mxu1 %v7805_v8  ;;  %8736 = vst [vmem:[#allocation23_spill] sm:$0xff] %v7845_v55  ;;  %v4191_v0 = vrot.slane %v4189_v58, 1  ;;  %v4201_v59 = vshll.u32 %v7845_v55, 16  ;;  %v4206_v58 = vshrl.u32 %v7840_v9, 16 }
 0x244   : > { %v7842_v16 = vadd.f32 %v6188_v21, %v6140_v57  ;;  %6478 = vmatprep.mubr.bf16.mxu0 %v4168_v30  ;;  %6434 = vmatprep.mubr.bf16.mxu1 %v7814_v13  ;;  %v4187_v57 = vor.u32 %v4186_v50, %v4182_v39  ;;  %v7850_v21 = vpack.c.bf16 %v3665_v23, %v3665_v23  ;;  %v4208_v30 = vshll.u32 %v7840_v9, 16  ;;  %v3670_v13 = vld [vmem:[#allocation2 + $0x188] sm:$0xff] }
 0x245   : > { %v1714_v38 = vpop.f32.mrf.mxu0  ;;  %v1199_v51 = vpop.f32.mrf.mxu1  ;;  %v4180_v39 = vsel %vm1358_vm0, %v4175_v25, %v4179_v17  ;;  %v4198_v50 = vrot.slane %v4196_v35, 1  ;;  %v7868_v55 = vpack.c.bf16 %v3670_v13, %v3669_v6  ;;  %v3671_v25 = vld [vmem:[#allocation2 + $0x190] sm:$0x3]  ;;  %v4203_v1 = vrot.slane %v4201_v59, 1  ;;  %v3674_v59 = vld [vmem:[#allocation2 + $0x1a8] sm:$0x3] }
 0x246   : > { %v7847_v61 = vadd.f32 %v1714_v38, %v1183_v12  ;;  %8737 = vst [vmem:[#allocation24_spill] sm:$0xff] %v7850_v21 }
 0x247   : > { %v6189_v63 = vpop.f32.mrf.mxu0  ;;  %v6145_v32 = vpop.f32.mrf.mxu1  ;;  %8741 = vst [vmem:[#allocation28_spill] sm:$0xff] %v7868_v55 }
 0x248   : > { %v7853_v37 = vadd.f32 %v6189_v63, %v6141_v45  ;;  %v4192_v63 = vsel %vm1358_vm0, %v4187_v57, %v4191_v0  ;;  %v4220_v57 = vshll.u32 %v7859_v24, 16 }
 0x249   : > { %v1717_v12 = vpop.f32.mrf.mxu0  ;;  %v7855_v38 = vpop.f32.mrf.mxu1 }
 0x24a   : > { %8738 = vst [vmem:[#allocation25_spill] sm:$0xff] %v7853_v37  ;;  %8739 = vst [vmem:[#allocation26_spill] sm:$0xff] %v7855_v38  ;;  %v7861_v41 = vadd.f32 %v1717_v12, %v1186_v47  ;;  %v4210_v38 = vrot.slane %v4208_v30, 1  ;;  %v4213_v37 = vshll.u32 %v7850_v21, 16  ;;  %v6778_v21 = vld [vmem:[#allocation2] sm:$0xff] }
 0x24b   : > { %v6192_v45 = vpop.f32.mrf.mxu0  ;;  %6479 = vmatmul.mubr.bf16.gmra.mxu0 %v4180_v39  ;;  %v6148_v23 = vpop.f32.mrf.mxu1  ;;  %6435 = vmatmul.mubr.bf16.gmra.mxu1 %v7831_v15  ;;  %v4199_v39 = vor.u32 %v4198_v50, %v4194_v42  ;;  %v7875_v15 = vpack.c.bf16 %v3668_v22, %v3668_v22  ;;  %v4218_v22 = vshrl.u32 %v7859_v24, 16 }
 0x24c   : > { %v7870_v47 = vadd.f32 %v6192_v45, %v6144_v26  ;;  %6482 = vmatprep.mubr.bf16.mxu0 %v4192_v63  ;;  %6438 = vmatprep.mubr.bf16.mxu1 %v7840_v9  ;;  %v4211_v30 = vor.u32 %v4210_v38, %v4206_v58  ;;  %v4215_v6 = vrot.slane %v4213_v37, 1  ;;  %v7878_v26 = vpack.c.bf16 %v3671_v25, %v3671_v25 }
 0x24d   : > { %v1730_v17 = vpop.f32.mrf.mxu0  ;;  %v1215_v35 = vpop.f32.mrf.mxu1  ;;  %8742 = vst [vmem:[#allocation29_spill] sm:$0xff] %v7875_v15  ;;  %v4232_v45 = vshll.u32 %v7868_v55, 16  ;;  %v7883_v9 = vpack.c.bf16 %v6778_v21, %v6778_v21  ;;  %v4204_v50 = vsel %vm1358_vm0, %v4199_v39, %v4203_v1  ;;  %v4222_v38 = vrot.slane %v4220_v57, 1 }
 0x24e   : > { %v7873_v12 = vadd.f32 %v1730_v17, %v1199_v51  ;;  %8743 = vst [vmem:[#allocation30_spill] sm:$0xff] %v7878_v26  ;;  %v4225_v37 = vshll.u32 %v7875_v15, 16  ;;  %v4230_v21 = vshrl.u32 %v7868_v55, 16  ;;  %v7899_v1 = vpack.c.bf16 %v3674_v59, %v3674_v59 }
 0x24f   : > { %v6193_v0 = vpop.f32.mrf.mxu0  ;;  %v6149_v13 = vpop.f32.mrf.mxu1  ;;  %v4234_v17 = vrot.slane %v4232_v45, 1  ;;  %v4244_v39 = vshll.u32 %v7883_v9, 16  ;;  %v4242_v59 = vshrl.u32 %v7883_v9, 16 }
 0x250   : > { %v7881_v63 = vadd.f32 %v6193_v0, %v6145_v32  ;;  %v4216_v32 = vsel %vm1358_vm0, %v4211_v30, %v4215_v6  ;;  %v4237_v0 = vshll.u32 %v7878_v26, 16  ;;  %v4227_v30 = vrot.slane %v4225_v37, 1 }
 0x251   : > { %v7885_v51 = vpop.f32.mrf.mxu0  ;;  %v7887_v42 = vpop.f32.mrf.mxu1  ;;  %v4235_v45 = vor.u32 %v4234_v17, %v4230_v21  ;;  %v4246_v26 = vrot.slane %v4244_v39, 1 }
 0x252   : > { %8744 = vst [vmem:[#allocation31_spill] sm:$0xff] %v7881_v63  ;;  %8745 = vst [vmem:[#allocation32_spill] sm:$0xff] %v7885_v51  ;;  %v4239_v51 = vrot.slane %v4237_v0, 1 }
 0x253   : > { %8746 = vst [vmem:[#allocation33_spill] sm:$0xff] %v7887_v42  ;;  %v6196_v58 = vpop.f32.mrf.mxu0  ;;  %6483 = vmatmul.mubr.bf16.gmra.mxu0 %v4204_v50  ;;  %v6152_v25 = vpop.f32.mrf.mxu1  ;;  %6439 = vmatmul.mubr.bf16.gmra.mxu1 %v7859_v24  ;;  %v4223_v24 = vor.u32 %v4222_v38, %v4218_v22  ;;  %v4247_v21 = vor.u32 %v4246_v26, %v4242_v59 }
 0x254   : > { %v7896_v42 = vadd.f32 %v6196_v58, %v6148_v23  ;;  %6486 = vmatprep.mubr.bf16.mxu0 %v4216_v32  ;;  %6442 = vmatprep.mubr.bf16.mxu1 %v7868_v55  ;;  %v4623_v23 = vrot.slane %v7708_v28, 1  ;;  %v4624_v58 = vrot.slane %v7711_v3, 1  ;;  %v4249_v55 = vshll.u32 %v7899_v1, 16 }
 0x255   : > { %v1746_v57 = vpop.f32.mrf.mxu0  ;;  %v1231_v50 = vpop.f32.mrf.mxu1  ;;  %v4228_v22 = vsel %vm1358_vm0, %v4223_v24, %v4227_v30  ;;  %v4240_v28 = vsel %vm1358_vm0, %v4235_v45, %v4239_v51  ;;  %v4626_v24 = vrot.slane %v7717_v36, 1  ;;  %v4627_v30 = vrot.slane %v7730_v44, 1 }
 0x256   : > { %8747 = vst [vmem:[#allocation34_spill] sm:$0xff] %v7896_v42  ;;  %v7902_v15 = vadd.f32 %v1746_v57, %v1215_v35  ;;  %v4625_v3 = vsel %vm1921_vm1, %v4623_v23, %v4624_v58  ;;  %v4251_v17 = vrot.slane %v4249_v55, 1  ;;  %v4629_v51 = vrot.slane %v7722_v27, 1 }
 0x257   : > { %v6197_v6 = vpop.f32.mrf.mxu0  ;;  %v6153_v63 = vpop.f32.mrf.mxu1  ;;  %v4630_v45 = vrot.slane %v7732_v40, 1 }
 0x258   : > { %v7906_v32 = vadd.f32 %v6197_v6, %v6149_v13  ;;  %v4252_v23 = vsel %vm1358_vm0, %v4247_v21, %v4251_v17  ;;  %v4633_v21 = vrot.slane %v7749_v7, 1 }
 0x259   : > { %v7910_v42 = vpop.f32.mrf.mxu0  ;;  %v7912_v35 = vpop.f32.mrf.mxu1  ;;  %v4631_v44 = vsel %vm1921_vm1, %v4629_v51, %v4630_v45 }
 0x25b   : > { %v6200_v38 = vpop.f32.mrf.mxu0  ;;  %6487 = vmatmul.mubr.bf16.gmra.mxu0 %v4228_v22  ;;  %v6156_v37 = vpop.f32.mrf.mxu1  ;;  %6443 = vmatmul.mubr.bf16.gmra.mxu1 %v7883_v9 }
 0x25c   : > { %v7918_v13 = vadd.f32 %v6200_v38, %v6152_v25  ;;  %6490 = vmatprep.mubr.bf16.mxu0 %v4240_v28  ;;  %6510 = vmatprep.mubr.bf16.mxu1 %v4625_v3  ;;  %v4632_v3 = vrot.slane %v7735_v43, 1 }
 0x25d   : > { %v1762_v0 = vpop.f32.mrf.mxu0  ;;  %v1247_v39 = vpop.f32.mrf.mxu1 }
 0x25e   : > { %v7920_v57 = vadd.f32 %v1762_v0, %v1231_v50  ;;  %v4628_v50 = vsel %vm1921_vm1, %v4626_v24, %v4627_v30  ;;  %v4635_v24 = vrot.slane %v7739_v20, 1  ;;  %v4634_v43 = vsel %vm1921_vm1, %v4632_v3, %v4633_v21 }
 0x25f   : > { %v6201_v6 = vpop.f32.mrf.mxu0  ;;  %v6157_v22 = vpop.f32.mrf.mxu1 }
 0x260   : > { %v7926_v25 = vadd.f32 %v6201_v6, %v6153_v63 }
 0x261   : > { %v7929_v26 = vpop.f32.mrf.mxu0  ;;  %v7931_v55 = vpop.f32.mrf.mxu1 }
 0x263   : > { %v6204_v58 = vpop.f32.mrf.mxu0  ;;  %6491 = vmatmul.mubr.bf16.gmra.mxu0 %v4252_v23  ;;  %v6224_v36 = vpop.f32.mrf.mxu1  ;;  %6511 = vmatmul.mubr.bf16.vlgmr.msra.gmra.mxu1 %v4628_v50 }
 0x264   : > { %v7935_v59 = vadd.f32 %v6204_v58, %v6156_v37  ;;  %v2214_v27 = vadd.f32 %v6224_v36, %v7760_v52  ;;  %6514 = vmatprep.mubr.bf16.mxu1 %v4631_v44  ;;  %v4636_v37 = vrot.slane %v7753_v29, 1  ;;  %v4639_v58 = vrot.slane %v7770_v19, 1 }
 0x265   : > { %v1778_v40 = vpop.f32.mrf.mxu0  ;;  %v2085_v63 = vpop.f32.mrf.mxu1 }
 0x266   : > { %v7938_v38 = vadd.f32 %v1778_v40, %v1247_v39  ;;  %v2212_v28 = vadd.f32 %v2085_v63, %v7768_v53  ;;  %v4637_v45 = vsel %vm1921_vm1, %v4635_v24, %v4636_v37  ;;  %v4641_v40 = vrot.slane %v7758_v54, 1 }
 0x267   : > { %v6205_v17 = vpop.f32.mrf.mxu0  ;;  %v6225_v0 = vpop.f32.mrf.mxu1 }
 0x268   : > { %v7945_v30 = vadd.f32 %v6205_v17, %v6157_v22  ;;  %v2215_v52 = vadd.f32 %v6225_v0, %v7773_v49 }
 0x269   : > { %v7948_v6 = vpop.f32.mrf.mxu0  ;;  %v2088_v39 = vpop.f32.mrf.mxu1 }
 0x26a   : > { %v7951_v51 = vadd.f32 %v2088_v39, %v7777_v34  ;;  %v4638_v34 = vrot.slane %v7751_v14, 1  ;;  %v6770_v39 = vld [vmem:[#allocation10 + $0x38] sm:$0xff]  }
 0x26b   : > { %v6272_v53 = vpop.f32.mrf.mxu0  ;;  %v6228_v7 = vpop.f32.mrf.mxu1  ;;  %6515 = vmatmul.mubr.bf16.gmra.mxu1 %v4634_v43  ;;  %6542 = vmatprep.subr.bf16.mxu0 %v6770_v39 }
 0x26c   : > { %v7955_v20 = vadd.f32 %v6272_v53, %v2214_v27  ;;  %v2218_v29 = vadd.f32 %v6228_v7, %v7788_v62  ;;  %6518 = vmatprep.mubr.bf16.mxu1 %v4637_v45  ;;  %v4642_v27 = vrot.slane %v7775_v5, 1  ;;  %v4640_v14 = vsel %vm1921_vm1, %v4638_v34, %v4639_v58  ;;  %6543 = vmatpush3.bf16.msra.mxu0 %v6770_v39 }
 0x26d   : > { %v2487_v22 = vpop.f32.mrf.mxu0  ;;  %v2101_v49 = vpop.f32.mrf.mxu1  ;;  %v4647_v7 = vrot.slane %v7786_v2, 1  ;;  %v4648_v45 = vrot.slane %v7798_v33, 1 }
 0x26e   : > { %v7958_v23 = vadd.f32 %v2487_v22, %v2212_v28  ;;  %v2216_v50 = vadd.f32 %v2101_v49, %v7793_v4  ;;  %v4643_v17 = vsel %vm1921_vm1, %v4641_v40, %v4642_v27  ;;  %v8748_v40 = vld [vmem:[#allocation19_spill] sm:$0xff] }
 0x26f   : > { %v6273_v36 = vpop.f32.mrf.mxu0  ;;  %v6229_v44 = vpop.f32.mrf.mxu1  ;;  %v4649_v2 = vsel %vm1921_vm1, %v4647_v7, %v4648_v45  ;;  %v4651_v27 = vrot.slane %v8748_v40, 1  ;;  %v8754_v40 = vld [vmem:[#allocation22_spill] sm:$0xff] }
 0x270   : > { %v7965_v63 = vadd.f32 %v6273_v36, %v2215_v52  ;;  %v2219_v62 = vadd.f32 %v6229_v44, %v7801_v60  ;;  %v4645_v52 = vrot.slane %v7795_v11, 1 }
 0x271   : > { %v7968_v3 = vpop.f32.mrf.mxu0  ;;  %v2104_v28 = vpop.f32.mrf.mxu1 }
 0x272   : > { %v7971_v21 = vadd.f32 %v2104_v28, %v7807_v46  ;;  %v4644_v46 = vrot.slane %v7781_v10, 1 }
 0x273   : > { %v6276_v4 = vpop.f32.mrf.mxu0  ;;  %v6232_v19 = vpop.f32.mrf.mxu1  ;;  %6519 = vmatmul.mubr.bf16.gmra.mxu1 %v4640_v14 }
 0x274   : > { %v7975_v54 = vadd.f32 %v6276_v4, %v2218_v29  ;;  %v2222_v5 = vadd.f32 %v6232_v19, %v7816_v31  ;;  %6522 = vmatprep.mubr.bf16.mxu1 %v4643_v17  ;;  %v4646_v11 = vsel %vm1921_vm1, %v4644_v46, %v4645_v52  ;;  %v8749_v4 = vld [vmem:[#allocation18_spill] sm:$0xff]  ;;  %v8750_v17 = vld [vmem:[#allocation20_spill] sm:$0xff] }
 0x275   : > { %v2503_v0 = vpop.f32.mrf.mxu0  ;;  %v2117_v60 = vpop.f32.mrf.mxu1  ;;  %v4653_v19 = vrot.slane %v8749_v4, 1 }
 0x276   : > { %v7978_v24 = vadd.f32 %v2503_v0, %v2216_v50  ;;  %v2220_v37 = vadd.f32 %v2117_v60, %v7821_v48 }
 0x277   : > { %v6277_v43 = vpop.f32.mrf.mxu0  ;;  %v6233_v53 = vpop.f32.mrf.mxu1 }
 0x278   : > { %v7985_v29 = vadd.f32 %v6277_v43, %v2219_v62  ;;  %v2223_v31 = vadd.f32 %v6233_v53, %v7827_v56  ;;  %v6771_v62 = vld [vmem:[#allocation10 + $0x30] sm:$0xff]  }
 0x279   : > { %v7988_v22 = vpop.f32.mrf.mxu0  ;;  %v2120_v49 = vpop.f32.mrf.mxu1  ;;  %6544 = vmatprep.subr.bf16.mxu0 %v6771_v62 }
 0x27a   : > { %v7991_v10 = vadd.f32 %v2120_v49, %v7833_v18  ;;  %v4650_v18 = vrot.slane %v7805_v8, 1  ;;  %6545 = vmatpush3.bf16.msra.mxu0 %v6771_v62 }
 0x27b   : > { %v6280_v48 = vpop.f32.mrf.mxu0  ;;  %v6236_v50 = vpop.f32.mrf.mxu1  ;;  %6523 = vmatmul.mubr.bf16.gmra.mxu1 %v4646_v11 }
 0x27c   : > { %v7995_v33 = vadd.f32 %v6280_v48, %v2222_v5  ;;  %v2226_v34 = vadd.f32 %v6236_v50, %v7842_v16  ;;  %6526 = vmatprep.mubr.bf16.mxu1 %v4649_v2  ;;  %v4654_v5 = vrot.slane %v8750_v17, 1  ;;  %v8751_v16 = vld [vmem:[#allocation25_spill] sm:$0xff]  ;;  %v8753_v50 = vld [vmem:[#allocation23_spill] sm:$0xff] }
 0x27d   : > { %v2519_v56 = vpop.f32.mrf.mxu0  ;;  %v2133_v58 = vpop.f32.mrf.mxu1  ;;  %v4657_v2 = vrot.slane %v8753_v50, 1 }
 0x27e   : > { %v7998_v36 = vadd.f32 %v2519_v56, %v2220_v37  ;;  %v2224_v44 = vadd.f32 %v2133_v58, %v7847_v61  ;;  %v4652_v61 = vsel %vm1921_vm1, %v4650_v18, %v4651_v27  ;;  %v4655_v43 = vsel %vm1921_vm1, %v4653_v19, %v4654_v5  ;;  %v6772_v56 = vld [vmem:[#allocation10 + $0x28] sm:$0xff]  }
 0x27f   : > { %v6281_v28 = vpop.f32.mrf.mxu0  ;;  %v6237_v14 = vpop.f32.mrf.mxu1  ;;  %v4659_v27 = vrot.slane %v8754_v40, 1  ;;  %6546 = vmatprep.subr.bf16.mxu0 %v6772_v56 }
 0x280   : > { %v8005_v0 = vadd.f32 %v6281_v28, %v2223_v31  ;;  %v2227_v60 = vadd.f32 %v6237_v14, %v8751_v16  ;;  %v8756_v28 = vld [vmem:[#allocation26_spill] sm:$0xff]  ;;  %6547 = vmatpush3.bf16.msra.mxu0 %v6772_v56  ;;  %v8760_v56 = vld [vmem:[#allocation27_spill] sm:$0xff] }
 0x281   : > { %v8008_v37 = vpop.f32.mrf.mxu0  ;;  %v2136_v46 = vpop.f32.mrf.mxu1 }
 0x282   : > { %v8011_v8 = vadd.f32 %v2136_v46, %v7861_v41  ;;  %v8752_v41 = vld [vmem:[#allocation21_spill] sm:$0xff] }
 0x283   : > { %v6284_v52 = vpop.f32.mrf.mxu0  ;;  %v6240_v39 = vpop.f32.mrf.mxu1  ;;  %6527 = vmatmul.mubr.bf16.gmra.mxu1 %v4652_v61  ;;  %v4656_v48 = vrot.slane %v8752_v41, 1 }
 0x284   : > { %v8015_v53 = vadd.f32 %v6284_v52, %v2226_v34  ;;  %v2230_v7 = vadd.f32 %v6240_v39, %v7870_v47  ;;  %6530 = vmatprep.mubr.bf16.mxu1 %v4655_v43  ;;  %v8755_v34 = vld [vmem:[#allocation24_spill] sm:$0xff]  ;;  %v8759_v43 = vld [vmem:[#allocation34_spill] sm:$0xff] }
 0x285   : > { %v2535_v45 = vpop.f32.mrf.mxu0  ;;  %v2149_v31 = vpop.f32.mrf.mxu1  ;;  %v4660_v62 = vrot.slane %v8755_v34, 1  ;;  %v8757_v47 = vld [vmem:[#allocation32_spill] sm:$0xff]  ;;  %v4658_v16 = vsel %vm1921_vm1, %v4656_v48, %v4657_v2  ;;  %v6773_v2 = vld [vmem:[#allocation10 + $0x20] sm:$0xff]  }
 0x286   : > { %v8018_v49 = vadd.f32 %v2535_v45, %v2224_v44  ;;  %v2228_v11 = vadd.f32 %v2149_v31, %v7873_v12  ;;  %v1810_v14 = vadd.f32 %v8757_v47, %v8756_v28  ;;  %v8758_v44 = vld [vmem:[#allocation31_spill] sm:$0xff]  ;;  %v8762_v28 = vld [vmem:[#allocation28_spill] sm:$0xff]  ;;  %v8764_v47 = vld [vmem:[#allocation33_spill] sm:$0xff]  ;;  %6548 = vmatprep.subr.bf16.mxu0 %v6773_v2 }
 0x287   : > { %v6285_v58 = vpop.f32.mrf.mxu0  ;;  %v6241_v18 = vpop.f32.mrf.mxu1  ;;  %v4661_v52 = vsel %vm1921_vm1, %v4659_v27, %v4660_v62  ;;  %v4665_v27 = vrot.slane %v8762_v28, 1  ;;  %6549 = vmatpush3.bf16.msra.mxu0 %v6773_v2 }
 0x288   : > { %v8027_v4 = vadd.f32 %v6285_v58, %v2227_v60  ;;  %v2231_v19 = vadd.f32 %v6241_v18, %v8758_v44  ;;  %v4662_v58 = vrot.slane %v8760_v56, 1  ;;  %v8761_v18 = vld [vmem:[#allocation29_spill] sm:$0xff] }
 0x289   : > { %v8030_v12 = vpop.f32.mrf.mxu0  ;;  %v2152_v17 = vpop.f32.mrf.mxu1  ;;  %v4663_v48 = vrot.slane %v8761_v18, 1 }
 0x28a   : > { %v2229_v5 = vadd.f32 %v2152_v17, %v1810_v14  ;;  %v1814_v14 = vadd.f32 %v7910_v42, %v8764_v47 }
 0x28b   : > { %v6288_v46 = vpop.f32.mrf.mxu0  ;;  %v6244_v61 = vpop.f32.mrf.mxu1  ;;  %6531 = vmatmul.mubr.bf16.gmra.mxu1 %v4658_v16 }
 0x28c   : > { %v8034_v39 = vadd.f32 %v6288_v46, %v2230_v7  ;;  %v2234_v60 = vadd.f32 %v6244_v61, %v8759_v43  ;;  %6534 = vmatprep.mubr.bf16.mxu1 %v4661_v52  ;;  %v8763_v7 = vld [vmem:[#allocation30_spill] sm:$0xff]  ;;  %v4664_v61 = vsel %vm1921_vm1, %v4662_v58, %v4663_v48  ;;  %v6774_v48 = vld [vmem:[#allocation10 + $0x18] sm:$0xff]  }
 0x28d   : > { %v2551_v45 = vpop.f32.mrf.mxu0  ;;  %v2165_v31 = vpop.f32.mrf.mxu1  ;;  %v4666_v62 = vrot.slane %v8763_v7, 1  ;;  %6550 = vmatprep.subr.bf16.mxu0 %v6774_v48 }
 0x28e   : > { %v8037_v41 = vadd.f32 %v2551_v45, %v2228_v11  ;;  %v2232_v50 = vadd.f32 %v2165_v31, %v7902_v15  ;;  %6551 = vmatpush3.bf16.msra.mxu0 %v6774_v48 }
 0x28f   : > { %v6289_v40 = vpop.f32.mrf.mxu0  ;;  %v6245_v34 = vpop.f32.mrf.mxu1  ;;  %v4667_v45 = vsel %vm1921_vm1, %v4665_v27, %v4666_v62 }
 0x290   : > { %v8046_v44 = vadd.f32 %v6289_v40, %v2231_v19  ;;  %v2235_v11 = vadd.f32 %v6245_v34, %v7906_v32  ;;  %v4668_v32 = vrot.slane %v7883_v9, 1  ;;  %v4669_v19 = vrot.slane %v7899_v1, 1 }
 0x291   : > { %v2554_v15 = vpop.f32.mrf.mxu0  ;;  %v2168_v17 = vpop.f32.mrf.mxu1 }
 0x292   : > { %v8049_v16 = vadd.f32 %v2554_v15, %v2229_v5  ;;  %v2233_v46 = vadd.f32 %v2168_v17, %v1814_v14  ;;  %v4670_v9 = vsel %vm1921_vm1, %v4668_v32, %v4669_v19 }
 0x293   : > { %v6292_v52 = vpop.f32.mrf.mxu0  ;;  %v6248_v43 = vpop.f32.mrf.mxu1  ;;  %6535 = vmatmul.mubr.bf16.gmra.mxu1 %v4664_v61 }
 0x294   : > { %v8053_v31 = vadd.f32 %v6292_v52, %v2234_v60  ;;  %v2238_v42 = vadd.f32 %v6248_v43, %v7918_v13  ;;  %6538 = vmatprep.mubr.bf16.mxu1 %v4667_v45  ;;  %v1818_v60 = vadd.f32 %v7929_v26, %v7912_v35 }
 0x295   : > { %v2567_v56 = vpop.f32.mrf.mxu0  ;;  %v2181_v5 = vpop.f32.mrf.mxu1 }
 0x296   : > { %v8058_v18 = vadd.f32 %v2567_v56, %v2232_v50  ;;  %v2236_v58 = vadd.f32 %v2181_v5, %v7920_v57 }
 0x297   : > { %v6293_v2 = vpop.f32.mrf.mxu0  ;;  %v6249_v40 = vpop.f32.mrf.mxu1 }
 0x298   : > { %v8063_v34 = vadd.f32 %v6293_v2, %v2235_v11  ;;  %v2239_v13 = vadd.f32 %v6249_v40, %v7926_v25  ;;  %v6775_v11 = vld [vmem:[#allocation10 + $0x10] sm:$0xff]   ;;  %v2615_v2 = vadd.f32 %v7968_v3, %v7951_v51 }
 0x299   : > { %v2570_v1 = vpop.f32.mrf.mxu0  ;;  %v2184_v28 = vpop.f32.mrf.mxu1  ;;  %6552 = vmatprep.subr.bf16.mxu0 %v6775_v11 }
 0x29a   : > { %v8067_v50 = vadd.f32 %v2570_v1, %v2233_v46  ;;  %v2237_v27 = vadd.f32 %v2184_v28, %v1818_v60  ;;  %v1822_v46 = vadd.f32 %v7948_v6, %v7931_v55  ;;  %6553 = vmatpush3.bf16.msra.mxu0 %v6775_v11  ;;  %v6776_v28 = vld [vmem:[#allocation10 + $0x8] sm:$0xff]  }
 0x29b   : > { %v6296_v57 = vpop.f32.mrf.mxu0  ;;  %v6252_v7 = vpop.f32.mrf.mxu1  ;;  %6539 = vmatmul.mubr.bf16.gmra.mxu1 %v4670_v9  ;;  %6554 = vmatprep.subr.bf16.mxu0 %v6776_v28 }
 0x29c   : > { %v8069_v62 = vadd.f32 %v6296_v57, %v2238_v42  ;;  %v2242_v35 = vadd.f32 %v6252_v7, %v7935_v59 }
 0x29d   : > { %v2583_v26 = vpop.f32.mrf.mxu0  ;;  %v2197_v47 = vpop.f32.mrf.mxu1 }
 0x29e   : > { %v8072_v14 = vadd.f32 %v2583_v26, %v2236_v58  ;;  %v2240_v25 = vadd.f32 %v2197_v47, %v7938_v38  ;;  %6555 = vmatpush3.bf16.msra.mxu0 %v6776_v28 }
 0x29f   : > { %v6297_v15 = vpop.f32.mrf.mxu0  ;;  %v6253_v17 = vpop.f32.mrf.mxu1 }
 0x2a0   : > { %v8077_v61 = vadd.f32 %v6297_v15, %v2239_v13  ;;  %v2243_v52 = vadd.f32 %v6253_v17, %v7945_v30 }
 0x2a1   : > { %v2586_v43 = vpop.f32.mrf.mxu0  ;;  %v2200_v45 = vpop.f32.mrf.mxu1 }
 0x2a2   : > { %v8080_v59 = vadd.f32 %v2586_v43, %v2237_v27  ;;  %v2241_v42 = vadd.f32 %v2200_v45, %v1822_v46 }
 0x2a3   : > { %v6300_v32 = vpop.f32.mrf.mxu0  ;;  %v6320_v19 = vpop.f32.mrf.mxu1 }
 0x2a4   : > { %v8082_v38 = vadd.f32 %v6300_v32, %v2242_v35  ;;  %v3146_v56 = vadd.f32 %v6320_v19, %v7955_v20 }
 0x2a5   : > { %v2599_v5 = vpop.f32.mrf.mxu0  ;;  %v3017_v58 = vpop.f32.mrf.mxu1 }
 0x2a6   : > { %v8085_v55 = vadd.f32 %v2599_v5, %v2240_v25  ;;  %v3144_v6 = vadd.f32 %v3017_v58, %v7958_v23  ;;  %v2619_v25 = vadd.f32 %v7988_v22, %v7971_v21  ;;  %v2623_v5 = vadd.f32 %v8008_v37, %v7991_v10 }
 0x2a7   : > { %v6301_v30 = vpop.f32.mrf.mxu0  ;;  %v6321_v48 = vpop.f32.mrf.mxu1 }
 0x2a8   : > { %v8090_v40 = vadd.f32 %v6301_v30, %v2243_v52  ;;  %v3147_v60 = vadd.f32 %v6321_v48, %v7965_v63  ;;  %v6777_v52 = vld [vmem:[#allocation10] sm:$0xff]  }
 0x2a9   : > { %v2602_v13 = vpop.f32.mrf.mxu0  ;;  %v3020_v9 = vpop.f32.mrf.mxu1  ;;  %6556 = vmatprep.subr.bf16.mxu0 %v6777_v52 }
 0x2aa   : > { %v8093_v1 = vadd.f32 %v2602_v13, %v2241_v42  ;;  %v8095_v20 = vadd.f32 %v3020_v9, %v2615_v2  ;;  %6557 = vmatpush3.bf16.msra.mxu0 %v6777_v52 }
 0x2ab   : > { %v6368_v27 = vpop.f32.mrf.mxu0  ;;  %v6324_v57 = vpop.f32.mrf.mxu1 }
 0x2ac   : > { %v8097_v7 = vadd.f32 %v6368_v27, %v3146_v56  ;;  %v3150_v23 = vadd.f32 %v6324_v57, %v7975_v54 }
 0x2ad   : > { %v3435_v35 = vpop.f32.mrf.mxu0  ;;  %v3033_v51 = vpop.f32.mrf.mxu1 }
 0x2ae   : > { %v8100_v3 = vadd.f32 %v3435_v35, %v3144_v6  ;;  %v3148_v63 = vadd.f32 %v3033_v51, %v7978_v24 }
 0x2af   : > { %v6369_v26 = vpop.f32.mrf.mxu0  ;;  %v6325_v47 = vpop.f32.mrf.mxu1 }
 0x2b0   : > { %v8105_v11 = vadd.f32 %v6369_v26, %v3147_v60  ;;  %v3151_v15 = vadd.f32 %v6325_v47, %v7985_v29 }
 0x2b1   : > { %v8108_v17 = vpop.f32.mrf.mxu0  ;;  %v3036_v54 = vpop.f32.mrf.mxu1 }
 0x2b2   : > { %v8110_v46 = vadd.f32 %v3036_v54, %v2619_v25 }
 0x2b3   : > { %v6372_v43 = vpop.f32.mrf.mxu0  ;;  %v6328_v45 = vpop.f32.mrf.mxu1 }
 0x2b4   : > { %v8112_v42 = vadd.f32 %v6372_v43, %v3150_v23  ;;  %v3154_v24 = vadd.f32 %v6328_v45, %v7995_v33 }
 0x2b5   : > { %v3451_v32 = vpop.f32.mrf.mxu0  ;;  %v3049_v19 = vpop.f32.mrf.mxu1 }
 0x2b6   : > { %v8115_v21 = vadd.f32 %v3451_v32, %v3148_v63  ;;  %v3152_v29 = vadd.f32 %v3049_v19, %v7998_v36 }
 0x2b7   : > { %v6373_v22 = vpop.f32.mrf.mxu0  ;;  %v6329_v56 = vpop.f32.mrf.mxu1 }
 0x2b8   : > { %v8120_v58 = vadd.f32 %v6373_v22, %v3151_v15  ;;  %v3155_v6 = vadd.f32 %v6329_v56, %v8005_v0  ;;  %v2627_v0 = vadd.f32 %v8030_v12, %v8011_v8 }
 0x2b9   : > { %v8123_v30 = vpop.f32.mrf.mxu0  ;;  %v3052_v33 = vpop.f32.mrf.mxu1 }
 0x2ba   : > { %v8125_v48 = vadd.f32 %v3052_v33, %v2623_v5 }
 0x2bb   : > { %v6376_v2 = vpop.f32.mrf.mxu0  ;;  %v6332_v60 = vpop.f32.mrf.mxu1 }
 0x2bc   : > { %v8127_v13 = vadd.f32 %v6376_v2, %v3154_v24  ;;  %v3158_v36 = vadd.f32 %v6332_v60, %v8015_v53 }
 0x2bd   : > { %v3467_v9 = vpop.f32.mrf.mxu0  ;;  %v3065_v28 = vpop.f32.mrf.mxu1 }
 0x2be   : > { %v8130_v27 = vadd.f32 %v3467_v9, %v3152_v29  ;;  %v3156_v10 = vadd.f32 %v3065_v28, %v8018_v49 }
 0x2bf   : > { %v6377_v37 = vpop.f32.mrf.mxu0  ;;  %v6333_v57 = vpop.f32.mrf.mxu1 }
 0x2c0   : > { %v8135_v23 = vadd.f32 %v6377_v37, %v3155_v6  ;;  %v3159_v35 = vadd.f32 %v6333_v57, %v8027_v4 }
 0x2c1   : > { %v8138_v51 = vpop.f32.mrf.mxu0  ;;  %v3068_v63 = vpop.f32.mrf.mxu1 }
 0x2c2   : > { %v8140_v26 = vadd.f32 %v3068_v63, %v2627_v0 }
 0x2c3   : > { %v6380_v53 = vpop.f32.mrf.mxu0  ;;  %v6336_v47 = vpop.f32.mrf.mxu1 }
 0x2c4   : > { %v8142_v25 = vadd.f32 %v6380_v53, %v3158_v36  ;;  %v3162_v49 = vadd.f32 %v6336_v47, %v8034_v39 }
 0x2c5   : > { %v3483_v15 = vpop.f32.mrf.mxu0  ;;  %v3081_v54 = vpop.f32.mrf.mxu1 }
 0x2c6   : > { %v8145_v52 = vadd.f32 %v3483_v15, %v3156_v10  ;;  %v3160_v8 = vadd.f32 %v3081_v54, %v8037_v41 }
 0x2c7   : > { %v6381_v12 = vpop.f32.mrf.mxu0  ;;  %v6337_v43 = vpop.f32.mrf.mxu1 }
 0x2c8   : > { %v8148_v4 = vadd.f32 %v6381_v12, %v3159_v35  ;;  %v3163_v45 = vadd.f32 %v6337_v43, %v8046_v44 }
 0x2c9   : > { %v8151_v24 = vpop.f32.mrf.mxu0  ;;  %v3084_v32 = vpop.f32.mrf.mxu1 }
 0x2ca   : > { %v8154_v19 = vadd.f32 %v3084_v32, %v8049_v16 }
 0x2cb   : > { %v6384_v29 = vpop.f32.mrf.mxu0  ;;  %v6340_v39 = vpop.f32.mrf.mxu1 }
 0x2cc   : > { %v8156_v22 = vadd.f32 %v6384_v29, %v3162_v49  ;;  %v3166_v56 = vadd.f32 %v6340_v39, %v8053_v31 }
 0x2cd   : > { %v3499_v5 = vpop.f32.mrf.mxu0  ;;  %v3097_v41 = vpop.f32.mrf.mxu1 }
 0x2ce   : > { %v8159_v6 = vadd.f32 %v3499_v5, %v3160_v8  ;;  %v3164_v33 = vadd.f32 %v3097_v41, %v8058_v18 }
 0x2cf   : > { %v6385_v2 = vpop.f32.mrf.mxu0  ;;  %v6341_v44 = vpop.f32.mrf.mxu1 }
 0x2d0   : > { %v8162_v60 = vadd.f32 %v6385_v2, %v3163_v45  ;;  %v3167_v36 = vadd.f32 %v6341_v44, %v8063_v34 }
 0x2d1   : > { %v8165_v16 = vpop.f32.mrf.mxu0  ;;  %v3100_v9 = vpop.f32.mrf.mxu1 }
 0x2d2   : > { %v8168_v28 = vadd.f32 %v3100_v9, %v8067_v50 }
 0x2d3   : > { %v6388_v10 = vpop.f32.mrf.mxu0  ;;  %v6344_v31 = vpop.f32.mrf.mxu1 }
 0x2d4   : > { %v8170_v37 = vadd.f32 %v6388_v10, %v3166_v56  ;;  %v3170_v57 = vadd.f32 %v6344_v31, %v8069_v62 }
 0x2d5   : > { %v3515_v0 = vpop.f32.mrf.mxu0  ;;  %v3113_v18 = vpop.f32.mrf.mxu1 }
 0x2d6   : > { %v8173_v35 = vadd.f32 %v3515_v0, %v3164_v33  ;;  %v3168_v63 = vadd.f32 %v3113_v18, %v8072_v14 }
 0x2d7   : > { %v6389_v53 = vpop.f32.mrf.mxu0  ;;  %v6345_v34 = vpop.f32.mrf.mxu1 }
 0x2d8   : > { %v8176_v47 = vadd.f32 %v6389_v53, %v3167_v36  ;;  %v3171_v49 = vadd.f32 %v6345_v34, %v8077_v61 }
 0x2d9   : > { %v8179_v50 = vpop.f32.mrf.mxu0  ;;  %v3116_v15 = vpop.f32.mrf.mxu1 }
 0x2da   : > { %v8182_v54 = vadd.f32 %v3116_v15, %v8080_v59 }
 0x2db   : > { %v6392_v8 = vpop.f32.mrf.mxu0  ;;  %v6348_v62 = vpop.f32.mrf.mxu1 }
 0x2dc   : > { %8765 = vst [vmem:[#allocation19_spill] sm:$0xff] %v8182_v54  ;;  %v8184_v12 = vadd.f32 %v6392_v8, %v3170_v57  ;;  %v3174_v43 = vadd.f32 %v6348_v62, %v8082_v38 }
 0x2dd   : > { %v3531_v45 = vpop.f32.mrf.mxu0  ;;  %v3129_v14 = vpop.f32.mrf.mxu1 }
 0x2de   : > { %v8187_v32 = vadd.f32 %v3531_v45, %v3168_v63  ;;  %v3172_v29 = vadd.f32 %v3129_v14, %v8085_v55 }
 0x2df   : > { %v6393_v39 = vpop.f32.mrf.mxu0  ;;  %v6349_v61 = vpop.f32.mrf.mxu1 }
 0x2e0   : > { %v8190_v56 = vadd.f32 %v6393_v39, %v3171_v49  ;;  %v3175_v5 = vadd.f32 %v6349_v61, %v8090_v40 }
 0x2e1   : > { %v8193_v59 = vpop.f32.mrf.mxu0  ;;  %v3132_v41 = vpop.f32.mrf.mxu1 }
 0x2e2   : > { %8766 = vst [vmem:[#allocation18_spill] sm:$0xff] %v8193_v59  ;;  %v8196_v33 = vadd.f32 %v3132_v41, %v8093_v1 }
 0x2e3   : > { %v6396_v2 = vpop.f32.mrf.mxu0  ;;  %v6416_v38 = vpop.f32.mrf.mxu1 }
 0x2e4   : > { %8767 = vst [vmem:[#allocation20_spill] sm:$0xff] %v8196_v33  ;;  %v8198_v44 = vadd.f32 %v6396_v2, %v3174_v43  ;;  %v8201_v36 = vadd.f32 %v6416_v38, %v8097_v7 }
 0x2e5   : > { %v3547_v55 = vpop.f32.mrf.mxu0  ;;  %v3838_v9 = vpop.f32.mrf.mxu1 }
 0x2e6   : > { %v8203_v10 = vadd.f32 %v3547_v55, %v3172_v29  ;;  %v8206_v31 = vadd.f32 %v3838_v9, %v8100_v3 }
 0x2e7   : > { %v6397_v40 = vpop.f32.mrf.mxu0  ;;  %v6417_v57 = vpop.f32.mrf.mxu1 }
 0x2e8   : > { %v8208_v0 = vadd.f32 %v6397_v40, %v3175_v5  ;;  %v8211_v1 = vadd.f32 %v6417_v57, %v8105_v11 }
 0x2e9   : > { %v8213_v18 = vpop.f32.mrf.mxu0  ;;  %v8215_v63 = vpop.f32.mrf.mxu1 }
 0x2ea   : > { %8768 = vst [vmem:[#allocation25_spill] sm:$0xff] %v8213_v18 }
 0x2eb   : > { %v8217_v7 = vpop.f32.mrf.mxu0  ;;  %v6420_v53 = vpop.f32.mrf.mxu1 }
 0x2ec   : > { %v8220_v34 = vadd.f32 %v6420_v53, %v8112_v42 }
 0x2ed   : > { %v8222_v49 = vpop.f32.mrf.mxu0  ;;  %v3854_v3 = vpop.f32.mrf.mxu1 }
 0x2ee   : > { %v8225_v15 = vadd.f32 %v3854_v3, %v8115_v21 }
 0x2ef   : > { %v8227_v8 = vpop.f32.mrf.mxu0  ;;  %v6421_v11 = vpop.f32.mrf.mxu1 }
 0x2f0   : > { %v8230_v62 = vadd.f32 %v6421_v11, %v8120_v58 }
 0x2f1   : > { %v8232_v43 = vpop.f32.mrf.mxu0  ;;  %v8234_v45 = vpop.f32.mrf.mxu1 }
 0x2f3   : > { %v8236_v14 = vpop.f32.mrf.mxu0  ;;  %v6424_v42 = vpop.f32.mrf.mxu1 }
 0x2f4   : > { %v8239_v29 = vadd.f32 %v6424_v42, %v8127_v13 }
 0x2f5   : > { %v8241_v39 = vpop.f32.mrf.mxu0  ;;  %v3870_v21 = vpop.f32.mrf.mxu1 }
 0x2f6   : > { %v8244_v61 = vadd.f32 %v3870_v21, %v8130_v27 }
 0x2f7   : > { %v6425_v5 = vpop.f32.mrf.mxu1  ;;  %v8249_v41 = vpop.f32.mrf.mxu0 }
 0x2f8   : > { %v8247_v58 = vadd.f32 %v6425_v5, %v8135_v23 }
 0x2f9   : > { %v8251_v2 = vpop.f32.mrf.mxu1  ;;  %v8256_v13 = vpop.f32.mrf.mxu0 }
 0x2fb   : > { %v6428_v38 = vpop.f32.mrf.mxu1  ;;  %v8264_v23 = vpop.f32.mrf.mxu0 }
 0x2fc   : > { %v8254_v55 = vadd.f32 %v6428_v38, %v8142_v25 }
 0x2fd   : > { %v3886_v9 = vpop.f32.mrf.mxu1  ;;  %v8271_v25 = vpop.f32.mrf.mxu0 }
 0x2fe   : > { %v8259_v40 = vadd.f32 %v3886_v9, %v8145_v52 }
 0x2ff   : > { %v6429_v27 = vpop.f32.mrf.mxu1 }
 0x300   : > { %v8262_v57 = vadd.f32 %v6429_v27, %v8148_v4  ;;  %v8279_v4 = vpop.f32.mrf.mxu0 }
 0x301   : > { %v8266_v53 = vpop.f32.mrf.mxu1 }
 0x303   : > { %v6432_v3 = vpop.f32.mrf.mxu1 }
 0x304   : > { %v8269_v11 = vadd.f32 %v6432_v3, %v8156_v22  ;;  %v8286_v22 = vpop.f32.mrf.mxu0 }
 0x305   : > { %v3902_v42 = vpop.f32.mrf.mxu1 }
 0x306   : > { %v8274_v21 = vadd.f32 %v3902_v42, %v8159_v6 }
 0x307   : > { %v6433_v52 = vpop.f32.mrf.mxu1 }
 0x308   : > { %v8277_v5 = vadd.f32 %v6433_v52, %v8162_v60  ;;  %v8294_v60 = vpop.f32.mrf.mxu0 }
 0x309   : > { %v8281_v38 = vpop.f32.mrf.mxu1 }
 0x30b   : > { %v6436_v9 = vpop.f32.mrf.mxu1 }
 0x30c   : > { %v8284_v27 = vadd.f32 %v6436_v9, %v8170_v37  ;;  %v8301_v37 = vpop.f32.mrf.mxu0 }
 0x30d   : > { %v3918_v3 = vpop.f32.mrf.mxu1 }
 0x30e   : > { %v8289_v18 = vadd.f32 %v3918_v3, %v8173_v35 }
 0x30f   : > { %v6437_v6 = vpop.f32.mrf.mxu1 }
 0x310   : > { %v8292_v42 = vadd.f32 %v6437_v6, %v8176_v47  ;;  %v8309_v47 = vpop.f32.mrf.mxu0 }
 0x311   : > { %v8296_v52 = vpop.f32.mrf.mxu1 }
 0x312   : > { %8769 = vst [vmem:[#allocation21_spill] sm:$0xff] %v8292_v42  ;;  %8770 = vst [vmem:[#allocation23_spill] sm:$0xff] %v8296_v52 }
 0x313   : > { %v6440_v33 = vpop.f32.mrf.mxu1 }
 0x314   : > { %v8299_v59 = vadd.f32 %v6440_v33, %v8184_v12  ;;  %v8316_v12 = vpop.f32.mrf.mxu0 }
 0x315   : > { %v3934_v9 = vpop.f32.mrf.mxu1 }
 0x316   : > { %8771 = vst [vmem:[#allocation22_spill] sm:$0xff] %v8299_v59  ;;  %v8304_v54 = vadd.f32 %v3934_v9, %v8187_v32 }
 0x317   : > { %v6441_v35 = vpop.f32.mrf.mxu1 }
 0x318   : > { %v8307_v3 = vadd.f32 %v6441_v35, %v8190_v56  ;;  %v8324_v56 = vpop.f32.mrf.mxu0 }
 0x319   : > { %v8311_v6 = vpop.f32.mrf.mxu1 }
 0x31a   : > { %8772 = vst [vmem:[#allocation24_spill] sm:$0xff] %v8307_v3  ;;  %8773 = vst [vmem:[#allocation26_spill] sm:$0xff] %v8311_v6  ;;  %v4497_v3 = vadd.f32 %v8217_v7, %v8201_v36 }
 0x31b   : > { %v6444_v42 = vpop.f32.mrf.mxu1 }
 0x31c   : > { %v8314_v52 = vadd.f32 %v6444_v42, %v8198_v44  ;;  %v8333_v44 = vld [vmem:[%s8689_s6] ss:$0 sm:$0xff] }
 0x31d   : > { %v3950_v33 = vpop.f32.mrf.mxu1 }
 0x31e   : > { %v8319_v59 = vadd.f32 %v3950_v33, %v8203_v10  ;;  %v4495_v10 = vadd.f32 %v8222_v49, %v8206_v31  ;;  %v8339_v33 = vpop.f32.mrf.mxu0 }
 0x31f   : > { %v6445_v32 = vpop.f32.mrf.mxu1 }
 0x320   : > { %8774 = vst [vmem:[#allocation32_spill] sm:$0xff] %v8319_v59  ;;  %v8322_v9 = vadd.f32 %v6445_v32, %v8208_v0  ;;  %v3563_v0 = vadd.f32 %v8108_v17, %v8095_v20  ;;  %v8348_v59 = vld [vmem:[%s8690_s7] ss:$0 sm:$0xff]  ;;  %v8351_v17 = vpop.f32.mrf.mxu0 }
 0x321   : > { %v8326_v35 = vpop.f32.mrf.mxu1 }
 0x322   : > { %8775 = vst [vmem:[#allocation31_spill] sm:$0xff] %v8322_v9  ;;  %8776 = vst [vmem:[#allocation34_spill] sm:$0xff] %v8326_v35  ;;  %v4498_v9 = vadd.f32 %v8227_v8, %v8211_v1  ;;  %v3966_v35 = vadd.f32 %v8215_v63, %v3563_v0  ;;  %v4501_v1 = vadd.f32 %v8236_v14, %v8220_v34  ;;  %v8366_v14 = vpop.f32.mrf.mxu0 }
 0x323   : > { %v6512_v6 = vpop.f32.mrf.mxu1  ;;  %v4502_v34 = vadd.f32 %v8249_v41, %v8230_v62 }
 0x324   : > { %v4915_v42 = vadd.f32 %v6512_v6, %v4497_v3  ;;  %v4496_v20 = vadd.f32 %v8232_v43, %v3966_v35  ;;  %v4499_v43 = vadd.f32 %v8241_v39, %v8225_v15 }
 0x325   : > { %v4786_v32 = vpop.f32.mrf.mxu1 }
 0x326   : > { %v5018_v36 = vmul.f32 %v8333_v44, %v4915_v42  ;;  %v4913_v7 = vadd.f32 %v4786_v32, %v4495_v10  ;;  %v3567_v10 = vadd.f32 %v8123_v30, %v8110_v46 }
 0x327   : > { %v6513_v31 = vpop.f32.mrf.mxu1 }
 0x328   : > { %v4916_v49 = vadd.f32 %v6513_v31, %v4498_v9  ;;  %v5016_v3 = vmul.f32 %v8333_v44, %v4913_v7  ;;  %v5057_v8 = vadd.f32 %v8348_v59, %v5018_v36  ;;  %v3970_v32 = vadd.f32 %v8234_v45, %v3567_v10 }
 0x329   : > { %v4789_v6 = vpop.f32.mrf.mxu1 }
 0x32a   : > { %v5019_v63 = vmul.f32 %v8333_v44, %v4916_v49  ;;  %v4914_v42 = vadd.f32 %v4789_v6, %v4496_v20  ;;  %v5055_v36 = vadd.f32 %v8348_v59, %v5016_v3  ;;  %v5089_v30 = vmax.f32 %v5057_v8, 0.0 }
 0x32b   : > { %v6516_v0 = vpop.f32.mrf.mxu1  ;;  %v4500_v45 = vadd.f32 %v8256_v13, %v3970_v32  ;;  %v4505_v8 = vadd.f32 %v8264_v23, %v8239_v29  ;;  %v3571_v13 = vadd.f32 %v8138_v51, %v8125_v48 }
 0x32c   : > { %v5058_v9 = vadd.f32 %v8348_v59, %v5019_v63  ;;  %v4919_v35 = vadd.f32 %v6516_v0, %v4501_v1  ;;  %v5017_v7 = vmul.f32 %v8333_v44, %v4914_v42  ;;  %v8374_v1 = vpop.f32.mrf.mxu0  ;;  %v5087_v3 = vmax.f32 %v5055_v36, 0.0 }
 0x32d   : > { %v4802_v46 = vpop.f32.mrf.mxu1  ;;  %v3974_v23 = vadd.f32 %v8251_v2, %v3571_v13 }
 0x32e   : > { %v5090_v31 = vmax.f32 %v5058_v9, 0.0  ;;  %v5022_v49 = vmul.f32 %v8333_v44, %v4919_v35  ;;  %v4917_v15 = vadd.f32 %v4802_v46, %v4499_v43  ;;  %v5056_v39 = vadd.f32 %v8348_v59, %v5017_v7  ;;  %v8388_v46 = vpop.f32.mrf.mxu0 }
 0x32f   : > { %v6517_v20 = vpop.f32.mrf.mxu1  ;;  %v4503_v9 = vadd.f32 %v8271_v25, %v8244_v61  ;;  %v4506_v25 = vadd.f32 %v8279_v4, %v8247_v58  ;;  %v3575_v58 = vadd.f32 %v8151_v24, %v8140_v26 }
 0x330   : > { %v5120_v6 = vpack.c.bf16 %v5090_v31, %v5089_v30  ;;  %v5020_v62 = vmul.f32 %v8333_v44, %v4917_v15  ;;  %v4920_v41 = vadd.f32 %v6517_v20, %v4502_v34  ;;  %v5088_v63 = vmax.f32 %v5056_v39, 0.0 }
 0x331   : > { %v4805_v10 = vpop.f32.mrf.mxu1  ;;  %v5061_v42 = vadd.f32 %v8348_v59, %v5022_v49  ;;  %v4504_v39 = vadd.f32 %v8286_v22, %v3974_v23 }
 0x332   : > { %v5023_v0 = vmul.f32 %v8333_v44, %v4920_v41  ;;  %v4918_v43 = vadd.f32 %v4805_v10, %v4500_v45  ;;  %v5119_v32 = vpack.c.bf16 %v5088_v63, %v5087_v3  ;;  %v5059_v34 = vadd.f32 %v8348_v59, %v5020_v62  ;;  %v8395_v62 = vpop.f32.mrf.mxu0 }
 0x333   : > { %v6520_v35 = vpop.f32.mrf.mxu1  ;;  %v5093_v31 = vmax.f32 %v5061_v42, 0.0 }
 0x334   : > { %v5062_v36 = vadd.f32 %v8348_v59, %v5023_v0  ;;  %v5021_v7 = vmul.f32 %v8333_v44, %v4918_v43  ;;  %v4923_v29 = vadd.f32 %v6520_v35, %v4505_v8  ;;  %6558 = vmatprep.mubr.bf16.mxu0 %v5119_v32  ;;  %v5091_v20 = vmax.f32 %v5059_v34, 0.0 }
 0x335   : > { %v4818_v30 = vpop.f32.mrf.mxu1  ;;  %6559 = vmatmul.mubr.bf16.vlgmr.msra.gmra.mxu0 %v5120_v6  ;;  %v4509_v6 = vadd.f32 %v8294_v60, %v8254_v55  ;;  %v4507_v0 = vadd.f32 %v8301_v37, %v8259_v40  ;;  %v8408_v55 = vpop.f32.mrf.mxu0  ;;  %v4510_v35 = vadd.f32 %v8309_v47, %v8262_v57  ;;  %v4513_v47 = vadd.f32 %v8324_v56, %v8269_v11 }
 0x336   : > { %v5094_v48 = vmax.f32 %v5062_v36, 0.0  ;;  %v5060_v51 = vadd.f32 %v8348_v59, %v5021_v7  ;;  %v4921_v61 = vadd.f32 %v4818_v30, %v4503_v9  ;;  %v5026_v49 = vmul.f32 %v8333_v44, %v4923_v29 }
 0x337   : > { %v6521_v15 = vpop.f32.mrf.mxu1  ;;  %v3978_v9 = vadd.f32 %v8266_v53, %v3575_v58 }
 0x338   : > { %v5122_v2 = vpack.c.bf16 %v5094_v48, %v5093_v31  ;;  %v5092_v45 = vmax.f32 %v5060_v51, 0.0  ;;  %v5024_v41 = vmul.f32 %v8333_v44, %v4921_v61  ;;  %v4924_v3 = vadd.f32 %v6521_v15, %v4506_v25  ;;  %v8418_v31 = vpop.f32.mrf.mxu0 }
 0x339   : > { %v4821_v63 = vpop.f32.mrf.mxu1  ;;  %v5065_v4 = vadd.f32 %v8348_v59, %v5026_v49  ;;  %v4508_v53 = vadd.f32 %v8316_v12, %v3978_v9  ;;  %v3579_v12 = vadd.f32 %v8165_v16, %v8154_v19  ;;  %v4511_v15 = vadd.f32 %v8339_v33, %v8274_v21 }
 0x33a   : > { %v4922_v10 = vadd.f32 %v4821_v63, %v4504_v39  ;;  %v5121_v8 = vpack.c.bf16 %v5092_v45, %v5091_v20  ;;  %v5027_v22 = vmul.f32 %v8333_v44, %v4924_v3  ;;  %v5063_v60 = vadd.f32 %v8348_v59, %v5024_v41  ;;  %v4464_v3 = vpop.f32.mrf.mxu0 }
 0x33b   : > { %v6524_v42 = vpop.f32.mrf.mxu1  ;;  %v5097_v34 = vmax.f32 %v5065_v4, 0.0  ;;  %v3982_v56 = vadd.f32 %v8281_v38, %v3579_v12  ;;  %v4514_v21 = vadd.f32 %v8351_v17, %v8277_v5  ;;  %v4517_v9 = vadd.f32 %v8374_v1, %v8284_v27 }
 0x33c   : > { %v5025_v43 = vmul.f32 %v8333_v44, %v4922_v10  ;;  %v4927_v13 = vadd.f32 %v6524_v42, %v4509_v6  ;;  %6562 = vmatprep.mubr.bf16.mxu0 %v5121_v8  ;;  %v5066_v26 = vadd.f32 %v8348_v59, %v5027_v22  ;;  %v5095_v48 = vmax.f32 %v5063_v60, 0.0  ;;  %v6489_v42 = vpop.f32.mrf.mxu0 }
 0x33d   : > { %v4834_v24 = vpop.f32.mrf.mxu1  ;;  %6563 = vmatmul.mubr.bf16.gmra.mxu0 %v5122_v2  ;;  %v4512_v58 = vadd.f32 %v8366_v14, %v3982_v56  ;;  %v3583_v5 = vadd.f32 %v8179_v50, %v8168_v28  ;;  %v8778_v50 = vld [vmem:[#allocation21_spill] sm:$0xff] }
 0x33e   : > { %v5064_v32 = vadd.f32 %v8348_v59, %v5025_v43  ;;  %v5030_v40 = vmul.f32 %v8333_v44, %v4927_v13  ;;  %v4925_v37 = vadd.f32 %v4834_v24, %v4507_v0  ;;  %v5098_v36 = vmax.f32 %v5066_v26, 0.0  ;;  %v4467_v27 = vpop.f32.mrf.mxu0 }
 0x33f   : > { %v6525_v7 = vpop.f32.mrf.mxu1 }
 0x340   : > { %v5096_v29 = vmax.f32 %v5064_v32, 0.0  ;;  %v5028_v23 = vmul.f32 %v8333_v44, %v4925_v37  ;;  %v4928_v30 = vadd.f32 %v6525_v7, %v4510_v35  ;;  %v5124_v51 = vpack.c.bf16 %v5098_v36, %v5097_v34  ;;  %v8777_v37 = vld [vmem:[#allocation23_spill] sm:$0xff] }
 0x341   : > { %v4837_v57 = vpop.f32.mrf.mxu1  ;;  %v5069_v61 = vadd.f32 %v8348_v59, %v5030_v40  ;;  %v4515_v35 = vadd.f32 %v8388_v46, %v8289_v18  ;;  %v3986_v34 = vadd.f32 %v8777_v37, %v3583_v5  ;;  %v4518_v7 = vadd.f32 %v8395_v62, %v8778_v50  ;;  %v8779_v62 = vld [vmem:[#allocation22_spill] sm:$0xff]  ;;  %v8784_v37 = vld [vmem:[#allocation20_spill] sm:$0xff] }
 0x342   : > { %v5031_v25 = vmul.f32 %v8333_v44, %v4928_v30  ;;  %v4926_v49 = vadd.f32 %v4837_v57, %v4508_v53  ;;  %v5123_v20 = vpack.c.bf16 %v5096_v29, %v5095_v48  ;;  %v5067_v2 = vadd.f32 %v8348_v59, %v5028_v23 }
 0x343   : > { %v6528_v39 = vpop.f32.mrf.mxu1  ;;  %v5101_v6 = vmax.f32 %v5069_v61, 0.0  ;;  %v4516_v48 = vadd.f32 %v8408_v55, %v3986_v34  ;;  %v6492_v61 = vpop.f32.mrf.mxu0  ;;  %v4519_v55 = vadd.f32 %v4464_v3, %v8304_v54  ;;  %v8783_v54 = vld [vmem:[#allocation24_spill] sm:$0xff]  ;;  %v8785_v34 = vld [vmem:[#allocation25_spill] sm:$0xff] }
 0x344   : > { %v5070_v45 = vadd.f32 %v8348_v59, %v5031_v25  ;;  %v5029_v41 = vmul.f32 %v8333_v44, %v4926_v49  ;;  %v4931_v11 = vadd.f32 %v6528_v39, %v4513_v47  ;;  %6566 = vmatprep.mubr.bf16.mxu0 %v5123_v20  ;;  %v5099_v4 = vmax.f32 %v5067_v2, 0.0 }
 0x345   : > { %v4850_v63 = vpop.f32.mrf.mxu1  ;;  %6567 = vmatmul.mubr.bf16.gmra.mxu0 %v5124_v51  ;;  %v4522_v3 = vadd.f32 %v6489_v42, %v8783_v54  ;;  %v5440_v54 = vld [vmem:[%s7169_s11 + $0x10] sm:$0xff] }
 0x346   : > { %v5102_v10 = vmax.f32 %v5070_v45, 0.0  ;;  %v5068_v19 = vadd.f32 %v8348_v59, %v5029_v41  ;;  %v4929_v16 = vadd.f32 %v4850_v63, %v4511_v15  ;;  %v5034_v33 = vmul.f32 %v8333_v44, %v4931_v11  ;;  %v8780_v45 = vld [vmem:[#allocation19_spill] sm:$0xff]  ;;  %v8781_v41 = vld [vmem:[#allocation18_spill] sm:$0xff] }
 0x347   : > { %v6529_v8 = vpop.f32.mrf.mxu1  ;;  %v4521_v15 = vadd.f32 %v8418_v31, %v8779_v62  ;;  %v3587_v11 = vadd.f32 %v8781_v41, %v8780_v45  ;;  %v8782_v31 = vld [vmem:[#allocation26_spill] sm:$0xff] }
 0x348   : > { %v5126_v22 = vpack.c.bf16 %v5102_v10, %v5101_v6  ;;  %v5100_v38 = vmax.f32 %v5068_v19, 0.0  ;;  %v5032_v0 = vmul.f32 %v8333_v44, %v4929_v16  ;;  %v4932_v43 = vadd.f32 %v6529_v8, %v4514_v21 }
 0x349   : > { %v4853_v13 = vpop.f32.mrf.mxu1  ;;  %v5073_v17 = vadd.f32 %v8348_v59, %v5034_v33  ;;  %v3990_v21 = vadd.f32 %v8782_v31, %v3587_v11  ;;  %v4480_v33 = vpop.f32.mrf.mxu0 }
 0x34a   : > { %v4930_v60 = vadd.f32 %v4853_v13, %v4512_v58  ;;  %v5125_v26 = vpack.c.bf16 %v5100_v38, %v5099_v4  ;;  %v5035_v14 = vmul.f32 %v8333_v44, %v4932_v43  ;;  %v5071_v1 = vadd.f32 %v8348_v59, %v5032_v0 }
 0x34b   : > { %v6532_v24 = vpop.f32.mrf.mxu1  ;;  %v5105_v46 = vmax.f32 %v5073_v17, 0.0  ;;  %v4520_v13 = vadd.f32 %v4467_v27, %v3990_v21  ;;  %v6493_v5 = vpop.f32.mrf.mxu0 }
 0x34c   : > { %v5033_v32 = vmul.f32 %v8333_v44, %v4930_v60  ;;  %v4935_v40 = vadd.f32 %v6532_v24, %v4517_v9  ;;  %6570 = vmatprep.mubr.bf16.mxu0 %v5125_v26  ;;  %v5074_v36 = vadd.f32 %v8348_v59, %v5035_v14  ;;  %v5103_v25 = vmax.f32 %v5071_v1, 0.0 }
 0x34d   : > { %v4866_v28 = vpop.f32.mrf.mxu1  ;;  %6571 = vmatmul.mubr.bf16.gmra.mxu0 %v5126_v22  ;;  %v3591_v1 = vadd.f32 %v8785_v34, %v8784_v37  ;;  %v5439_v37 = vld [vmem:[%s7169_s11 + $0x8] sm:$0xff] }
 0x34e   : > { %v5072_v53 = vadd.f32 %v8348_v59, %v5033_v32  ;;  %v5038_v29 = vmul.f32 %v8333_v44, %v4935_v40  ;;  %v4933_v18 = vadd.f32 %v4866_v28, %v4515_v35  ;;  %v5106_v23 = vmax.f32 %v5074_v36, 0.0  ;;  %v8786_v28 = vld [vmem:[#allocation32_spill] sm:$0xff] }
 0x34f   : > { %v6533_v30 = vpop.f32.mrf.mxu1  ;;  %v4525_v35 = vadd.f32 %v6492_v61, %v8314_v52  ;;  %v4523_v50 = vadd.f32 %v4480_v33, %v8786_v28  ;;  %v5444_v28 = vld [vmem:[%s7169_s11 + $0x30] sm:$0xff] }
 0x350   : > { %v5104_v51 = vmax.f32 %v5072_v53, 0.0  ;;  %v5036_v57 = vmul.f32 %v8333_v44, %v4933_v18  ;;  %v4936_v47 = vadd.f32 %v6533_v30, %v4518_v7  ;;  %v5128_v49 = vpack.c.bf16 %v5106_v23, %v5105_v46  ;;  %v4483_v46 = vpop.f32.mrf.mxu0 }
 0x351   : > { %v4869_v12 = vpop.f32.mrf.mxu1  ;;  %v5077_v39 = vadd.f32 %v8348_v59, %v5038_v29  ;;  %v8787_v29 = vld [vmem:[#allocation34_spill] sm:$0xff] }
 0x352   : > { %v5039_v20 = vmul.f32 %v8333_v44, %v4936_v47  ;;  %v4934_v2 = vadd.f32 %v4869_v12, %v4516_v48  ;;  %v5127_v63 = vpack.c.bf16 %v5104_v51, %v5103_v25  ;;  %v5075_v6 = vadd.f32 %v8348_v59, %v5036_v57  ;;  %v8788_v48 = vld [vmem:[#allocation31_spill] sm:$0xff] }
 0x353   : > { %v6536_v56 = vpop.f32.mrf.mxu1  ;;  %v5109_v58 = vmax.f32 %v5077_v39, 0.0  ;;  %v3994_v18 = vadd.f32 %v8787_v29, %v3591_v1  ;;  %v4526_v51 = vadd.f32 %v6493_v5, %v8788_v48 }
 0x354   : > { %v5078_v10 = vadd.f32 %v8348_v59, %v5039_v20  ;;  %v5037_v19 = vmul.f32 %v8333_v44, %v4934_v2  ;;  %v4939_v16 = vadd.f32 %v6536_v56, %v4521_v15  ;;  %6574 = vmatprep.mubr.bf16.mxu0 %v5127_v63  ;;  %v5107_v9 = vmax.f32 %v5075_v6, 0.0 }
 0x355   : > { %v4882_v8 = vpop.f32.mrf.mxu1  ;;  %6575 = vmatmul.mubr.bf16.gmra.mxu0 %v5128_v49  ;;  %v4524_v62 = vadd.f32 %v4483_v46, %v3994_v18  ;;  %v5442_v46 = vld [vmem:[%s7169_s11 + $0x20] sm:$0xff] }
 0x356   : > { %v5110_v4 = vmax.f32 %v5078_v10, 0.0  ;;  %v5076_v22 = vadd.f32 %v8348_v59, %v5037_v19  ;;  %v4937_v38 = vadd.f32 %v4882_v8, %v4519_v55  ;;  %v5042_v0 = vmul.f32 %v8333_v44, %v4939_v16 }
 0x357   : > { %v6537_v43 = vpop.f32.mrf.mxu1 }
 0x358   : > { %v5130_v60 = vpack.c.bf16 %v5110_v4, %v5109_v58  ;;  %v5108_v26 = vmax.f32 %v5076_v22, 0.0  ;;  %v5040_v17 = vmul.f32 %v8333_v44, %v4937_v38  ;;  %v4940_v14 = vadd.f32 %v6537_v43, %v4522_v3  ;;  %v8494_v22 = vld [vmem:[%s8691_s8] ss:$0 sm:$0xff] }
 0x359   : > { %v4885_v24 = vpop.f32.mrf.mxu1  ;;  %v5081_v42 = vadd.f32 %v8348_v59, %v5042_v0  ;;  %v8499_v38 = vld [vmem:[%s8692_s9] ss:$0 sm:$0xff] }
 0x35a   : > { %v4938_v32 = vadd.f32 %v4885_v24, %v4520_v13  ;;  %v5129_v40 = vpack.c.bf16 %v5108_v26, %v5107_v9  ;;  %v5043_v36 = vmul.f32 %v8333_v44, %v4940_v14  ;;  %v5079_v52 = vadd.f32 %v8348_v59, %v5040_v17  ;;  %v5438_v13 = vld [vmem:[%s7169_s11] sm:$0xff]  ;;  %v5441_v17 = vld [vmem:[%s7169_s11 + $0x18] sm:$0xff] }
 0x35b   : > { %v6540_v27 = vpop.f32.mrf.mxu1  ;;  %v5113_v25 = vmax.f32 %v5081_v42, 0.0 }
 0x35c   : > { %v5041_v7 = vmul.f32 %v8333_v44, %v4938_v32  ;;  %v4943_v53 = vadd.f32 %v6540_v27, %v4525_v35  ;;  %6578 = vmatprep.mubr.bf16.mxu0 %v5129_v40  ;;  %v5082_v23 = vadd.f32 %v8348_v59, %v5043_v36  ;;  %v5111_v2 = vmax.f32 %v5079_v52, 0.0 }
 0x35d   : > { %v4898_v30 = vpop.f32.mrf.mxu1  ;;  %6579 = vmatmul.mubr.bf16.gmra.mxu0 %v5130_v60 }
 0x35e   : > { %v5080_v57 = vadd.f32 %v8348_v59, %v5041_v7  ;;  %v5046_v47 = vmul.f32 %v8333_v44, %v4943_v53  ;;  %v4941_v61 = vadd.f32 %v4898_v30, %v4523_v50  ;;  %v5114_v49 = vmax.f32 %v5082_v23, 0.0 }
 0x35f   : > { %v6541_v12 = vpop.f32.mrf.mxu1 }
 0x360   : > { %v5112_v15 = vmax.f32 %v5080_v57, 0.0  ;;  %v5044_v39 = vmul.f32 %v8333_v44, %v4941_v61  ;;  %v4944_v20 = vadd.f32 %v6541_v12, %v4526_v51  ;;  %v5132_v45 = vpack.c.bf16 %v5114_v49, %v5113_v25  ;;  %v5445_v57 = vld [vmem:[%s7169_s11 + $0x38] sm:$0xff] }
 0x361   : > { %v4901_v41 = vpop.f32.mrf.mxu1  ;;  %v5085_v11 = vadd.f32 %v8348_v59, %v5046_v47 }
 0x362   : > { %v5047_v55 = vmul.f32 %v8333_v44, %v4944_v20  ;;  %v4942_v56 = vadd.f32 %v4901_v41, %v4524_v62  ;;  %v5131_v63 = vpack.c.bf16 %v5112_v15, %v5111_v2  ;;  %v5083_v6 = vadd.f32 %v8348_v59, %v5044_v39  ;;  %v5443_v62 = vld [vmem:[%s7169_s11 + $0x28] sm:$0xff]  ;;  %v5448_v41 = vld [vmem:[%s7169_s11 + $0x50] sm:$0xff] }
 0x363   : > { %v5117_v16 = vmax.f32 %v5085_v11, 0.0 }
 0x364   : > { %v5086_v10 = vadd.f32 %v8348_v59, %v5047_v55  ;;  %v5045_v19 = vmul.f32 %v8333_v44, %v4942_v56  ;;  %6582 = vmatprep.mubr.bf16.mxu0 %v5131_v63  ;;  %v5115_v33 = vmax.f32 %v5083_v6, 0.0 }
 0x365   : > { %6583 = vmatmul.mubr.bf16.gmra.mxu0 %v5132_v45 }
 0x366   : > { %v5118_v31 = vmax.f32 %v5086_v10, 0.0  ;;  %v5084_v21 = vadd.f32 %v8348_v59, %v5045_v19  ;;  %v5446_v10 = vld [vmem:[%s7169_s11 + $0x40] sm:$0xff] }
 0x368   : > { %v5134_v8 = vpack.c.bf16 %v5118_v31, %v5117_v16  ;;  %v5116_v58 = vmax.f32 %v5084_v21, 0.0 }
 0x36a   : > { %v5133_v4 = vpack.c.bf16 %v5116_v58, %v5115_v33 }
 0x36c   : > { %6586 = vmatprep.mubr.bf16.mxu0 %v5133_v4 }
 0x36d   : > { %6587 = vmatmul.mubr.bf16.gmra.mxu0 %v5134_v8  ;;  %v5449_v8 = vld [vmem:[%s7169_s11 + $0x58] sm:$0xff] }
 0x3f5   : > { %v6560_v44 = vpop.f32.mrf.mxu0 }
 0x3f6   : > { %v5369_v59 = vmul.f32 %v6560_v44, %v8494_v22 }
 0x3f7   : > { %v5233_v3 = vpop.f32.mrf.mxu0 }
 0x3f8   : > { %v5408_v0 = vadd.f32 %v8499_v38, %v5369_v59  ;;  %v5367_v43 = vmul.f32 %v8494_v22, %v5233_v3  ;;  %v5447_v3 = vld [vmem:[%s7169_s11 + $0x48] sm:$0xff] }
 0x3f9   : > { %v6561_v9 = vpop.f32.mrf.mxu0 }
 0x3fa   : > { %v5472_v60 = vadd.f32 %v5440_v54, %v5408_v0  ;;  %v5406_v26 = vadd.f32 %v8499_v38, %v5367_v43  ;;  %v5370_v5 = vmul.f32 %v6561_v9, %v8494_v22 }
 0x3fb   : > { %v5236_v14 = vpop.f32.mrf.mxu0 }
 0x3fc   : > { %v5504_v24 = vmax.f32 %v5472_v60, 0.0  ;;  %v5470_v35 = vadd.f32 %v5438_v13, %v5406_v26  ;;  %v5409_v32 = vadd.f32 %v8499_v38, %v5370_v5  ;;  %v5368_v40 = vmul.f32 %v8494_v22, %v5236_v14  ;;  %v5452_v26 = vld [vmem:[%s7169_s11 + $0x70] sm:$0xff] }
 0x3fd   : > { %v6564_v34 = vpop.f32.mrf.mxu0 }
 0x3fe   : > { %5536 = vst [vmem:[%s8514_s1 + $0x10] sm:$0xff] %v5504_v24  ;;  %v5502_v1 = vmax.f32 %v5470_v35, 0.0  ;;  %v5473_v42 = vadd.f32 %v5441_v17, %v5409_v32  ;;  %v5407_v36 = vadd.f32 %v8499_v38, %v5368_v40  ;;  %v5373_v27 = vmul.f32 %v6564_v34, %v8494_v22  ;;  %v5450_v32 = vld [vmem:[%s7169_s11 + $0x60] sm:$0xff] }
 0x3ff   : > { %v5249_v50 = vpop.f32.mrf.mxu0 }
 0x400   : > { %5534 = vst [vmem:[%s8514_s1] sm:$0xff] %v5502_v1  ;;  %v5505_v7 = vmax.f32 %v5473_v42, 0.0  ;;  %v5471_v53 = vadd.f32 %v5439_v37, %v5407_v36  ;;  %v5412_v29 = vadd.f32 %v8499_v38, %v5373_v27  ;;  %v5371_v18 = vmul.f32 %v8494_v22, %v5249_v50  ;;  %v5453_v36 = vld [vmem:[%s7169_s11 + $0x78] sm:$0xff] }
 0x401   : > { %v6565_v52 = vpop.f32.mrf.mxu0 }
 0x402   : > { %5537 = vst [vmem:[%s8514_s1 + $0x18] sm:$0xff] %v5505_v7  ;;  %v5503_v23 = vmax.f32 %v5471_v53, 0.0  ;;  %v5476_v30 = vadd.f32 %v5444_v28, %v5412_v29  ;;  %v5410_v48 = vadd.f32 %v8499_v38, %v5371_v18  ;;  %v5374_v51 = vmul.f32 %v6565_v52, %v8494_v22  ;;  %v5451_v29 = vld [vmem:[%s7169_s11 + $0x68] sm:$0xff] }
 0x403   : > { %v5252_v47 = vpop.f32.mrf.mxu0 }
 0x404   : > { %5535 = vst [vmem:[%s8514_s1 + $0x8] sm:$0xff] %v5503_v23  ;;  %v5508_v61 = vmax.f32 %v5476_v30, 0.0  ;;  %v5474_v25 = vadd.f32 %v5442_v46, %v5410_v48  ;;  %v5413_v49 = vadd.f32 %v8499_v38, %v5374_v51  ;;  %v5372_v12 = vmul.f32 %v8494_v22, %v5252_v47  ;;  %v5456_v48 = vld [vmem:[%s7169_s11 + $0x90] sm:$0xff] }
 0x405   : > { %v6568_v15 = vpop.f32.mrf.mxu0 }
 0x406   : > { %5540 = vst [vmem:[%s8514_s1 + $0x30] sm:$0xff] %v5508_v61  ;;  %v5506_v39 = vmax.f32 %v5474_v25, 0.0  ;;  %v5477_v20 = vadd.f32 %v5445_v57, %v5413_v49  ;;  %v5411_v2 = vadd.f32 %v8499_v38, %v5372_v12  ;;  %v5377_v45 = vmul.f32 %v6568_v15, %v8494_v22  ;;  %v5454_v49 = vld [vmem:[%s7169_s11 + $0x80] sm:$0xff] }
 0x407   : > { %v5265_v11 = vpop.f32.mrf.mxu0 }
 0x408   : > { %5538 = vst [vmem:[%s8514_s1 + $0x20] sm:$0xff] %v5506_v39  ;;  %v5509_v55 = vmax.f32 %v5477_v20, 0.0  ;;  %v5475_v56 = vadd.f32 %v5443_v62, %v5411_v2  ;;  %v5416_v63 = vadd.f32 %v8499_v38, %v5377_v45  ;;  %v5375_v6 = vmul.f32 %v8494_v22, %v5265_v11  ;;  %v5457_v2 = vld [vmem:[%s7169_s11 + $0x98] sm:$0xff] }
 0x409   : > { %v6569_v19 = vpop.f32.mrf.mxu0 }
 0x40a   : > { %5541 = vst [vmem:[%s8514_s1 + $0x38] sm:$0xff] %v5509_v55  ;;  %v5507_v16 = vmax.f32 %v5475_v56, 0.0  ;;  %v5480_v31 = vadd.f32 %v5448_v41, %v5416_v63  ;;  %v5414_v21 = vadd.f32 %v8499_v38, %v5375_v6  ;;  %v5378_v33 = vmul.f32 %v6569_v19, %v8494_v22  ;;  %v5455_v63 = vld [vmem:[%s7169_s11 + $0x88] sm:$0xff] }
 0x40b   : > { %v5268_v58 = vpop.f32.mrf.mxu0 }
 0x40c   : > { %5539 = vst [vmem:[%s8514_s1 + $0x28] sm:$0xff] %v5507_v16  ;;  %v5512_v4 = vmax.f32 %v5480_v31, 0.0  ;;  %v5478_v44 = vadd.f32 %v5446_v10, %v5414_v21  ;;  %v5417_v59 = vadd.f32 %v8499_v38, %v5378_v33  ;;  %v5376_v54 = vmul.f32 %v8494_v22, %v5268_v58  ;;  %v5460_v21 = vld [vmem:[%s7169_s11 + $0xb0] sm:$0xff] }
 0x40d   : > { %v6572_v0 = vpop.f32.mrf.mxu0 }
 0x40e   : > { %5544 = vst [vmem:[%s8514_s1 + $0x50] sm:$0xff] %v5512_v4  ;;  %v5510_v43 = vmax.f32 %v5478_v44, 0.0  ;;  %v5481_v13 = vadd.f32 %v5449_v8, %v5417_v59  ;;  %v5415_v9 = vadd.f32 %v8499_v38, %v5376_v54  ;;  %v5381_v60 = vmul.f32 %v6572_v0, %v8494_v22  ;;  %v5458_v59 = vld [vmem:[%s7169_s11 + $0xa0] sm:$0xff] }
 0x40f   : > { %v5281_v5 = vpop.f32.mrf.mxu0 }
 0x410   : > { %5542 = vst [vmem:[%s8514_s1 + $0x40] sm:$0xff] %v5510_v43  ;;  %v5513_v17 = vmax.f32 %v5481_v13, 0.0  ;;  %v5479_v14 = vadd.f32 %v5447_v3, %v5415_v9  ;;  %v5420_v24 = vadd.f32 %v8499_v38, %v5381_v60  ;;  %v5379_v35 = vmul.f32 %v8494_v22, %v5281_v5  ;;  %v5461_v9 = vld [vmem:[%s7169_s11 + $0xb8] sm:$0xff] }
 0x411   : > { %v6573_v40 = vpop.f32.mrf.mxu0 }
 0x412   : > { %5545 = vst [vmem:[%s8514_s1 + $0x58] sm:$0xff] %v5513_v17  ;;  %v5511_v37 = vmax.f32 %v5479_v14, 0.0  ;;  %v5484_v34 = vadd.f32 %v5452_v26, %v5420_v24  ;;  %v5418_v1 = vadd.f32 %v8499_v38, %v5379_v35  ;;  %v5382_v42 = vmul.f32 %v6573_v40, %v8494_v22  ;;  %v5459_v24 = vld [vmem:[%s7169_s11 + $0xa8] sm:$0xff] }
 0x413   : > { %v5284_v27 = vpop.f32.mrf.mxu0 }
 0x414   : > { %5543 = vst [vmem:[%s8514_s1 + $0x48] sm:$0xff] %v5511_v37  ;;  %v5516_v28 = vmax.f32 %v5484_v34, 0.0  ;;  %v5482_v50 = vadd.f32 %v5450_v32, %v5418_v1  ;;  %v5421_v7 = vadd.f32 %v8499_v38, %v5382_v42  ;;  %v5380_v53 = vmul.f32 %v8494_v22, %v5284_v27  ;;  %v5464_v1 = vld [vmem:[%s7169_s11 + $0xd0] sm:$0xff] }
 0x415   : > { %v6576_v18 = vpop.f32.mrf.mxu0 }
 0x416   : > { %5548 = vst [vmem:[%s8514_s1 + $0x70] sm:$0xff] %v5516_v28  ;;  %v5514_v46 = vmax.f32 %v5482_v50, 0.0  ;;  %v5485_v52 = vadd.f32 %v5453_v36, %v5421_v7  ;;  %v5419_v23 = vadd.f32 %v8499_v38, %v5380_v53  ;;  %v5385_v30 = vmul.f32 %v6576_v18, %v8494_v22  ;;  %v5462_v7 = vld [vmem:[%s7169_s11 + $0xc0] sm:$0xff] }
 0x417   : > { %v5297_v51 = vpop.f32.mrf.mxu0 }
 0x418   : > { %5546 = vst [vmem:[%s8514_s1 + $0x60] sm:$0xff] %v5514_v46  ;;  %v5517_v57 = vmax.f32 %v5485_v52, 0.0  ;;  %v5483_v47 = vadd.f32 %v5451_v29, %v5419_v23  ;;  %v5424_v61 = vadd.f32 %v8499_v38, %v5385_v30  ;;  %v5383_v25 = vmul.f32 %v8494_v22, %v5297_v51  ;;  %v5465_v23 = vld [vmem:[%s7169_s11 + $0xd8] sm:$0xff] }
 0x419   : > { %v6577_v12 = vpop.f32.mrf.mxu0 }
 0x41a   : > { %5549 = vst [vmem:[%s8514_s1 + $0x78] sm:$0xff] %v5517_v57  ;;  %v5515_v62 = vmax.f32 %v5483_v47, 0.0  ;;  %v5488_v15 = vadd.f32 %v5456_v48, %v5424_v61  ;;  %v5422_v39 = vadd.f32 %v8499_v38, %v5383_v25  ;;  %v5386_v20 = vmul.f32 %v6577_v12, %v8494_v22  ;;  %v5463_v61 = vld [vmem:[%s7169_s11 + $0xc8] sm:$0xff] }
 0x41b   : > { %v5300_v45 = vpop.f32.mrf.mxu0 }
 0x41c   : > { %5547 = vst [vmem:[%s8514_s1 + $0x68] sm:$0xff] %v5515_v62  ;;  %v5520_v41 = vmax.f32 %v5488_v15, 0.0  ;;  %v5486_v11 = vadd.f32 %v5454_v49, %v5422_v39  ;;  %v5425_v55 = vadd.f32 %v8499_v38, %v5386_v20  ;;  %v5384_v56 = vmul.f32 %v8494_v22, %v5300_v45  ;;  %v5468_v39 = vld [vmem:[%s7169_s11 + $0xf0] sm:$0xff] }
 0x41d   : > { %v6580_v6 = vpop.f32.mrf.mxu0 }
 0x41e   : > { %5552 = vst [vmem:[%s8514_s1 + $0x90] sm:$0xff] %v5520_v41  ;;  %v5518_v10 = vmax.f32 %v5486_v11, 0.0  ;;  %v5489_v19 = vadd.f32 %v5457_v2, %v5425_v55  ;;  %v5423_v16 = vadd.f32 %v8499_v38, %v5384_v56  ;;  %v5389_v31 = vmul.f32 %v6580_v6, %v8494_v22  ;;  %v5466_v55 = vld [vmem:[%s7169_s11 + $0xe0] sm:$0xff] }
 0x41f   : > { %v5313_v33 = vpop.f32.mrf.mxu0 }
 0x420   : > { %5550 = vst [vmem:[%s8514_s1 + $0x80] sm:$0xff] %v5518_v10  ;;  %v5521_v8 = vmax.f32 %v5489_v19, 0.0  ;;  %v5487_v58 = vadd.f32 %v5455_v63, %v5423_v16  ;;  %v5428_v4 = vadd.f32 %v8499_v38, %v5389_v31  ;;  %v5387_v44 = vmul.f32 %v8494_v22, %v5313_v33  ;;  %v5469_v16 = vld [vmem:[%s7169_s11 + $0xf8] sm:$0xff] }
 0x421   : > { %v6581_v54 = vpop.f32.mrf.mxu0 }
 0x422   : > { %5553 = vst [vmem:[%s8514_s1 + $0x98] sm:$0xff] %v5521_v8  ;;  %v5519_v3 = vmax.f32 %v5487_v58, 0.0  ;;  %v5492_v0 = vadd.f32 %v5460_v21, %v5428_v4  ;;  %v5426_v43 = vadd.f32 %v8499_v38, %v5387_v44  ;;  %v5390_v13 = vmul.f32 %v6581_v54, %v8494_v22  ;;  %v5467_v4 = vld [vmem:[%s7169_s11 + $0xe8] sm:$0xff]  ;;  %s5567_s11 = scalar_lea.sflag [#allocation6], %s7163_s3 }
 0x423   : > { %v5316_v60 = vpop.f32.mrf.mxu0 }
 0x424   : > { %5551 = vst [vmem:[%s8514_s1 + $0x88] sm:$0xff] %v5519_v3  ;;  %v5524_v26 = vmax.f32 %v5492_v0, 0.0  ;;  %v5490_v5 = vadd.f32 %v5458_v59, %v5426_v43  ;;  %v5429_v17 = vadd.f32 %v8499_v38, %v5390_v13  ;;  %v5388_v14 = vmul.f32 %v8494_v22, %v5316_v60 }
 0x425   : > { %v6584_v35 = vpop.f32.mrf.mxu0 }
 0x426   : > { %5556 = vst [vmem:[%s8514_s1 + $0xb0] sm:$0xff] %v5524_v26  ;;  %v5522_v32 = vmax.f32 %v5490_v5, 0.0  ;;  %v5493_v40 = vadd.f32 %v5461_v9, %v5429_v17  ;;  %v5427_v37 = vadd.f32 %v8499_v38, %v5388_v14  ;;  %v5393_v34 = vmul.f32 %v6584_v35, %v8494_v22 }
 0x427   : > { %v5329_v42 = vpop.f32.mrf.mxu0 }
 0x428   : > { %5554 = vst [vmem:[%s8514_s1 + $0xa0] sm:$0xff] %v5522_v32  ;;  %v5525_v36 = vmax.f32 %v5493_v40, 0.0  ;;  %v5491_v27 = vadd.f32 %v5459_v24, %v5427_v37  ;;  %v5432_v28 = vadd.f32 %v8499_v38, %v5393_v34  ;;  %v5391_v50 = vmul.f32 %v8494_v22, %v5329_v42 }
 0x429   : > { %v6585_v53 = vpop.f32.mrf.mxu0 }
 0x42a   : > { %5557 = vst [vmem:[%s8514_s1 + $0xb8] sm:$0xff] %v5525_v36  ;;  %v5523_v29 = vmax.f32 %v5491_v27, 0.0  ;;  %v5496_v18 = vadd.f32 %v5464_v1, %v5432_v28  ;;  %v5430_v46 = vadd.f32 %v8499_v38, %v5391_v50  ;;  %v5394_v52 = vmul.f32 %v6585_v53, %v8494_v22 }
 0x42b   : > { %v5332_v30 = vpop.f32.mrf.mxu0 }
 0x42c   : > { %5555 = vst [vmem:[%s8514_s1 + $0xa8] sm:$0xff] %v5523_v29  ;;  %v5528_v48 = vmax.f32 %v5496_v18, 0.0  ;;  %v5494_v51 = vadd.f32 %v5462_v7, %v5430_v46  ;;  %v5433_v57 = vadd.f32 %v8499_v38, %v5394_v52  ;;  %v5392_v47 = vmul.f32 %v8494_v22, %v5332_v30 }
 0x42d   : > { %v6588_v25 = vpop.f32.mrf.mxu0 }
 0x42e   : > { %5560 = vst [vmem:[%s8514_s1 + $0xd0] sm:$0xff] %v5528_v48  ;;  %v5526_v49 = vmax.f32 %v5494_v51, 0.0  ;;  %v5497_v12 = vadd.f32 %v5465_v23, %v5433_v57  ;;  %v5431_v62 = vadd.f32 %v8499_v38, %v5392_v47  ;;  %v5397_v15 = vmul.f32 %v6588_v25, %v8494_v22 }
 0x42f   : > { %v5345_v20 = vpop.f32.mrf.mxu0 }
 0x430   : > { %5558 = vst [vmem:[%s8514_s1 + $0xc0] sm:$0xff] %v5526_v49  ;;  %v5529_v2 = vmax.f32 %v5497_v12, 0.0  ;;  %v5495_v45 = vadd.f32 %v5463_v61, %v5431_v62  ;;  %v5436_v41 = vadd.f32 %v8499_v38, %v5397_v15  ;;  %v5395_v11 = vmul.f32 %v8494_v22, %v5345_v20 }
 0x431   : > { %v6589_v56 = vpop.f32.mrf.mxu0 }
 0x432   : > { %5561 = vst [vmem:[%s8514_s1 + $0xd8] sm:$0xff] %v5529_v2  ;;  %v5527_v63 = vmax.f32 %v5495_v45, 0.0  ;;  %v5500_v6 = vadd.f32 %v5468_v39, %v5436_v41  ;;  %v5434_v10 = vadd.f32 %v8499_v38, %v5395_v11  ;;  %v5398_v19 = vmul.f32 %v6589_v56, %v8494_v22 }
 0x433   : > { %v5348_v31 = vpop.f32.mrf.mxu0 }
 0x434   : > { %5559 = vst [vmem:[%s8514_s1 + $0xc8] sm:$0xff] %v5527_v63  ;;  %v5532_v21 = vmax.f32 %v5500_v6, 0.0  ;;  %v5498_v33 = vadd.f32 %v5466_v55, %v5434_v10  ;;  %v5437_v8 = vadd.f32 %v8499_v38, %v5398_v19  ;;  %v5396_v58 = vmul.f32 %v8494_v22, %v5348_v31 }
 0x436   : > { %5564 = vst [vmem:[%s8514_s1 + $0xf0] sm:$0xff] %v5532_v21  ;;  %v5530_v44 = vmax.f32 %v5498_v33, 0.0  ;;  %v5501_v59 = vadd.f32 %v5469_v16, %v5437_v8  ;;  %v5435_v54 = vadd.f32 %v8499_v38, %v5396_v58 }
 0x438   : > { %5562 = vst [vmem:[%s8514_s1 + $0xe0] sm:$0xff] %v5530_v44  ;;  %v5533_v3 = vmax.f32 %v5501_v59, 0.0  ;;  %v5499_v0 = vadd.f32 %v5467_v4, %v5435_v54 }
 0x43a   : > { %5565 = vst [vmem:[%s8514_s1 + $0xf8] sm:$0xff] %v5533_v3  ;;  %v5531_v22 = vmax.f32 %v5499_v0, 0.0 }
 0x43c   : > { %5563 = vst [vmem:[%s8514_s1 + $0xe8] sm:$0xff] %v5531_v22 }
 0x43d   : > { %6898 = shalt.err (!%p6895_p9)
}
 0x43e   : > { %s6899_s23 = scalar_lea.hbm %s8636_s18, 4096  ;;  %s6903_s28 = scalar_lea.hbm %s8693_s10, 8192 }
 0x43f   : > { %p6900_p1 = scmp.ne.s32.totalorder %s8636_s18, %s6899_s23  ;;  %p6904_p11 = scmp.lt.s32.totalorder %s8636_s18, %s8693_s10 }
 0x440   : > { %p6905_p13 = scmp.lt.s32.totalorder %s6903_s28, %s6899_s23 }
 0x441   : > { %p6901_p8 = pnand %p6900_p1, %p8789_p6 }
 0x442   : > { %p6906_p2 = por %p6905_p13, %p6904_p11 }
 0x443   : > { %p6902_p10 = pneg %p6901_p8 }
 0x445   : > { %p6907_p4 = pnand %p6906_p2, %p6902_p10 }
 0x447   : > { %6910 = shalt.err (!%p6907_p4)
}
 0x448   : > { %s6971_s21 = smov 128   ;;  %s6972_s29 = smov 8  }
 0x449   : > { %6620 = dma.vmem_to_hbm [thread:$0]  (%p8789_p6), %s8638_s19, 4096, %s8636_s18, %s5567_s11, %s6971_s21, %s6971_s21, %s6972_s29  }
 0x44a PF: > { %s5595_s24 = sand.u32 1, %s6945_s13   ;;  %p8790_p12 = scmp.ne.s32.totalorder %s8714_s20, 0 }
 0x44b   : > { %p8791_p0 = scmp.ge.s32.totalorder %s6957_s16, 2  ;;  %s5596_s17 = scalar_lea.sflag [#allocation6], %s5595_s24 }
 0x44d   : > { %p6637_p5 = pnand %p8791_p0, %p8790_p12 }
 0x44f   : > { %p6638_p3 = pneg %p6637_p5 }
 0x451   : > { %6940 = dma.done.wait (%p6638_p3), %s5596_s17, 4096  }
 0x452   : > { %6942 = vsyncadd (%p6638_p3), %s5596_s17, 4294963200  ;;  %s8792_s12 = sld [smem:[#allocation17_spill]]  ;;  %p25_p7 = scmp.ge.s32.totalorder %s7108_s26, 4  }
 0x453   : > { %s8793_s13 = smov %s6949_s14  ;;  %s8794_s14 = smov %s6953_s15 }
 0x454   : > { %s8796_s16 = smov %s7108_s26  ;;  %27 = sbr.rel (!%p25_p7) target bundleno = 11 (0xb), region = 127 }
 0x458   : > { %s8795_s15 = smov %s8792_s12 }
 0x459   :  { %5601 = vsyncpa [#allocation5], 1 }
 0x45a   :  { %5603 = vsyncpa [#allocation5 + $0x1], 1 }
 0x45b   :  { %5604 = vsyncpa [#allocation8], 1 }
 0x45c   :  { %5605 = vsyncpa [#allocation11], 1 }
 0x45d   :  { %5606 = vsyncpa [#allocation6], 1 }
 0x45e   :  { %5608 = vsyncpa [#allocation6 + $0x1], 1 }

</bundles_post_ra>
